<compile_context>
chip_gen: v6e
topology: v6e:2x2x1
jax: 0.10.0
libtpu: 0.0.40
codegen_flags: <defaults>
</compile_context>

<pallas_src>
import functools

import numpy as np
import jax
import jax.numpy as jnp
from jax.experimental import pallas as pl
from jax.experimental.pallas import tpu as pltpu  # noqa: F401  (TPU backend)

# ----------------------------- configuration --------------------------------
IMG = 16          # img_size
PATCH = 4         # patch_size
CIN = 3           # in_channels
HID = 32          # hidden_dim
NHEAD = 4
MLP = 64          # mlp_dim
MAX_STEPS = 2
COUT = 2          # out_channels
HEAD_DIM = HID // NHEAD
HP = IMG // PATCH          # patches per side = 4
NPATCH = HP * HP           # 16 tokens


# ----------------------------- in-kernel helpers -----------------------------
def _erf(x):
    """erf via Abramowitz-Stegun 7.1.26 (max abs err ~1.5e-7, f32 level)."""
    a1, a2, a3, a4, a5 = (0.254829592, -0.284496736, 1.421413741,
                          -1.453152027, 1.061405429)
    pc = 0.3275911
    ax = jnp.abs(x)
    t = 1.0 / (1.0 + pc * ax)
    poly = ((((a5 * t + a4) * t + a3) * t + a2) * t + a1) * t
    y = 1.0 - poly * jnp.exp(-ax * ax)
    return jnp.where(x < 0.0, -y, y)


# ------------------------------ fused kernel --------------------------------
def _fused_kernel(cols_ref, pew_ref, peb_ref, pos_ref, amask_ref, hmask_ref,
                  wqkv_ref, bqkv_ref, wo_ref, bo_ref,
                  g1_ref, be1_ref, w1_ref, b1_ref, w2_ref, b2_ref,
                  g2_ref, be2_ref,
                  lm_ref,
                  xw1_ref, ry1_ref, br1_ref,
                  xw2_ref, ry2_ref, br2_ref,
                  xw3_ref, ry3_ref, br3_ref,
                  awcat_ref, ahb_ref,
                  o_ref, *, nhead, max_steps, batch, hp, npatch, hid):
    f32 = jnp.float32
    D = hid
    R = batch * npatch          # token rows          (32)
    RS = nhead * R              # head-stacked rows   (128)

    # ---------------- patch embedding + positional embedding ----------------
    tok = jnp.dot(cols_ref[...], pew_ref[...], preferred_element_type=f32)
    tok = tok + peb_ref[...] + pos_ref[...]                     # (R, D)

    # --------------- loop-invariant loads / broadcasts (hoisted) ------------
    amask = amask_ref[...]                                      # (RS, RS) additive
    hmask = hmask_ref[...]                                      # (RS, D)  0/1
    wqkv = wqkv_ref[...]
    wo = wo_ref[...]
    w1 = w1_ref[...]
    w2 = w2_ref[...]
    mlp = w1.shape[1]
    bqkv = jnp.broadcast_to(bqkv_ref[...], (R, 3 * D))
    bo = jnp.broadcast_to(bo_ref[...], (R, D))
    b1 = jnp.broadcast_to(b1_ref[...], (R, mlp))
    b2 = jnp.broadcast_to(b2_ref[...], (R, D))
    g1 = jnp.broadcast_to(g1_ref[...], (R, D))
    be1 = jnp.broadcast_to(be1_ref[...], (R, D))
    g2 = jnp.broadcast_to(g2_ref[...], (R, D))
    be2 = jnp.broadcast_to(be2_ref[...], (R, D))

    def layer_norm(z, g, b):
        mu = jnp.mean(z, axis=-1, keepdims=True)
        var = jnp.mean((z - mu) ** 2, axis=-1, keepdims=True)
        return (z - mu) * jax.lax.rsqrt(var + 1e-5) * g + b

    # ------------------------- one ViT encoder block -------------------------
    def vit_block(t):
        # QKV projection; 1/sqrt(head_dim) already folded into the Q columns.
        qkv = jnp.dot(t, wqkv, preferred_element_type=f32) + bqkv    # (R, 3D)
        q = qkv[:, 0:D]
        k = qkv[:, D:2 * D]
        v = qkv[:, 2 * D:3 * D]
        # stack heads along the row (sublane) axis -> (RS, D)
        qs = jnp.concatenate([q] * nhead, axis=0) * hmask
        ks = jnp.concatenate([k] * nhead, axis=0)
        vs = jnp.concatenate([v] * nhead, axis=0)
        # ONE QK^T, ONE lane-dense softmax, ONE P@V for all heads & batches
        s = jax.lax.dot_general(qs, ks, (((1,), (1,)), ((), ())),
                                preferred_element_type=f32) + amask  # (RS, RS)
        s = s - jnp.max(s, axis=-1, keepdims=True)
        e = jnp.exp(s)
        p_att = e * (1.0 / jnp.sum(e, axis=-1, keepdims=True))
        hv = jnp.dot(p_att, vs, preferred_element_type=f32) * hmask  # (RS, D)
        # head-concat folded back to (R, D): disjoint channel support per block
        hvcat = hv[0:R, :]
        for h in range(1, nhead):
            hvcat = hvcat + hv[h * R:(h + 1) * R, :]
        att = jnp.dot(hvcat, wo, preferred_element_type=f32) + bo
        y = layer_norm(t + att, g1, be1)
        h1 = jnp.dot(y, w1, preferred_element_type=f32) + b1
        h1 = 0.5 * h1 * (1.0 + _erf(h1 * 0.7071067811865476))        # exact GELU
        h2 = jnp.dot(h1, w2, preferred_element_type=f32) + b2
        return layer_norm(y + h2, g2, be2)

    # universal-transformer loop (same weight-tied block, max_steps times)
    for _ in range(max_steps):
        tok = vit_block(tok)

    # ------- tokens (b, py*HP+px) x c -> latent rows (b,py) x (px*c) --------
    bh = batch * hp
    m = jnp.dot(lm_ref[...], tok, preferred_element_type=f32)     # (hp*bh, D)
    lat = jnp.concatenate(
        [m[px * bh:(px + 1) * bh, :] for px in range(hp)], axis=1)  # (bh, hp*D)

    # --------------------------- decoder (hoisted) ---------------------------
    # ConvTranspose2d(k=4, s=2, p=1) as: one wide lane-dense x-mix matmul
    # against the ky-concatenated tap matrix, then one merged row-scatter.
    def deconv(a, xw_ref, ry_ref, br_ref, relu):
        lo = xw_ref.shape[1] // 4
        t = jnp.dot(a, xw_ref[...], preferred_element_type=f32)       # (Ri, 4*Lo)
        ts = jnp.concatenate(
            [t[:, ky * lo:(ky + 1) * lo] for ky in range(4)], axis=0)  # (4*Ri, Lo)
        acc = jnp.dot(ry_ref[...], ts, preferred_element_type=f32) + br_ref[...]
        return jnp.maximum(acc, 0.0) if relu else acc

    d = deconv(lat, xw1_ref, ry1_ref, br1_ref, True)     # (B*8,  128)
    d = deconv(d, xw2_ref, ry2_ref, br2_ref, True)       # (B*16, 128)
    d = deconv(d, xw3_ref, ry3_ref, br3_ref, False)      # (B*32, 64)

    # ----- bilinear resize (align_corners=False) + single dense store -------
    th = jnp.dot(d, awcat_ref[...], preferred_element_type=f32)        # (B*2I, CO*I)
    o_ref[...] = jnp.dot(ahb_ref[...], th, preferred_element_type=f32)  # (B*I, CO*I)


# ------------------------------ wrapper --------------------------------------
def maze_vitut_forward(x, prep, max_steps=MAX_STEPS):
    B = x.shape[0]
    # patch im2col of the raw input (tiny, input-side glue only)
    cols = x.reshape(B, CIN, HP, PATCH, HP, PATCH)
    cols = jnp.transpose(cols, (0, 2, 4, 1, 3, 5)).reshape(
        B * NPATCH, CIN * PATCH * PATCH)
    args = [cols,
            prep["pew"], prep["peb"], prep["pos_t"], prep["amask"], prep["hmask"],
            prep["wqkv"], prep["bqkv"], prep["wo"], prep["bo"],
            prep["g1"], prep["be1"], prep["w1"], prep["b1"],
            prep["w2"], prep["b2"], prep["g2"], prep["be2"],
            prep["lmcat"],
            prep["xw1"], prep["ry1"], prep["br1"],
            prep["xw2"], prep["ry2"], prep["br2"],
            prep["xw3"], prep["ry3"], prep["br3"],
            prep["awcat"], prep["ahb"]]
    out2d = pl.pallas_call(
        functools.partial(_fused_kernel, nhead=NHEAD, max_steps=max_steps,
                          batch=B, hp=HP, npatch=NPATCH, hid=HID),
        out_shape=jax.ShapeDtypeStruct((B * IMG, COUT * IMG), jnp.float32),
    )(*args)
    # lane-dense (B*IMG, COUT*IMG) kernel output -> NCHW in the wrapper
    return out2d.reshape(B, IMG, COUT, IMG).transpose(0, 2, 1, 3)


# --------------------------- weight precomputation ---------------------------
def _bilinear_matrix(n_in, n_out):
    """PyTorch F.interpolate(mode='bilinear', align_corners=False) as a matrix."""
    A = np.zeros((n_out, n_in), np.float32)
    scale = n_in / n_out
    for o in range(n_out):
        src = max((o + 0.5) * scale - 0.5, 0.0)
        i0 = min(int(np.floor(src)), n_in - 1)
        i1 = min(i0 + 1, n_in - 1)
        w1 = src - i0
        A[o, i0] += 1.0 - w1
        A[o, i1] += w1
    return A


def _deconv_mats(w, hi, wi, batch):
    """ConvTranspose2d(k=4,s=2,p=1) weight (Cin,Cout,4,4) ->
         XWcat (Wi*Cin, 4*Wo*Cout)  per-ky x/channel mixing, lane-concatenated
         RYcat (B*Ho,  4*B*Hi)      per-ky row scatter, lane-concatenated."""
    w = np.asarray(w, np.float32)
    cin, cout, k, _ = w.shape
    ho, wo = 2 * hi, 2 * wi
    T = np.zeros((k, wi, wo), np.float32)          # T[kx, ix, xo] = [xo==2ix-1+kx]
    for kx in range(k):
        for ix in range(wi):
            xo = 2 * ix - 1 + kx
            if 0 <= xo < wo:
                T[kx, ix, xo] = 1.0
    xw = np.einsum('aio,cdka->kicod', T, w).reshape(k, wi * cin, wo * cout)
    xwcat = np.concatenate([xw[ky] for ky in range(k)], axis=1)
    ry = np.zeros((k, batch * ho, batch * hi), np.float32)
    for ky in range(k):
        for b in range(batch):
            for iy in range(hi):
                yo = 2 * iy - 1 + ky
                if 0 <= yo < ho:
                    ry[ky, b * ho + yo, b * hi + iy] = 1.0
    rycat = np.concatenate([ry[ky] for ky in range(k)], axis=1)
    return jnp.asarray(xwcat), jnp.asarray(rycat)


def prepare_params(p, batch):
    """All weight transforms / constant matrices, computed once on the host."""
    prep = {}
    R = batch * NPATCH
    RS = NHEAD * R

    prep["pew"] = p["pe_w"].reshape(HID, -1).T                    # (48, 32)
    prep["peb"] = p["pe_b"].reshape(1, HID)
    prep["pos_t"] = jnp.tile(p["pos"][0], (batch, 1))             # (R, HID)

    # combined (head x batch) block-diagonal additive attention mask
    am = np.full((RS, RS), -1e30, np.float32)
    for h in range(NHEAD):
        for b in range(batch):
            r0 = h * R + b * NPATCH
            am[r0:r0 + NPATCH, r0:r0 + NPATCH] = 0.0
    prep["amask"] = jnp.asarray(am)

    # per-head channel-selection mask for row-stacked Q and attention output
    hm = np.zeros((RS, HID), np.float32)
    for h in range(NHEAD):
        hm[h * R:(h + 1) * R, h * HEAD_DIM:(h + 1) * HEAD_DIM] = 1.0
    prep["hmask"] = jnp.asarray(hm)

    # QKV projection with 1/sqrt(head_dim) folded into the Q columns (in f64)
    wqkv = np.asarray(p["in_proj_w"], np.float64).T.copy()        # (HID, 3*HID)
    bqkv = np.asarray(p["in_proj_b"], np.float64).copy()
    scale = 1.0 / np.sqrt(float(HEAD_DIM))
    wqkv[:, :HID] *= scale
    bqkv[:HID] *= scale
    prep["wqkv"] = jnp.asarray(wqkv, dtype=jnp.float32)
    prep["bqkv"] = jnp.asarray(bqkv, dtype=jnp.float32).reshape(1, -1)

    prep["wo"] = p["out_proj_w"].T
    prep["bo"] = p["out_proj_b"].reshape(1, -1)
    prep["g1"] = p["ln1_g"].reshape(1, -1)
    prep["be1"] = p["ln1_b"].reshape(1, -1)
    prep["w1"] = p["mlp1_w"].T
    prep["b1"] = p["mlp1_b"].reshape(1, -1)
    prep["w2"] = p["mlp2_w"].T
    prep["b2"] = p["mlp2_b"].reshape(1, -1)
    prep["g2"] = p["ln2_g"].reshape(1, -1)
    prep["be2"] = p["ln2_b"].reshape(1, -1)

    # token (b, py*HP+px) x c -> (px, b, py)-stacked rows, single matmul
    lm = np.zeros((HP * batch * HP, batch * NPATCH), np.float32)
    for px in range(HP):
        for b in range(batch):
            for py in range(HP):
                lm[px * (batch * HP) + b * HP + py,
                   b * NPATCH + py * HP + px] = 1.0
    prep["lmcat"] = jnp.asarray(lm)

    # deconv stack (ky-concatenated tap / scatter matrices) + bias rows
    prep["xw1"], prep["ry1"] = _deconv_mats(p["dc1_w"], HP, HP, batch)
    prep["xw2"], prep["ry2"] = _deconv_mats(p["dc2_w"], 2 * HP, 2 * HP, batch)
    prep["xw3"], prep["ry3"] = _deconv_mats(p["dc3_w"], 4 * HP, 4 * HP, batch)
    prep["br1"] = jnp.tile(p["dc1_b"], 2 * HP).reshape(1, -1)     # (1, 128)
    prep["br2"] = jnp.tile(p["dc2_b"], 4 * HP).reshape(1, -1)     # (1, 128)
    prep["br3"] = jnp.tile(p["dc3_b"], 8 * HP).reshape(1, -1)     # (1, 64)

    # bilinear resize 2*IMG -> IMG, both output channels fused into one matmul
    Aw = _bilinear_matrix(2 * IMG, IMG)                           # (16, 32)
    awcat = np.zeros((2 * IMG * COUT, COUT * IMG), np.float32)
    for co in range(COUT):
        for xx in range(2 * IMG):
            awcat[xx * COUT + co, co * IMG:(co + 1) * IMG] = Aw[:, xx]
    prep["awcat"] = jnp.asarray(awcat)
    Ah = _bilinear_matrix(2 * IMG, IMG)
    prep["ahb"] = jnp.asarray(np.kron(np.eye(batch, dtype=np.float32), Ah))
    return prep


# ------------------------------- parameters ----------------------------------
def init_params(key):
    ks = jax.random.split(key, 17)
    std = 0.02
    p = {
        "pe_w": jax.random.normal(ks[0], (HID, CIN, PATCH, PATCH)) * std,
        "pe_b": jax.random.normal(ks[1], (HID,)) * std,
        "pos": jax.random.normal(ks[2], (1, NPATCH, HID)) * std,
        "in_proj_w": jax.random.normal(ks[3], (3 * HID, HID)) * std,
        "in_proj_b": jax.random.normal(ks[4], (3 * HID,)) * std,
        "out_proj_w": jax.random.normal(ks[5], (HID, HID)) * std,
        "out_proj_b": jax.random.normal(ks[6], (HID,)) * std,
        "ln1_g": jnp.ones((HID,)), "ln1_b": jnp.zeros((HID,)),
        "ln2_g": jnp.ones((HID,)), "ln2_b": jnp.zeros((HID,)),
        "mlp1_w": jax.random.normal(ks[7], (MLP, HID)) * std,
        "mlp1_b": jax.random.normal(ks[8], (MLP,)) * std,
        "mlp2_w": jax.random.normal(ks[9], (HID, MLP)) * std,
        "mlp2_b": jax.random.normal(ks[10], (HID,)) * std,
        "dc1_w": jax.random.normal(ks[11], (HID, HID // 2, 4, 4)) * std,
        "dc1_b": jax.random.normal(ks[12], (HID // 2,)) * std,
        "dc2_w": jax.random.normal(ks[13], (HID // 2, HID // 4, 4, 4)) * std,
        "dc2_b": jax.random.normal(ks[14], (HID // 4,)) * std,
        "dc3_w": jax.random.normal(ks[15], (HID // 4, COUT, 4, 4)) * std,
        "dc3_b": jax.random.normal(ks[16], (COUT,)) * std,
    }
    return jax.tree_util.tree_map(lambda a: a.astype(jnp.float32), p)


if __name__ == "__main__":
    key = jax.random.PRNGKey(0)
    kp, kx = jax.random.split(key)
    params = init_params(kp)
    x = jax.random.normal(kx, (2, CIN, IMG, IMG), jnp.float32)   # NCHW

    prep = prepare_params(params, batch=2)                       # once, on host
    fwd = jax.jit(lambda xx: maze_vitut_forward(xx, prep))
    out = fwd(x)
    jax.block_until_ready(out)
    assert out.shape == (2, COUT, IMG, IMG), out.shape
    assert bool(jnp.all(jnp.isfinite(out)))
    print("KERNEL_OK")
</pallas_src>

<mosaic_0001>
module attributes {stable_mosaic.version = 11 : i64} {
  func.func @_fused_kernel(%arg0: memref<32x48xf32, #tpu.memory_space<vmem>>, %arg1: memref<48x32xf32, #tpu.memory_space<vmem>>, %arg2: memref<1x32xf32, #tpu.memory_space<vmem>>, %arg3: memref<32x32xf32, #tpu.memory_space<vmem>>, %arg4: memref<128x128xf32, #tpu.memory_space<vmem>>, %arg5: memref<128x32xf32, #tpu.memory_space<vmem>>, %arg6: memref<32x96xf32, #tpu.memory_space<vmem>>, %arg7: memref<1x96xf32, #tpu.memory_space<vmem>>, %arg8: memref<32x32xf32, #tpu.memory_space<vmem>>, %arg9: memref<1x32xf32, #tpu.memory_space<vmem>>, %arg10: memref<1x32xf32, #tpu.memory_space<vmem>>, %arg11: memref<1x32xf32, #tpu.memory_space<vmem>>, %arg12: memref<32x64xf32, #tpu.memory_space<vmem>>, %arg13: memref<1x64xf32, #tpu.memory_space<vmem>>, %arg14: memref<64x32xf32, #tpu.memory_space<vmem>>, %arg15: memref<1x32xf32, #tpu.memory_space<vmem>>, %arg16: memref<1x32xf32, #tpu.memory_space<vmem>>, %arg17: memref<1x32xf32, #tpu.memory_space<vmem>>, %arg18: memref<32x32xf32, #tpu.memory_space<vmem>>, %arg19: memref<128x512xf32, #tpu.memory_space<vmem>>, %arg20: memref<16x32xf32, #tpu.memory_space<vmem>>, %arg21: memref<1x128xf32, #tpu.memory_space<vmem>>, %arg22: memref<128x512xf32, #tpu.memory_space<vmem>>, %arg23: memref<32x64xf32, #tpu.memory_space<vmem>>, %arg24: memref<1x128xf32, #tpu.memory_space<vmem>>, %arg25: memref<128x256xf32, #tpu.memory_space<vmem>>, %arg26: memref<64x128xf32, #tpu.memory_space<vmem>>, %arg27: memref<1x64xf32, #tpu.memory_space<vmem>>, %arg28: memref<64x32xf32, #tpu.memory_space<vmem>>, %arg29: memref<32x64xf32, #tpu.memory_space<vmem>>, %arg30: memref<32x32xf32, #tpu.memory_space<vmem>>) attributes {dimension_semantics = [], scalar_prefetch = 0 : i64, scratch_operands = 0 : i64, tpu.core_type = #tpu.core_type<tc>} {
    %c0 = arith.constant 0 : index
    %c0_0 = arith.constant 0 : index
    %0 = vector.load %arg0[%c0, %c0_0] : memref<32x48xf32, #tpu.memory_space<vmem>>, vector<32x48xf32>
    %c0_1 = arith.constant 0 : index
    %c0_2 = arith.constant 0 : index
    %1 = vector.load %arg1[%c0_1, %c0_2] : memref<48x32xf32, #tpu.memory_space<vmem>>, vector<48x32xf32>
    %cst = arith.constant dense<0.000000e+00> : vector<32x32xf32>
    %2 = tpu.matmul %0, %1, %cst {dimension_numbers = #tpu.dot_dimension_numbers<[1], [0], [0], [1], [0, 0, 1, 1], [], []>} : vector<32x48xf32>, vector<48x32xf32>, vector<32x32xf32> -> vector<32x32xf32>
    %c0_3 = arith.constant 0 : index
    %c0_4 = arith.constant 0 : index
    %3 = vector.load %arg2[%c0_3, %c0_4] : memref<1x32xf32, #tpu.memory_space<vmem>>, vector<1x32xf32>
    %4 = vector.broadcast %3 : vector<1x32xf32> to vector<32x32xf32>
    %5 = arith.addf %2, %4 : vector<32x32xf32>
    %c0_5 = arith.constant 0 : index
    %c0_6 = arith.constant 0 : index
    %6 = vector.load %arg3[%c0_5, %c0_6] : memref<32x32xf32, #tpu.memory_space<vmem>>, vector<32x32xf32>
    %7 = arith.addf %5, %6 : vector<32x32xf32>
    %c0_7 = arith.constant 0 : index
    %c0_8 = arith.constant 0 : index
    %8 = vector.load %arg4[%c0_7, %c0_8] : memref<128x128xf32, #tpu.memory_space<vmem>>, vector<128x128xf32>
    %c0_9 = arith.constant 0 : index
    %c0_10 = arith.constant 0 : index
    %9 = vector.load %arg5[%c0_9, %c0_10] : memref<128x32xf32, #tpu.memory_space<vmem>>, vector<128x32xf32>
    %c0_11 = arith.constant 0 : index
    %c0_12 = arith.constant 0 : index
    %10 = vector.load %arg6[%c0_11, %c0_12] : memref<32x96xf32, #tpu.memory_space<vmem>>, vector<32x96xf32>
    %c0_13 = arith.constant 0 : index
    %c0_14 = arith.constant 0 : index
    %11 = vector.load %arg8[%c0_13, %c0_14] : memref<32x32xf32, #tpu.memory_space<vmem>>, vector<32x32xf32>
    %c0_15 = arith.constant 0 : index
    %c0_16 = arith.constant 0 : index
    %12 = vector.load %arg12[%c0_15, %c0_16] : memref<32x64xf32, #tpu.memory_space<vmem>>, vector<32x64xf32>
    %c0_17 = arith.constant 0 : index
    %c0_18 = arith.constant 0 : index
    %13 = vector.load %arg14[%c0_17, %c0_18] : memref<64x32xf32, #tpu.memory_space<vmem>>, vector<64x32xf32>
    %c0_19 = arith.constant 0 : index
    %c0_20 = arith.constant 0 : index
    %14 = vector.load %arg7[%c0_19, %c0_20] : memref<1x96xf32, #tpu.memory_space<vmem>>, vector<1x96xf32>
    %15 = vector.shape_cast %14 : vector<1x96xf32> to vector<1x96xf32>
    %16 = vector.broadcast %15 : vector<1x96xf32> to vector<32x96xf32>
    %c0_21 = arith.constant 0 : index
    %c0_22 = arith.constant 0 : index
    %17 = vector.load %arg9[%c0_21, %c0_22] : memref<1x32xf32, #tpu.memory_space<vmem>>, vector<1x32xf32>
    %18 = vector.shape_cast %17 : vector<1x32xf32> to vector<1x32xf32>
    %19 = vector.broadcast %18 : vector<1x32xf32> to vector<32x32xf32>
    %c0_23 = arith.constant 0 : index
    %c0_24 = arith.constant 0 : index
    %20 = vector.load %arg13[%c0_23, %c0_24] : memref<1x64xf32, #tpu.memory_space<vmem>>, vector<1x64xf32>
    %21 = vector.shape_cast %20 : vector<1x64xf32> to vector<1x64xf32>
    %22 = vector.broadcast %21 : vector<1x64xf32> to vector<32x64xf32>
    %c0_25 = arith.constant 0 : index
    %c0_26 = arith.constant 0 : index
    %23 = vector.load %arg15[%c0_25, %c0_26] : memref<1x32xf32, #tpu.memory_space<vmem>>, vector<1x32xf32>
    %24 = vector.shape_cast %23 : vector<1x32xf32> to vector<1x32xf32>
    %25 = vector.broadcast %24 : vector<1x32xf32> to vector<32x32xf32>
    %c0_27 = arith.constant 0 : index
    %c0_28 = arith.constant 0 : index
    %26 = vector.load %arg10[%c0_27, %c0_28] : memref<1x32xf32, #tpu.memory_space<vmem>>, vector<1x32xf32>
    %27 = vector.shape_cast %26 : vector<1x32xf32> to vector<1x32xf32>
    %28 = vector.broadcast %27 : vector<1x32xf32> to vector<32x32xf32>
    %c0_29 = arith.constant 0 : index
    %c0_30 = arith.constant 0 : index
    %29 = vector.load %arg11[%c0_29, %c0_30] : memref<1x32xf32, #tpu.memory_space<vmem>>, vector<1x32xf32>
    %30 = vector.shape_cast %29 : vector<1x32xf32> to vector<1x32xf32>
    %31 = vector.broadcast %30 : vector<1x32xf32> to vector<32x32xf32>
    %c0_31 = arith.constant 0 : index
    %c0_32 = arith.constant 0 : index
    %32 = vector.load %arg16[%c0_31, %c0_32] : memref<1x32xf32, #tpu.memory_space<vmem>>, vector<1x32xf32>
    %33 = vector.shape_cast %32 : vector<1x32xf32> to vector<1x32xf32>
    %34 = vector.broadcast %33 : vector<1x32xf32> to vector<32x32xf32>
    %c0_33 = arith.constant 0 : index
    %c0_34 = arith.constant 0 : index
    %35 = vector.load %arg17[%c0_33, %c0_34] : memref<1x32xf32, #tpu.memory_space<vmem>>, vector<1x32xf32>
    %36 = vector.shape_cast %35 : vector<1x32xf32> to vector<1x32xf32>
    %37 = vector.broadcast %36 : vector<1x32xf32> to vector<32x32xf32>
    %cst_35 = arith.constant dense<0.000000e+00> : vector<32x96xf32>
    %38 = tpu.matmul %7, %10, %cst_35 {dimension_numbers = #tpu.dot_dimension_numbers<[1], [0], [0], [1], [0, 0, 1, 1], [], []>} : vector<32x32xf32>, vector<32x96xf32>, vector<32x96xf32> -> vector<32x96xf32>
    %39 = arith.addf %38, %16 : vector<32x96xf32>
    %40 = vector.extract_strided_slice %39 {offsets = [0, 0], sizes = [32, 32], strides = [1, 1]} : vector<32x96xf32> to vector<32x32xf32>
    %41 = vector.extract_strided_slice %39 {offsets = [0, 32], sizes = [32, 32], strides = [1, 1]} : vector<32x96xf32> to vector<32x32xf32>
    %42 = vector.extract_strided_slice %39 {offsets = [0, 64], sizes = [32, 32], strides = [1, 1]} : vector<32x96xf32> to vector<32x32xf32>
    %43 = tpu.concatenate %40, %40, %40, %40 in 0 : vector<32x32xf32>, vector<32x32xf32>, vector<32x32xf32>, vector<32x32xf32> -> vector<128x32xf32>
    %44 = arith.mulf %43, %9 : vector<128x32xf32>
    %45 = tpu.concatenate %41, %41, %41, %41 in 0 : vector<32x32xf32>, vector<32x32xf32>, vector<32x32xf32>, vector<32x32xf32> -> vector<128x32xf32>
    %46 = tpu.concatenate %42, %42, %42, %42 in 0 : vector<32x32xf32>, vector<32x32xf32>, vector<32x32xf32>, vector<32x32xf32> -> vector<128x32xf32>
    %cst_36 = arith.constant dense<0.000000e+00> : vector<128x128xf32>
    %47 = tpu.matmul %44, %45, %cst_36 {dimension_numbers = #tpu.dot_dimension_numbers<[1], [1], [0], [0], [0, 0, 1, 0], [], []>} : vector<128x32xf32>, vector<128x32xf32>, vector<128x128xf32> -> vector<128x128xf32>
    %48 = arith.addf %47, %8 : vector<128x128xf32>
    %cst_37 = arith.constant dense<0xFF800000> : vector<128xf32>
    %49 = vector.multi_reduction <maximumf>, %48, %cst_37 [1] : vector<128x128xf32> to vector<128xf32>
    %50 = vector.shape_cast %49 : vector<128xf32> to vector<128x1xf32>
    %51 = vector.broadcast %50 : vector<128x1xf32> to vector<128x128xf32>
    %52 = arith.subf %48, %51 : vector<128x128xf32>
    %53 = math.exp %52 : vector<128x128xf32>
    %cst_38 = arith.constant dense<0.000000e+00> : vector<128xf32>
    %54 = vector.multi_reduction <add>, %53, %cst_38 [1] : vector<128x128xf32> to vector<128xf32>
    %55 = vector.shape_cast %54 : vector<128xf32> to vector<128x1xf32>
    %cst_39 = arith.constant 1.000000e+00 : f32
    %56 = vector.broadcast %cst_39 : f32 to vector<128x1xf32>
    %57 = arith.divf %56, %55 : vector<128x1xf32>
    %58 = vector.broadcast %57 : vector<128x1xf32> to vector<128x128xf32>
    %59 = arith.mulf %53, %58 : vector<128x128xf32>
    %cst_40 = arith.constant dense<0.000000e+00> : vector<128x32xf32>
    %60 = tpu.matmul %59, %46, %cst_40 {dimension_numbers = #tpu.dot_dimension_numbers<[1], [0], [0], [1], [0, 0, 1, 1], [], []>} : vector<128x128xf32>, vector<128x32xf32>, vector<128x32xf32> -> vector<128x32xf32>
    %61 = arith.mulf %60, %9 : vector<128x32xf32>
    %62 = vector.extract_strided_slice %61 {offsets = [0, 0], sizes = [32, 32], strides = [1, 1]} : vector<128x32xf32> to vector<32x32xf32>
    %63 = vector.extract_strided_slice %61 {offsets = [32, 0], sizes = [32, 32], strides = [1, 1]} : vector<128x32xf32> to vector<32x32xf32>
    %64 = arith.addf %62, %63 : vector<32x32xf32>
    %65 = vector.extract_strided_slice %61 {offsets = [64, 0], sizes = [32, 32], strides = [1, 1]} : vector<128x32xf32> to vector<32x32xf32>
    %66 = arith.addf %64, %65 : vector<32x32xf32>
    %67 = vector.extract_strided_slice %61 {offsets = [96, 0], sizes = [32, 32], strides = [1, 1]} : vector<128x32xf32> to vector<32x32xf32>
    %68 = arith.addf %66, %67 : vector<32x32xf32>
    %cst_41 = arith.constant dense<0.000000e+00> : vector<32x32xf32>
    %69 = tpu.matmul %68, %11, %cst_41 {dimension_numbers = #tpu.dot_dimension_numbers<[1], [0], [0], [1], [0, 0, 1, 1], [], []>} : vector<32x32xf32>, vector<32x32xf32>, vector<32x32xf32> -> vector<32x32xf32>
    %70 = arith.addf %69, %19 : vector<32x32xf32>
    %71 = arith.addf %7, %70 : vector<32x32xf32>
    %cst_42 = arith.constant dense<0.000000e+00> : vector<32xf32>
    %72 = vector.multi_reduction <add>, %71, %cst_42 [1] : vector<32x32xf32> to vector<32xf32>
    %73 = vector.shape_cast %72 : vector<32xf32> to vector<32x1xf32>
    %cst_43 = arith.constant 3.200000e+01 : f32
    %74 = vector.broadcast %cst_43 : f32 to vector<32x1xf32>
    %75 = arith.divf %73, %74 : vector<32x1xf32>
    %76 = vector.broadcast %75 : vector<32x1xf32> to vector<32x32xf32>
    %77 = arith.subf %71, %76 : vector<32x32xf32>
    %78 = arith.mulf %77, %77 : vector<32x32xf32>
    %cst_44 = arith.constant dense<0.000000e+00> : vector<32xf32>
    %79 = vector.multi_reduction <add>, %78, %cst_44 [1] : vector<32x32xf32> to vector<32xf32>
    %80 = vector.shape_cast %79 : vector<32xf32> to vector<32x1xf32>
    %cst_45 = arith.constant 3.200000e+01 : f32
    %81 = vector.broadcast %cst_45 : f32 to vector<32x1xf32>
    %82 = arith.divf %80, %81 : vector<32x1xf32>
    %83 = vector.broadcast %75 : vector<32x1xf32> to vector<32x32xf32>
    %84 = arith.subf %71, %83 : vector<32x32xf32>
    %cst_46 = arith.constant 9.99999974E-6 : f32
    %85 = vector.broadcast %cst_46 : f32 to vector<32x1xf32>
    %86 = arith.addf %82, %85 : vector<32x1xf32>
    %87 = math.rsqrt %86 : vector<32x1xf32>
    %88 = vector.broadcast %87 : vector<32x1xf32> to vector<32x32xf32>
    %89 = arith.mulf %84, %88 : vector<32x32xf32>
    %90 = arith.mulf %89, %28 : vector<32x32xf32>
    %91 = arith.addf %90, %31 : vector<32x32xf32>
    %cst_47 = arith.constant dense<0.000000e+00> : vector<32x64xf32>
    %92 = tpu.matmul %91, %12, %cst_47 {dimension_numbers = #tpu.dot_dimension_numbers<[1], [0], [0], [1], [0, 0, 1, 1], [], []>} : vector<32x32xf32>, vector<32x64xf32>, vector<32x64xf32> -> vector<32x64xf32>
    %93 = arith.addf %92, %22 : vector<32x64xf32>
    %cst_48 = arith.constant 5.000000e-01 : f32
    %94 = vector.broadcast %cst_48 : f32 to vector<32x64xf32>
    %95 = arith.mulf %94, %93 : vector<32x64xf32>
    %cst_49 = arith.constant 0.707106769 : f32
    %96 = vector.broadcast %cst_49 : f32 to vector<32x64xf32>
    %97 = arith.mulf %93, %96 : vector<32x64xf32>
    %98 = math.absf %97 : vector<32x64xf32>
    %cst_50 = arith.constant 0.327591091 : f32
    %99 = vector.broadcast %cst_50 : f32 to vector<32x64xf32>
    %100 = arith.mulf %99, %98 : vector<32x64xf32>
    %cst_51 = arith.constant 1.000000e+00 : f32
    %101 = vector.broadcast %cst_51 : f32 to vector<32x64xf32>
    %102 = arith.addf %101, %100 : vector<32x64xf32>
    %cst_52 = arith.constant 1.000000e+00 : f32
    %103 = vector.broadcast %cst_52 : f32 to vector<32x64xf32>
    %104 = arith.divf %103, %102 : vector<32x64xf32>
    %cst_53 = arith.constant 1.06140542 : f32
    %105 = vector.broadcast %cst_53 : f32 to vector<32x64xf32>
    %106 = arith.mulf %105, %104 : vector<32x64xf32>
    %cst_54 = arith.constant -1.45315206 : f32
    %107 = vector.broadcast %cst_54 : f32 to vector<32x64xf32>
    %108 = arith.addf %106, %107 : vector<32x64xf32>
    %109 = arith.mulf %108, %104 : vector<32x64xf32>
    %cst_55 = arith.constant 1.42141378 : f32
    %110 = vector.broadcast %cst_55 : f32 to vector<32x64xf32>
    %111 = arith.addf %109, %110 : vector<32x64xf32>
    %112 = arith.mulf %111, %104 : vector<32x64xf32>
    %cst_56 = arith.constant -0.284496725 : f32
    %113 = vector.broadcast %cst_56 : f32 to vector<32x64xf32>
    %114 = arith.addf %112, %113 : vector<32x64xf32>
    %115 = arith.mulf %114, %104 : vector<32x64xf32>
    %cst_57 = arith.constant 0.254829586 : f32
    %116 = vector.broadcast %cst_57 : f32 to vector<32x64xf32>
    %117 = arith.addf %115, %116 : vector<32x64xf32>
    %118 = arith.mulf %117, %104 : vector<32x64xf32>
    %cst_58 = arith.constant 0.000000e+00 : f32
    %119 = vector.broadcast %cst_58 : f32 to vector<32x64xf32>
    %120 = arith.subf %119, %98 : vector<32x64xf32>
    %121 = arith.mulf %120, %98 : vector<32x64xf32>
    %122 = math.exp %121 : vector<32x64xf32>
    %123 = arith.mulf %118, %122 : vector<32x64xf32>
    %cst_59 = arith.constant 1.000000e+00 : f32
    %124 = vector.broadcast %cst_59 : f32 to vector<32x64xf32>
    %125 = arith.subf %124, %123 : vector<32x64xf32>
    %cst_60 = arith.constant 0.000000e+00 : f32
    %126 = vector.broadcast %cst_60 : f32 to vector<32x64xf32>
    %127 = arith.cmpf olt, %97, %126 : vector<32x64xf32>
    %cst_61 = arith.constant 0.000000e+00 : f32
    %128 = vector.broadcast %cst_61 : f32 to vector<32x64xf32>
    %129 = arith.subf %128, %125 : vector<32x64xf32>
    %130 = arith.select %127, %129, %125 : vector<32x64xi1>, vector<32x64xf32>
    %cst_62 = arith.constant 1.000000e+00 : f32
    %131 = vector.broadcast %cst_62 : f32 to vector<32x64xf32>
    %132 = arith.addf %131, %130 : vector<32x64xf32>
    %133 = arith.mulf %95, %132 : vector<32x64xf32>
    %cst_63 = arith.constant dense<0.000000e+00> : vector<32x32xf32>
    %134 = tpu.matmul %133, %13, %cst_63 {dimension_numbers = #tpu.dot_dimension_numbers<[1], [0], [0], [1], [0, 0, 1, 1], [], []>} : vector<32x64xf32>, vector<64x32xf32>, vector<32x32xf32> -> vector<32x32xf32>
    %135 = arith.addf %134, %25 : vector<32x32xf32>
    %136 = arith.addf %91, %135 : vector<32x32xf32>
    %cst_64 = arith.constant dense<0.000000e+00> : vector<32xf32>
    %137 = vector.multi_reduction <add>, %136, %cst_64 [1] : vector<32x32xf32> to vector<32xf32>
    %138 = vector.shape_cast %137 : vector<32xf32> to vector<32x1xf32>
    %cst_65 = arith.constant 3.200000e+01 : f32
    %139 = vector.broadcast %cst_65 : f32 to vector<32x1xf32>
    %140 = arith.divf %138, %139 : vector<32x1xf32>
    %141 = vector.broadcast %140 : vector<32x1xf32> to vector<32x32xf32>
    %142 = arith.subf %136, %141 : vector<32x32xf32>
    %143 = arith.mulf %142, %142 : vector<32x32xf32>
    %cst_66 = arith.constant dense<0.000000e+00> : vector<32xf32>
    %144 = vector.multi_reduction <add>, %143, %cst_66 [1] : vector<32x32xf32> to vector<32xf32>
    %145 = vector.shape_cast %144 : vector<32xf32> to vector<32x1xf32>
    %cst_67 = arith.constant 3.200000e+01 : f32
    %146 = vector.broadcast %cst_67 : f32 to vector<32x1xf32>
    %147 = arith.divf %145, %146 : vector<32x1xf32>
    %148 = vector.broadcast %140 : vector<32x1xf32> to vector<32x32xf32>
    %149 = arith.subf %136, %148 : vector<32x32xf32>
    %cst_68 = arith.constant 9.99999974E-6 : f32
    %150 = vector.broadcast %cst_68 : f32 to vector<32x1xf32>
    %151 = arith.addf %147, %150 : vector<32x1xf32>
    %152 = math.rsqrt %151 : vector<32x1xf32>
    %153 = vector.broadcast %152 : vector<32x1xf32> to vector<32x32xf32>
    %154 = arith.mulf %149, %153 : vector<32x32xf32>
    %155 = arith.mulf %154, %34 : vector<32x32xf32>
    %156 = arith.addf %155, %37 : vector<32x32xf32>
    %cst_69 = arith.constant dense<0.000000e+00> : vector<32x96xf32>
    %157 = tpu.matmul %156, %10, %cst_69 {dimension_numbers = #tpu.dot_dimension_numbers<[1], [0], [0], [1], [0, 0, 1, 1], [], []>} : vector<32x32xf32>, vector<32x96xf32>, vector<32x96xf32> -> vector<32x96xf32>
    %158 = arith.addf %157, %16 : vector<32x96xf32>
    %159 = vector.extract_strided_slice %158 {offsets = [0, 0], sizes = [32, 32], strides = [1, 1]} : vector<32x96xf32> to vector<32x32xf32>
    %160 = vector.extract_strided_slice %158 {offsets = [0, 32], sizes = [32, 32], strides = [1, 1]} : vector<32x96xf32> to vector<32x32xf32>
    %161 = vector.extract_strided_slice %158 {offsets = [0, 64], sizes = [32, 32], strides = [1, 1]} : vector<32x96xf32> to vector<32x32xf32>
    %162 = tpu.concatenate %159, %159, %159, %159 in 0 : vector<32x32xf32>, vector<32x32xf32>, vector<32x32xf32>, vector<32x32xf32> -> vector<128x32xf32>
    %163 = arith.mulf %162, %9 : vector<128x32xf32>
    %164 = tpu.concatenate %160, %160, %160, %160 in 0 : vector<32x32xf32>, vector<32x32xf32>, vector<32x32xf32>, vector<32x32xf32> -> vector<128x32xf32>
    %165 = tpu.concatenate %161, %161, %161, %161 in 0 : vector<32x32xf32>, vector<32x32xf32>, vector<32x32xf32>, vector<32x32xf32> -> vector<128x32xf32>
    %cst_70 = arith.constant dense<0.000000e+00> : vector<128x128xf32>
    %166 = tpu.matmul %163, %164, %cst_70 {dimension_numbers = #tpu.dot_dimension_numbers<[1], [1], [0], [0], [0, 0, 1, 0], [], []>} : vector<128x32xf32>, vector<128x32xf32>, vector<128x128xf32> -> vector<128x128xf32>
    %167 = arith.addf %166, %8 : vector<128x128xf32>
    %cst_71 = arith.constant dense<0xFF800000> : vector<128xf32>
    %168 = vector.multi_reduction <maximumf>, %167, %cst_71 [1] : vector<128x128xf32> to vector<128xf32>
    %169 = vector.shape_cast %168 : vector<128xf32> to vector<128x1xf32>
    %170 = vector.broadcast %169 : vector<128x1xf32> to vector<128x128xf32>
    %171 = arith.subf %167, %170 : vector<128x128xf32>
    %172 = math.exp %171 : vector<128x128xf32>
    %cst_72 = arith.constant dense<0.000000e+00> : vector<128xf32>
    %173 = vector.multi_reduction <add>, %172, %cst_72 [1] : vector<128x128xf32> to vector<128xf32>
    %174 = vector.shape_cast %173 : vector<128xf32> to vector<128x1xf32>
    %cst_73 = arith.constant 1.000000e+00 : f32
    %175 = vector.broadcast %cst_73 : f32 to vector<128x1xf32>
    %176 = arith.divf %175, %174 : vector<128x1xf32>
    %177 = vector.broadcast %176 : vector<128x1xf32> to vector<128x128xf32>
    %178 = arith.mulf %172, %177 : vector<128x128xf32>
    %cst_74 = arith.constant dense<0.000000e+00> : vector<128x32xf32>
    %179 = tpu.matmul %178, %165, %cst_74 {dimension_numbers = #tpu.dot_dimension_numbers<[1], [0], [0], [1], [0, 0, 1, 1], [], []>} : vector<128x128xf32>, vector<128x32xf32>, vector<128x32xf32> -> vector<128x32xf32>
    %180 = arith.mulf %179, %9 : vector<128x32xf32>
    %181 = vector.extract_strided_slice %180 {offsets = [0, 0], sizes = [32, 32], strides = [1, 1]} : vector<128x32xf32> to vector<32x32xf32>
    %182 = vector.extract_strided_slice %180 {offsets = [32, 0], sizes = [32, 32], strides = [1, 1]} : vector<128x32xf32> to vector<32x32xf32>
    %183 = arith.addf %181, %182 : vector<32x32xf32>
    %184 = vector.extract_strided_slice %180 {offsets = [64, 0], sizes = [32, 32], strides = [1, 1]} : vector<128x32xf32> to vector<32x32xf32>
    %185 = arith.addf %183, %184 : vector<32x32xf32>
    %186 = vector.extract_strided_slice %180 {offsets = [96, 0], sizes = [32, 32], strides = [1, 1]} : vector<128x32xf32> to vector<32x32xf32>
    %187 = arith.addf %185, %186 : vector<32x32xf32>
    %cst_75 = arith.constant dense<0.000000e+00> : vector<32x32xf32>
    %188 = tpu.matmul %187, %11, %cst_75 {dimension_numbers = #tpu.dot_dimension_numbers<[1], [0], [0], [1], [0, 0, 1, 1], [], []>} : vector<32x32xf32>, vector<32x32xf32>, vector<32x32xf32> -> vector<32x32xf32>
    %189 = arith.addf %188, %19 : vector<32x32xf32>
    %190 = arith.addf %156, %189 : vector<32x32xf32>
    %cst_76 = arith.constant dense<0.000000e+00> : vector<32xf32>
    %191 = vector.multi_reduction <add>, %190, %cst_76 [1] : vector<32x32xf32> to vector<32xf32>
    %192 = vector.shape_cast %191 : vector<32xf32> to vector<32x1xf32>
    %cst_77 = arith.constant 3.200000e+01 : f32
    %193 = vector.broadcast %cst_77 : f32 to vector<32x1xf32>
    %194 = arith.divf %192, %193 : vector<32x1xf32>
    %195 = vector.broadcast %194 : vector<32x1xf32> to vector<32x32xf32>
    %196 = arith.subf %190, %195 : vector<32x32xf32>
    %197 = arith.mulf %196, %196 : vector<32x32xf32>
    %cst_78 = arith.constant dense<0.000000e+00> : vector<32xf32>
    %198 = vector.multi_reduction <add>, %197, %cst_78 [1] : vector<32x32xf32> to vector<32xf32>
    %199 = vector.shape_cast %198 : vector<32xf32> to vector<32x1xf32>
    %cst_79 = arith.constant 3.200000e+01 : f32
    %200 = vector.broadcast %cst_79 : f32 to vector<32x1xf32>
    %201 = arith.divf %199, %200 : vector<32x1xf32>
    %202 = vector.broadcast %194 : vector<32x1xf32> to vector<32x32xf32>
    %203 = arith.subf %190, %202 : vector<32x32xf32>
    %cst_80 = arith.constant 9.99999974E-6 : f32
    %204 = vector.broadcast %cst_80 : f32 to vector<32x1xf32>
    %205 = arith.addf %201, %204 : vector<32x1xf32>
    %206 = math.rsqrt %205 : vector<32x1xf32>
    %207 = vector.broadcast %206 : vector<32x1xf32> to vector<32x32xf32>
    %208 = arith.mulf %203, %207 : vector<32x32xf32>
    %209 = arith.mulf %208, %28 : vector<32x32xf32>
    %210 = arith.addf %209, %31 : vector<32x32xf32>
    %cst_81 = arith.constant dense<0.000000e+00> : vector<32x64xf32>
    %211 = tpu.matmul %210, %12, %cst_81 {dimension_numbers = #tpu.dot_dimension_numbers<[1], [0], [0], [1], [0, 0, 1, 1], [], []>} : vector<32x32xf32>, vector<32x64xf32>, vector<32x64xf32> -> vector<32x64xf32>
    %212 = arith.addf %211, %22 : vector<32x64xf32>
    %cst_82 = arith.constant 5.000000e-01 : f32
    %213 = vector.broadcast %cst_82 : f32 to vector<32x64xf32>
    %214 = arith.mulf %213, %212 : vector<32x64xf32>
    %cst_83 = arith.constant 0.707106769 : f32
    %215 = vector.broadcast %cst_83 : f32 to vector<32x64xf32>
    %216 = arith.mulf %212, %215 : vector<32x64xf32>
    %217 = math.absf %216 : vector<32x64xf32>
    %cst_84 = arith.constant 0.327591091 : f32
    %218 = vector.broadcast %cst_84 : f32 to vector<32x64xf32>
    %219 = arith.mulf %218, %217 : vector<32x64xf32>
    %cst_85 = arith.constant 1.000000e+00 : f32
    %220 = vector.broadcast %cst_85 : f32 to vector<32x64xf32>
    %221 = arith.addf %220, %219 : vector<32x64xf32>
    %cst_86 = arith.constant 1.000000e+00 : f32
    %222 = vector.broadcast %cst_86 : f32 to vector<32x64xf32>
    %223 = arith.divf %222, %221 : vector<32x64xf32>
    %cst_87 = arith.constant 1.06140542 : f32
    %224 = vector.broadcast %cst_87 : f32 to vector<32x64xf32>
    %225 = arith.mulf %224, %223 : vector<32x64xf32>
    %cst_88 = arith.constant -1.45315206 : f32
    %226 = vector.broadcast %cst_88 : f32 to vector<32x64xf32>
    %227 = arith.addf %225, %226 : vector<32x64xf32>
    %228 = arith.mulf %227, %223 : vector<32x64xf32>
    %cst_89 = arith.constant 1.42141378 : f32
    %229 = vector.broadcast %cst_89 : f32 to vector<32x64xf32>
    %230 = arith.addf %228, %229 : vector<32x64xf32>
    %231 = arith.mulf %230, %223 : vector<32x64xf32>
    %cst_90 = arith.constant -0.284496725 : f32
    %232 = vector.broadcast %cst_90 : f32 to vector<32x64xf32>
    %233 = arith.addf %231, %232 : vector<32x64xf32>
    %234 = arith.mulf %233, %223 : vector<32x64xf32>
    %cst_91 = arith.constant 0.254829586 : f32
    %235 = vector.broadcast %cst_91 : f32 to vector<32x64xf32>
    %236 = arith.addf %234, %235 : vector<32x64xf32>
    %237 = arith.mulf %236, %223 : vector<32x64xf32>
    %cst_92 = arith.constant 0.000000e+00 : f32
    %238 = vector.broadcast %cst_92 : f32 to vector<32x64xf32>
    %239 = arith.subf %238, %217 : vector<32x64xf32>
    %240 = arith.mulf %239, %217 : vector<32x64xf32>
    %241 = math.exp %240 : vector<32x64xf32>
    %242 = arith.mulf %237, %241 : vector<32x64xf32>
    %cst_93 = arith.constant 1.000000e+00 : f32
    %243 = vector.broadcast %cst_93 : f32 to vector<32x64xf32>
    %244 = arith.subf %243, %242 : vector<32x64xf32>
    %cst_94 = arith.constant 0.000000e+00 : f32
    %245 = vector.broadcast %cst_94 : f32 to vector<32x64xf32>
    %246 = arith.cmpf olt, %216, %245 : vector<32x64xf32>
    %cst_95 = arith.constant 0.000000e+00 : f32
    %247 = vector.broadcast %cst_95 : f32 to vector<32x64xf32>
    %248 = arith.subf %247, %244 : vector<32x64xf32>
    %249 = arith.select %246, %248, %244 : vector<32x64xi1>, vector<32x64xf32>
    %cst_96 = arith.constant 1.000000e+00 : f32
    %250 = vector.broadcast %cst_96 : f32 to vector<32x64xf32>
    %251 = arith.addf %250, %249 : vector<32x64xf32>
    %252 = arith.mulf %214, %251 : vector<32x64xf32>
    %cst_97 = arith.constant dense<0.000000e+00> : vector<32x32xf32>
    %253 = tpu.matmul %252, %13, %cst_97 {dimension_numbers = #tpu.dot_dimension_numbers<[1], [0], [0], [1], [0, 0, 1, 1], [], []>} : vector<32x64xf32>, vector<64x32xf32>, vector<32x32xf32> -> vector<32x32xf32>
    %254 = arith.addf %253, %25 : vector<32x32xf32>
    %255 = arith.addf %210, %254 : vector<32x32xf32>
    %cst_98 = arith.constant dense<0.000000e+00> : vector<32xf32>
    %256 = vector.multi_reduction <add>, %255, %cst_98 [1] : vector<32x32xf32> to vector<32xf32>
    %257 = vector.shape_cast %256 : vector<32xf32> to vector<32x1xf32>
    %cst_99 = arith.constant 3.200000e+01 : f32
    %258 = vector.broadcast %cst_99 : f32 to vector<32x1xf32>
    %259 = arith.divf %257, %258 : vector<32x1xf32>
    %260 = vector.broadcast %259 : vector<32x1xf32> to vector<32x32xf32>
    %261 = arith.subf %255, %260 : vector<32x32xf32>
    %262 = arith.mulf %261, %261 : vector<32x32xf32>
    %cst_100 = arith.constant dense<0.000000e+00> : vector<32xf32>
    %263 = vector.multi_reduction <add>, %262, %cst_100 [1] : vector<32x32xf32> to vector<32xf32>
    %264 = vector.shape_cast %263 : vector<32xf32> to vector<32x1xf32>
    %cst_101 = arith.constant 3.200000e+01 : f32
    %265 = vector.broadcast %cst_101 : f32 to vector<32x1xf32>
    %266 = arith.divf %264, %265 : vector<32x1xf32>
    %267 = vector.broadcast %259 : vector<32x1xf32> to vector<32x32xf32>
    %268 = arith.subf %255, %267 : vector<32x32xf32>
    %cst_102 = arith.constant 9.99999974E-6 : f32
    %269 = vector.broadcast %cst_102 : f32 to vector<32x1xf32>
    %270 = arith.addf %266, %269 : vector<32x1xf32>
    %271 = math.rsqrt %270 : vector<32x1xf32>
    %272 = vector.broadcast %271 : vector<32x1xf32> to vector<32x32xf32>
    %273 = arith.mulf %268, %272 : vector<32x32xf32>
    %274 = arith.mulf %273, %34 : vector<32x32xf32>
    %275 = arith.addf %274, %37 : vector<32x32xf32>
    %c0_103 = arith.constant 0 : index
    %c0_104 = arith.constant 0 : index
    %276 = vector.load %arg18[%c0_103, %c0_104] : memref<32x32xf32, #tpu.memory_space<vmem>>, vector<32x32xf32>
    %cst_105 = arith.constant dense<0.000000e+00> : vector<32x32xf32>
    %277 = tpu.matmul %276, %275, %cst_105 {dimension_numbers = #tpu.dot_dimension_numbers<[1], [0], [0], [1], [0, 0, 1, 1], [], []>} : vector<32x32xf32>, vector<32x32xf32>, vector<32x32xf32> -> vector<32x32xf32>
    %278 = vector.extract_strided_slice %277 {offsets = [0, 0], sizes = [8, 32], strides = [1, 1]} : vector<32x32xf32> to vector<8x32xf32>
    %279 = vector.extract_strided_slice %277 {offsets = [8, 0], sizes = [8, 32], strides = [1, 1]} : vector<32x32xf32> to vector<8x32xf32>
    %280 = vector.extract_strided_slice %277 {offsets = [16, 0], sizes = [8, 32], strides = [1, 1]} : vector<32x32xf32> to vector<8x32xf32>
    %281 = vector.extract_strided_slice %277 {offsets = [24, 0], sizes = [8, 32], strides = [1, 1]} : vector<32x32xf32> to vector<8x32xf32>
    %282 = tpu.concatenate %278, %279, %280, %281 in 1 : vector<8x32xf32>, vector<8x32xf32>, vector<8x32xf32>, vector<8x32xf32> -> vector<8x128xf32>
    %c0_106 = arith.constant 0 : index
    %c0_107 = arith.constant 0 : index
    %283 = vector.load %arg19[%c0_106, %c0_107] : memref<128x512xf32, #tpu.memory_space<vmem>>, vector<128x512xf32>
    %cst_108 = arith.constant dense<0.000000e+00> : vector<8x512xf32>
    %284 = tpu.matmul %282, %283, %cst_108 {dimension_numbers = #tpu.dot_dimension_numbers<[1], [0], [0], [1], [0, 0, 1, 1], [], []>} : vector<8x128xf32>, vector<128x512xf32>, vector<8x512xf32> -> vector<8x512xf32>
    %285 = vector.extract_strided_slice %284 {offsets = [0, 0], sizes = [8, 128], strides = [1, 1]} : vector<8x512xf32> to vector<8x128xf32>
    %286 = vector.extract_strided_slice %284 {offsets = [0, 128], sizes = [8, 128], strides = [1, 1]} : vector<8x512xf32> to vector<8x128xf32>
    %287 = vector.extract_strided_slice %284 {offsets = [0, 256], sizes = [8, 128], strides = [1, 1]} : vector<8x512xf32> to vector<8x128xf32>
    %288 = vector.extract_strided_slice %284 {offsets = [0, 384], sizes = [8, 128], strides = [1, 1]} : vector<8x512xf32> to vector<8x128xf32>
    %289 = tpu.concatenate %285, %286, %287, %288 in 0 : vector<8x128xf32>, vector<8x128xf32>, vector<8x128xf32>, vector<8x128xf32> -> vector<32x128xf32>
    %c0_109 = arith.constant 0 : index
    %c0_110 = arith.constant 0 : index
    %290 = vector.load %arg20[%c0_109, %c0_110] : memref<16x32xf32, #tpu.memory_space<vmem>>, vector<16x32xf32>
    %cst_111 = arith.constant dense<0.000000e+00> : vector<16x128xf32>
    %291 = tpu.matmul %290, %289, %cst_111 {dimension_numbers = #tpu.dot_dimension_numbers<[1], [0], [0], [1], [0, 0, 1, 1], [], []>} : vector<16x32xf32>, vector<32x128xf32>, vector<16x128xf32> -> vector<16x128xf32>
    %c0_112 = arith.constant 0 : index
    %c0_113 = arith.constant 0 : index
    %292 = vector.load %arg21[%c0_112, %c0_113] : memref<1x128xf32, #tpu.memory_space<vmem>>, vector<1x128xf32>
    %293 = vector.broadcast %292 : vector<1x128xf32> to vector<16x128xf32>
    %294 = arith.addf %291, %293 : vector<16x128xf32>
    %cst_114 = arith.constant 0.000000e+00 : f32
    %295 = vector.broadcast %cst_114 : f32 to vector<16x128xf32>
    %296 = arith.maximumf %294, %295 : vector<16x128xf32>
    %c0_115 = arith.constant 0 : index
    %c0_116 = arith.constant 0 : index
    %297 = vector.load %arg22[%c0_115, %c0_116] : memref<128x512xf32, #tpu.memory_space<vmem>>, vector<128x512xf32>
    %cst_117 = arith.constant dense<0.000000e+00> : vector<16x512xf32>
    %298 = tpu.matmul %296, %297, %cst_117 {dimension_numbers = #tpu.dot_dimension_numbers<[1], [0], [0], [1], [0, 0, 1, 1], [], []>} : vector<16x128xf32>, vector<128x512xf32>, vector<16x512xf32> -> vector<16x512xf32>
    %299 = vector.extract_strided_slice %298 {offsets = [0, 0], sizes = [16, 128], strides = [1, 1]} : vector<16x512xf32> to vector<16x128xf32>
    %300 = vector.extract_strided_slice %298 {offsets = [0, 128], sizes = [16, 128], strides = [1, 1]} : vector<16x512xf32> to vector<16x128xf32>
    %301 = vector.extract_strided_slice %298 {offsets = [0, 256], sizes = [16, 128], strides = [1, 1]} : vector<16x512xf32> to vector<16x128xf32>
    %302 = vector.extract_strided_slice %298 {offsets = [0, 384], sizes = [16, 128], strides = [1, 1]} : vector<16x512xf32> to vector<16x128xf32>
    %303 = tpu.concatenate %299, %300, %301, %302 in 0 : vector<16x128xf32>, vector<16x128xf32>, vector<16x128xf32>, vector<16x128xf32> -> vector<64x128xf32>
    %c0_118 = arith.constant 0 : index
    %c0_119 = arith.constant 0 : index
    %304 = vector.load %arg23[%c0_118, %c0_119] : memref<32x64xf32, #tpu.memory_space<vmem>>, vector<32x64xf32>
    %cst_120 = arith.constant dense<0.000000e+00> : vector<32x128xf32>
    %305 = tpu.matmul %304, %303, %cst_120 {dimension_numbers = #tpu.dot_dimension_numbers<[1], [0], [0], [1], [0, 0, 1, 1], [], []>} : vector<32x64xf32>, vector<64x128xf32>, vector<32x128xf32> -> vector<32x128xf32>
    %c0_121 = arith.constant 0 : index
    %c0_122 = arith.constant 0 : index
    %306 = vector.load %arg24[%c0_121, %c0_122] : memref<1x128xf32, #tpu.memory_space<vmem>>, vector<1x128xf32>
    %307 = vector.broadcast %306 : vector<1x128xf32> to vector<32x128xf32>
    %308 = arith.addf %305, %307 : vector<32x128xf32>
    %cst_123 = arith.constant 0.000000e+00 : f32
    %309 = vector.broadcast %cst_123 : f32 to vector<32x128xf32>
    %310 = arith.maximumf %308, %309 : vector<32x128xf32>
    %c0_124 = arith.constant 0 : index
    %c0_125 = arith.constant 0 : index
    %311 = vector.load %arg25[%c0_124, %c0_125] : memref<128x256xf32, #tpu.memory_space<vmem>>, vector<128x256xf32>
    %cst_126 = arith.constant dense<0.000000e+00> : vector<32x256xf32>
    %312 = tpu.matmul %310, %311, %cst_126 {dimension_numbers = #tpu.dot_dimension_numbers<[1], [0], [0], [1], [0, 0, 1, 1], [], []>} : vector<32x128xf32>, vector<128x256xf32>, vector<32x256xf32> -> vector<32x256xf32>
    %313 = vector.extract_strided_slice %312 {offsets = [0, 0], sizes = [32, 64], strides = [1, 1]} : vector<32x256xf32> to vector<32x64xf32>
    %314 = vector.extract_strided_slice %312 {offsets = [0, 64], sizes = [32, 64], strides = [1, 1]} : vector<32x256xf32> to vector<32x64xf32>
    %315 = vector.extract_strided_slice %312 {offsets = [0, 128], sizes = [32, 64], strides = [1, 1]} : vector<32x256xf32> to vector<32x64xf32>
    %316 = vector.extract_strided_slice %312 {offsets = [0, 192], sizes = [32, 64], strides = [1, 1]} : vector<32x256xf32> to vector<32x64xf32>
    %317 = tpu.concatenate %313, %314, %315, %316 in 0 : vector<32x64xf32>, vector<32x64xf32>, vector<32x64xf32>, vector<32x64xf32> -> vector<128x64xf32>
    %c0_127 = arith.constant 0 : index
    %c0_128 = arith.constant 0 : index
    %318 = vector.load %arg26[%c0_127, %c0_128] : memref<64x128xf32, #tpu.memory_space<vmem>>, vector<64x128xf32>
    %cst_129 = arith.constant dense<0.000000e+00> : vector<64x64xf32>
    %319 = tpu.matmul %318, %317, %cst_129 {dimension_numbers = #tpu.dot_dimension_numbers<[1], [0], [0], [1], [0, 0, 1, 1], [], []>} : vector<64x128xf32>, vector<128x64xf32>, vector<64x64xf32> -> vector<64x64xf32>
    %c0_130 = arith.constant 0 : index
    %c0_131 = arith.constant 0 : index
    %320 = vector.load %arg27[%c0_130, %c0_131] : memref<1x64xf32, #tpu.memory_space<vmem>>, vector<1x64xf32>
    %321 = vector.broadcast %320 : vector<1x64xf32> to vector<64x64xf32>
    %322 = arith.addf %319, %321 : vector<64x64xf32>
    %c0_132 = arith.constant 0 : index
    %c0_133 = arith.constant 0 : index
    %323 = vector.load %arg28[%c0_132, %c0_133] : memref<64x32xf32, #tpu.memory_space<vmem>>, vector<64x32xf32>
    %cst_134 = arith.constant dense<0.000000e+00> : vector<64x32xf32>
    %324 = tpu.matmul %322, %323, %cst_134 {dimension_numbers = #tpu.dot_dimension_numbers<[1], [0], [0], [1], [0, 0, 1, 1], [], []>} : vector<64x64xf32>, vector<64x32xf32>, vector<64x32xf32> -> vector<64x32xf32>
    %c0_135 = arith.constant 0 : index
    %c0_136 = arith.constant 0 : index
    %325 = vector.load %arg29[%c0_135, %c0_136] : memref<32x64xf32, #tpu.memory_space<vmem>>, vector<32x64xf32>
    %cst_137 = arith.constant dense<0.000000e+00> : vector<32x32xf32>
    %326 = tpu.matmul %325, %324, %cst_137 {dimension_numbers = #tpu.dot_dimension_numbers<[1], [0], [0], [1], [0, 0, 1, 1], [], []>} : vector<32x64xf32>, vector<64x32xf32>, vector<32x32xf32> -> vector<32x32xf32>
    %c0_138 = arith.constant 0 : index
    %c0_139 = arith.constant 0 : index
    %327 = vector.load %arg30[%c0_138, %c0_139] : memref<32x32xf32, #tpu.memory_space<vmem>>, vector<32x32xf32>
    tpu.vector_store %arg30[%c0_138, %c0_139], %326 {strides = array<i32>} : memref<32x32xf32, #tpu.memory_space<vmem>>, vector<32x32xf32>,
    return
  }
}

</mosaic_0001>

<bundles_post_ra>
// kernel: _lambda_.1
= control target key start
LH: loop header
LB: loop body
LE: loop exit
PB: predicated region body
PF: predicated region fallthrough
CT: control target
= control target key end

     0   :  { %s5697_s6 = smov 1   ;;  %s5698_s10 = smov 2   ;;  %s7072_s0 = inlined_call_operand.smem [shape: u32[31], index: -1, kind: input, shape index: {}] }
   0x1   :  { %s5753_s5 = sld [smem:[%s7072_s0]]   ;;  %s5699_s14 = smov 3  }
   0x2   :  { %s5758_s9 = sld [smem:[%s7072_s0 + %s5697_s6]]   ;;  %s5700_s18 = smov 4  }
   0x3   :  { %s5763_s13 = sld [smem:[%s7072_s0 + %s5698_s10]]   ;;  %s5701_s22 = smov 5  }
   0x4   :  { %s5768_s17 = sld [smem:[%s7072_s0 + %s5699_s14]]   ;;  %s5702_s26 = smov 6  }
   0x5   :  { %s5773_s21 = sld [smem:[%s7072_s0 + %s5700_s18]]   ;;  %s5703_s30 = smov 7  }
   0x6   :  { %s5778_s25 = sld [smem:[%s7072_s0 + %s5701_s22]]   ;;  %s5704_s4 = smov 8  }
   0x7   :  { %s5783_s29 = sld [smem:[%s7072_s0 + %s5702_s26]]   ;;  %s5705_s10 = smov 9  }
   0x8   :  { %s5788_s3 = sld [smem:[%s7072_s0 + %s5703_s30]]   ;;  %s5706_s15 = smov 10  }
   0x9   :  { %s5793_s8 = sld [smem:[%s7072_s0 + %s5704_s4]]   ;;  %s5707_s20 = smov 11  }
   0xa   :  { %s5798_s14 = sld [smem:[%s7072_s0 + %s5705_s10]]   ;;  %s5708_s26 = smov 12  }
   0xb   :  { %7086 = sst [smem:[#allocation28_spill]] %s5773_s21  ;;  %s5709_s1 = smov 13  }
   0xc   :  { %s5803_s19 = sld [smem:[%s7072_s0 + %s5706_s15]]   ;;  %s5710_s7 = smov 14  }
   0xd   :  { %s5808_s24 = sld [smem:[%s7072_s0 + %s5707_s20]]   ;;  %s5711_s15 = smov 15  }
   0xe   :  { %s5813_s30 = sld [smem:[%s7072_s0 + %s5708_s26]]   ;;  %s5712_s22 = smov 16  }
   0xf   :  { %s5818_s6 = sld [smem:[%s7072_s0 + %s5709_s1]]   ;;  %s5713_s28 = smov 17  }
  0x10   :  { %7087 = sst [smem:[#allocation29_spill]] %s5798_s14 }
  0x11   :  { %s5823_s12 = sld [smem:[%s7072_s0 + %s5710_s7]]   ;;  %s5714_s7 = smov 18  }
  0x12   :  { %7088 = sst [smem:[#allocation30_spill]] %s5803_s19 }
  0x13   :  { %7089 = sst [smem:[#allocation31_spill]] %s5808_s24 }
  0x14   :  { %s5828_s20 = sld [smem:[%s7072_s0 + %s5711_s15]]   ;;  %s5715_s15 = smov 19  }
  0x15   :  { %7090 = sst [smem:[#allocation32_spill]] %s5818_s6 }
  0x16   :  { %s5833_s27 = sld [smem:[%s7072_s0 + %s5712_s22]]   ;;  %s5716_s22 = smov 20  }
  0x17   :  { %7091 = sst [smem:[#allocation33_spill]] %s5823_s12 }
  0x18   :  { %s5838_s4 = sld [smem:[%s7072_s0 + %s5713_s28]]   ;;  %s5717_s28 = smov 21  }
  0x19   :  { %s5843_s6 = sld [smem:[%s7072_s0 + %s5714_s7]]   ;;  %s5718_s7 = smov 22  }
  0x1a   :  { %7092 = sst [smem:[#allocation34_spill]] %s5828_s20 }
  0x1b   :  { %s5848_s20 = sld [smem:[%s7072_s0 + %s5715_s15]]   ;;  %s5719_s15 = smov 23  }
  0x1c   :  { %7093 = sst [smem:[#allocation35_spill]] %s5833_s27 }
  0x1d   :  { %s5853_s27 = sld [smem:[%s7072_s0 + %s5716_s22]]   ;;  %s5720_s22 = smov 24  }
  0x1e   :  { %7094 = sst [smem:[#allocation36_spill]] %s5838_s4 }
  0x1f   :  { %s5858_s4 = sld [smem:[%s7072_s0 + %s5717_s28]]   ;;  %s5721_s28 = smov 25  }
  0x20   :  { %s5863_s12 = sld [smem:[%s7072_s0 + %s5718_s7]]   ;;  %s5722_s7 = smov 26  }
  0x21   :  { %7095 = sst [smem:[#allocation37_spill]] %s5848_s20 }
  0x22   :  { %s5868_s20 = sld [smem:[%s7072_s0 + %s5719_s15]]   ;;  %s5723_s15 = smov 27  }
  0x23   :  { %s5873_s24 = sld [smem:[%s7072_s0 + %s5720_s22]]   ;;  %s5724_s22 = smov 28  }
  0x24   :  { %s5878_s19 = sld [smem:[%s7072_s0 + %s5721_s28]]   ;;  %s5725_s28 = smov 29  }
  0x25   :  { %s5888_s14 = sld [smem:[%s7072_s0 + %s5723_s15]]  }
  0x26   :  { %7096 = sst [smem:[#allocation38_spill]] %s5863_s12 }
  0x27   :  { %s5883_s12 = sld [smem:[%s7072_s0 + %s5722_s7]]   ;;  %s5726_s7 = smov 30  }
  0x28   :  { %s5893_s21 = sld [smem:[%s7072_s0 + %s5724_s22]]  }
  0x2a   :  { %7097 = sst [smem:[#allocation39_spill]] %s5878_s19 }
  0x2b   :  { %s5898_s19 = sld [smem:[%s7072_s0 + %s5725_s28]]  }
  0x2d   :  { %7098 = sst [smem:[#allocation40_spill]] %s5883_s12 }
  0x2e   :  { %s5903_s12 = sld [smem:[%s7072_s0 + %s5726_s7]]  }
  0x2f   :  { %66 = vsyncpa [#allocation3], 0 }
  0x30   :  { %67 = vsyncpa [#allocation5], 0 }
  0x31   :  { %68 = vsyncpa [#allocation8], 0 }
  0x32   :  { %69 = vsyncpa [#allocation11], 0 }
  0x33   :  { %70 = vsyncpa [#allocation14], 0 }
  0x34   :  { %71 = vsyncpa [#allocation17], 0 }
  0x35   :  { %72 = vsyncpa [#allocation20], 0  ;;  %s5727_s15 = smov [#allocation4]   ;;  %s5728_s18 = smov [#allocation7]  }
  0x36   :  { %s100_s16 = sshll.u32 %s5727_s15, 4  ;;  %s132_s22 = sshll.u32 %s5728_s18, 4  ;;  %s101_s16 = int_to_ptr.vmem [resolvable:$true] %s100_s16  ;;  %s133_s22 = int_to_ptr.vmem [resolvable:$true] %s132_s22 }
  0x37   :  { %s5451_s23 = scalar_lea.vmem %s101_s16, 512  ;;  %p5456_p1 = scmp.lt.s32.totalorder %s101_s16, %s101_s16 }
  0x38   :  { %p5452_p0 = scmp.ne.s32.totalorder %s101_s16, %s5451_s23  ;;  %p5457_p2 = scmp.lt.s32.totalorder %s5451_s23, %s5451_s23 }
  0x3a   :  { %p5458_p3 = por %p5457_p2, %p5456_p1 }
  0x3c   :  { %p5459_p4 = pnand %p5458_p3, %p5452_p0 }
  0x3e   :  { %5462 = shalt.err (!%p5459_p4)
}
  0x3f   :  { %s5729_s0 = smov 128   ;;  %s5730_s26 = smov 8  }
  0x40   :  { %106 = dma.hbm_to_vmem [thread:$0]  %s5783_s29, 512, %s101_s16, [#allocation5], %s5729_s0, %s5729_s0, %s5730_s26  }
  0x41   :  { %s5471_s28 = scalar_lea.vmem %s133_s22, 512  ;;  %p5476_p6 = scmp.lt.s32.totalorder %s133_s22, %s133_s22 }
  0x42   :  { %p5472_p5 = scmp.ne.s32.totalorder %s133_s22, %s5471_s28  ;;  %p5477_p7 = scmp.lt.s32.totalorder %s5471_s28, %s5471_s28 }
  0x44   :  { %p5478_p8 = por %p5477_p7, %p5476_p6 }
  0x46   :  { %p5479_p9 = pnand %p5478_p8, %p5472_p5 }
  0x48   :  { %5482 = shalt.err (!%p5479_p9)
}
  0x49   :  { %138 = dma.hbm_to_vmem [thread:$0]  %s5813_s30, 512, %s133_s22, [#allocation8], %s5729_s0, %s5729_s0, %s5730_s26  }
  0x4a   :  { %s5731_s1 = smov [#allocation10]   ;;  %s5732_s7 = smov [#allocation13]  }
  0x4b   :  { %s168_s2 = sshll.u32 %s5731_s1, 4  ;;  %s192_s10 = sshll.u32 %s5732_s7, 4  ;;  %s169_s2 = int_to_ptr.vmem [resolvable:$true] %s168_s2  ;;  %s193_s10 = int_to_ptr.vmem [resolvable:$true] %s192_s10 }
  0x4c   :  { %s5491_s11 = scalar_lea.vmem %s169_s2, 256  ;;  %p5496_p11 = scmp.lt.s32.totalorder %s169_s2, %s169_s2 }
  0x4d   :  { %p5492_p10 = scmp.ne.s32.totalorder %s169_s2, %s5491_s11  ;;  %p5497_p12 = scmp.lt.s32.totalorder %s5491_s11, %s5491_s11 }
  0x4f   :  { %p5498_p13 = por %p5497_p12, %p5496_p11 }
  0x51   :  { %p5499_p0 = pnand %p5498_p13, %p5492_p10 }
  0x53   :  { %5502 = shalt.err (!%p5499_p0)
}
  0x54   :  { %174 = dma.hbm_to_vmem [thread:$0]  %s5853_s27, 256, %s169_s2, [#allocation11], %s5729_s0, %s5729_s0, %s5730_s26  }
  0x55   :  { %s5511_s29 = scalar_lea.vmem %s193_s10, 512  ;;  %p5516_p2 = scmp.lt.s32.totalorder %s193_s10, %s193_s10 }
  0x56   :  { %p5512_p1 = scmp.ne.s32.totalorder %s193_s10, %s5511_s29  ;;  %p5517_p3 = scmp.lt.s32.totalorder %s5511_s29, %s5511_s29 }
  0x58   :  { %p5518_p4 = por %p5517_p3, %p5516_p2 }
  0x5a   :  { %p5519_p5 = pnand %p5518_p4, %p5512_p1 }
  0x5c   :  { %5522 = shalt.err (!%p5519_p5)
}
  0x5d   :  { %198 = dma.hbm_to_vmem [thread:$0]  %s5868_s20, 512, %s193_s10, [#allocation14], %s5729_s0, %s5729_s0, %s5730_s26  }
  0x5e   :  { %s5733_s30 = smov [#allocation16]   ;;  %s5734_s16 = smov [#allocation2]  }
  0x5f   :  { %s219_s15 = sshll.u32 %s5733_s30, 4  ;;  %s80_s18 = sshll.u32 %s5734_s16, 4  ;;  %s220_s15 = int_to_ptr.vmem [resolvable:$true] %s219_s15  ;;  %s81_s18 = int_to_ptr.vmem [resolvable:$true] %s80_s18 }
  0x60   :  { %s5531_s22 = scalar_lea.vmem %s220_s15, 16  ;;  %s5535_s27 = scalar_lea.vmem %s220_s15, 32 }
  0x61   :  { %p5532_p6 = scmp.ne.s32.totalorder %s220_s15, %s5531_s22  ;;  %p5536_p7 = scmp.lt.s32.totalorder %s220_s15, %s220_s15 }
  0x62   :  { %p5537_p8 = scmp.lt.s32.totalorder %s5535_s27, %s5531_s22 }
  0x64   :  { %p5538_p9 = por %p5537_p8, %p5536_p7 }
  0x66   :  { %p5539_p10 = pnand %p5538_p9, %p5532_p6 }
  0x68   :  { %5542 = shalt.err (!%p5539_p10)
}
  0x69   :  { %222 = dma.hbm_to_vmem [thread:$0]  %s5888_s14, 16, %s220_s15, [#allocation17]  }
  0x6a   :  { %s5551_s23 = scalar_lea.vmem %s81_s18, 768  ;;  %p5556_p12 = scmp.lt.s32.totalorder %s81_s18, %s81_s18 }
  0x6b   :  { %p5552_p11 = scmp.ne.s32.totalorder %s81_s18, %s5551_s23  ;;  %p5557_p13 = scmp.lt.s32.totalorder %s5551_s23, %s5551_s23 }
  0x6d   :  { %p5558_p0 = por %p5557_p13, %p5556_p12 }
  0x6f   :  { %p5559_p1 = pnand %p5558_p0, %p5552_p11 }
  0x71   :  { %5562 = shalt.err (!%p5559_p1)
}
  0x72   :  { %86 = dma.hbm_to_vmem [thread:$0]  %s5758_s9, 768, %s81_s18, [#allocation3], %s5729_s0, %s5729_s0, %s5730_s26  }
  0x73   :  { %s5735_s20 = smov [#allocation6]   ;;  %s5736_s1 = smov [#allocation9]  }
  0x74   :  { %s114_s28 = sshll.u32 %s5735_s20, 4  ;;  %s154_s2 = sshll.u32 %s5736_s1, 4  ;;  %s115_s28 = int_to_ptr.vmem [resolvable:$true] %s114_s28  ;;  %s155_s2 = int_to_ptr.vmem [resolvable:$true] %s154_s2 }
  0x75   :  { %s5571_s7 = scalar_lea.vmem %s115_s28, 512  ;;  %p5576_p3 = scmp.lt.s32.totalorder %s115_s28, %s115_s28 }
  0x76   :  { %p5572_p2 = scmp.ne.s32.totalorder %s115_s28, %s5571_s7  ;;  %p5577_p4 = scmp.lt.s32.totalorder %s5571_s7, %s5571_s7 }
  0x78   :  { %p5578_p5 = por %p5577_p4, %p5576_p3 }
  0x7a   :  { %p5579_p6 = pnand %p5578_p5, %p5572_p2 }
  0x7c   :  { %5582 = shalt.err (!%p5579_p6)
}
  0x7d   :  { %120 = dma.hbm_to_vmem [thread:$0]  %s5793_s8, 512, %s115_s28, [#allocation5], %s5729_s0, %s5729_s0, %s5730_s26  }
  0x7e   :  { %s5591_s14 = scalar_lea.vmem %s155_s2, 512  ;;  %p5596_p8 = scmp.lt.s32.totalorder %s155_s2, %s155_s2 }
  0x7f   :  { %p5592_p7 = scmp.ne.s32.totalorder %s155_s2, %s5591_s14  ;;  %p5597_p9 = scmp.lt.s32.totalorder %s5591_s14, %s5591_s14 }
  0x81   :  { %p5598_p10 = por %p5597_p9, %p5596_p8 }
  0x83   :  { %p5599_p11 = pnand %p5598_p10, %p5592_p7 }
  0x85   :  { %5602 = shalt.err (!%p5599_p11)
}
  0x86   :  { %160 = dma.hbm_to_vmem [thread:$0]  %s5843_s6, 512, %s155_s2, [#allocation8], %s5729_s0, %s5729_s0, %s5730_s26  }
  0x87   :  { %s5737_s9 = smov [#allocation12]   ;;  %s5738_s11 = smov [#allocation15]  }
  0x88   :  { %s181_s10 = sshll.u32 %s5737_s9, 4  ;;  %s205_s29 = sshll.u32 %s5738_s11, 4  ;;  %s182_s10 = int_to_ptr.vmem [resolvable:$true] %s181_s10  ;;  %s206_s29 = int_to_ptr.vmem [resolvable:$true] %s205_s29 }
  0x89   :  { %s5611_s30 = scalar_lea.vmem %s182_s10, 16  ;;  %s5615_s8 = scalar_lea.vmem %s182_s10, 32 }
  0x8a   :  { %p5612_p12 = scmp.ne.s32.totalorder %s182_s10, %s5611_s30  ;;  %p5616_p13 = scmp.lt.s32.totalorder %s182_s10, %s182_s10 }
  0x8b   :  { %p5617_p0 = scmp.lt.s32.totalorder %s5615_s8, %s5611_s30 }
  0x8d   :  { %p5618_p1 = por %p5617_p0, %p5616_p13 }
  0x8f   :  { %p5619_p2 = pnand %p5618_p1, %p5612_p12 }
  0x91   :  { %5622 = shalt.err (!%p5619_p2)
}
  0x92   :  { %184 = dma.hbm_to_vmem [thread:$0]  %s5858_s4, 16, %s182_s10, [#allocation11]  }
  0x93   :  { %s5631_s15 = scalar_lea.vmem %s206_s29, 16  ;;  %s5635_s16 = scalar_lea.vmem %s206_s29, 32 }
  0x94   :  { %p5632_p3 = scmp.ne.s32.totalorder %s206_s29, %s5631_s15  ;;  %p5636_p4 = scmp.lt.s32.totalorder %s206_s29, %s206_s29 }
  0x95   :  { %p5637_p5 = scmp.lt.s32.totalorder %s5635_s16, %s5631_s15 }
  0x97   :  { %p5638_p6 = por %p5637_p5, %p5636_p4 }
  0x99   :  { %p5639_p7 = pnand %p5638_p6, %p5632_p3 }
  0x9b   :  { %5642 = shalt.err (!%p5639_p7)
}
  0x9c   :  { %208 = dma.hbm_to_vmem [thread:$0]  %s5873_s24, 16, %s206_s29, [#allocation14]  }
  0x9d   :  { %s5739_s6 = smov [#allocation18]   ;;  %s5740_s22 = smov [#allocation19]  }
  0x9e   :  { %s228_s18 = sshll.u32 %s5739_s6, 4  ;;  %s240_s27 = sshll.u32 %s5740_s22, 4  ;;  %s229_s18 = int_to_ptr.vmem [resolvable:$true] %s228_s18  ;;  %s241_s27 = int_to_ptr.vmem [resolvable:$true] %s240_s27 }
  0x9f   :  { %s5651_s23 = scalar_lea.vmem %s229_s18, 1024  ;;  %p5656_p9 = scmp.lt.s32.totalorder %s229_s18, %s229_s18 }
  0xa0   :  { %p5652_p8 = scmp.ne.s32.totalorder %s229_s18, %s5651_s23  ;;  %p5657_p10 = scmp.lt.s32.totalorder %s5651_s23, %s5651_s23 }
  0xa2   :  { %p5658_p11 = por %p5657_p10, %p5656_p9 }
  0xa4   :  { %p5659_p12 = pnand %p5658_p11, %p5652_p8 }
  0xa6   :  { %5662 = shalt.err (!%p5659_p12)
}
  0xa7   :  { %234 = dma.hbm_to_vmem [thread:$0]  %s5893_s21, 1024, %s229_s18, [#allocation17], %s5729_s0, %s5729_s0, %s5730_s26  }
  0xa8   :  { %s5671_s4 = scalar_lea.vmem %s241_s27, 512  ;;  %p5676_p0 = scmp.lt.s32.totalorder %s241_s27, %s241_s27 }
  0xa9   :  { %p5672_p13 = scmp.ne.s32.totalorder %s241_s27, %s5671_s4  ;;  %p5677_p1 = scmp.lt.s32.totalorder %s5671_s4, %s5671_s4 }
  0xab   :  { %p5678_p2 = por %p5677_p1, %p5676_p0 }
  0xad   :  { %p5679_p3 = pnand %p5678_p2, %p5672_p13 }
  0xaf   :  { %5682 = shalt.err (!%p5679_p3)
}
  0xb0   :  { %246 = dma.hbm_to_vmem [thread:$0]  %s5898_s19, 512, %s241_s27, [#allocation20], %s5729_s0, %s5729_s0, %s5730_s26  }
  0xb1   :  { %5683 = dma.done.wait [#allocation3], 768  }
  0xb2   :  { %5684 = vsyncadd [#allocation3], 4294966528 }
  0xb3   :  { %5685 = dma.done.wait [#allocation5], 1024  }
  0xb4   :  { %5686 = vsyncadd [#allocation5], 4294966272 }
  0xb5   :  { %5687 = dma.done.wait [#allocation8], 1024  }
  0xb6   :  { %5688 = vsyncadd [#allocation8], 4294966272 }
  0xb7   :  { %5689 = dma.done.wait [#allocation11], 272  }
  0xb8   :  { %5690 = vsyncadd [#allocation11], 4294967024 }
  0xb9   :  { %5691 = dma.done.wait [#allocation14], 528  }
  0xba   :  { %5692 = vsyncadd [#allocation14], 4294966768 }
  0xbb   :  { %5693 = dma.done.wait [#allocation17], 1040  }
  0xbc   :  { %5694 = vsyncadd [#allocation17], 4294966256 }
  0xbd   :  { %5695 = dma.done.wait [#allocation20], 512  }
  0xbe   :  { %5696 = vsyncadd [#allocation20], 4294966784  ;;  %v292_v0 = vld [vmem:[#allocation2 + $0x28] sm:$0xff]  ;;  %v291_v1 = vld [vmem:[#allocation2 + $0x20] sm:$0xff]  ;;  %vm300_vm0 = vcmask 392192   ;;  %vm514_vm1 = vcmask 261120  }
  0xbf   :  { %4636 = vmatprep.subr.mxu0 %v292_v0  ;;  %v290_v2 = vld [vmem:[#allocation2 + $0x18] sm:$0xff]  ;;  %v283_v3 = vld [vmem:[%s5753_s5] sm:$0xff]  ;;  %v289_v4 = vld [vmem:[#allocation2 + $0x10] sm:$0xff]  ;;  %s7100_s21 = sld [smem:[#allocation29_spill]]  ;;  %vm1553_vm5 = vcmask 523264   ;;  %vm3028_vm11 = vcmask 785408  }
  0xc0   :  { %4637 = vmatpush3.msra.mxu0 %v292_v0  ;;  %4648 = vmatprep.mubr.msk.f32.mxu0 %vm300_vm0, %v283_v3  ;;  %v288_v5 = vld [vmem:[#allocation2 + $0x8] sm:$0xff]  ;;  %v287_v6 = vld [vmem:[#allocation2] sm:$0xff]  ;;  %v285_v8 = vld [vmem:[%s5753_s5 + $0x10] sm:$0xff]  ;;  %s7101_s19 = sld [smem:[#allocation30_spill]] }
  0xc1   :  { %4638 = vmatprep.subr.mxu0 %v291_v1  ;;  %v284_v7 = vld [vmem:[%s5753_s5 + $0x8] sm:$0xff]  ;;  %v286_v9 = vld [vmem:[%s5753_s5 + $0x18] sm:$0xff]  ;;  %v5956_v11 = vld [vmem:[#allocation4 + $0x10] sm:$0xff]  ;;  %s5741_s5 = smov 96   ;;  %s7102_s24 = sld [smem:[#allocation31_spill]] }
  0xc2   :  { %4639 = vmatpush3.msra.mxu0 %v291_v1  ;;  %v5952_v10 = vld [vmem:[#allocation4 + $0x18] sm:$0xff]  ;;  %v5960_v12 = vld [vmem:[#allocation4 + $0x8] sm:$0xff]  ;;  %v5964_v13 = vld [vmem:[#allocation4] sm:$0xff]  ;;  %s7103_s0 = sld [smem:[#allocation33_spill]] }
  0xc3   :  { %4640 = vmatprep.subr.mxu0 %v290_v2  ;;  %4654 = vmatprep.subr.mxu1 %v5952_v10  ;;  %v4214_v14 = vld [vmem:[%s5763_s13] ss:$0 sm:$0xff]  ;;  %v399_v19 = vld [vmem:[%s5768_s17 + $0x8] sm:$0xff]  ;;  %v400_v26 = vld [vmem:[%s5768_s17 + $0x10] sm:$0xff]  ;;  %s7099_s13 = sld [smem:[#allocation28_spill]] }
  0xc4   :  { %4641 = vmatpush3.msra.mxu0 %v290_v2  ;;  %4655 = vmatpush3.msra.mxu1 %v5952_v10  ;;  %v398_v18 = vld [vmem:[%s5768_s17] sm:$0xff]  ;;  %v401_v27 = vld [vmem:[%s5768_s17 + $0x18] sm:$0xff]  ;;  %v6044_v46 = vld [vmem:[%s5778_s25 + $0x8] sm:$0xff]  ;;  %s5742_s17 = smov 64   ;;  %s7104_s26 = sld [smem:[#allocation32_spill]] }
  0xc5   :  { %4642 = vmatprep.subr.mxu0 %v289_v4  ;;  %4656 = vmatprep.subr.mxu1 %v5956_v11  ;;  %v4219_v31 = vld [vmem:[%s5788_s3] ss:$0 sm:$0xff]  ;;  %v6047_v47 = vld [vmem:[%s5778_s25 + $0x10] sm:$0xff]  ;;  %v6056_v50 = vld [vmem:[%s5778_s25 + $0x18] sm:$0xff]  ;;  %s7105_s20 = sld [smem:[#allocation34_spill]] }
  0xc6   :  { %4643 = vmatpush3.msra.mxu0 %v289_v4  ;;  %4657 = vmatpush3.msra.mxu1 %v5956_v11  ;;  %v5993_v35 = vld [vmem:[%s5778_s25] sm:$0xff]  ;;  %v6070_v54 = vld [vmem:[%s5778_s25 + $0x28] sm:$0xff]  ;;  %v6075_v55 = vld [vmem:[%s5778_s25 + $0x30] sm:$0xff]  ;;  %s7106_s28 = sld [smem:[#allocation35_spill]] }
  0xc7   :  { %4644 = vmatprep.subr.mxu0 %v288_v5  ;;  %4658 = vmatprep.subr.mxu1 %v5960_v12  ;;  %v6060_v51 = vld [vmem:[%s5778_s25 + $0x20] sm:$0xff]  ;;  %v6086_v58 = vld [vmem:[%s5778_s25 + $0x38] sm:$0xff]  ;;  %v6099_v62 = vld [vmem:[%s5778_s25 + $0x48] sm:$0xff]  ;;  %s7107_s1 = sld [smem:[#allocation36_spill]] }
  0xc8   :  { %4645 = vmatpush3.msra.mxu0 %v288_v5  ;;  %4659 = vmatpush3.msra.mxu1 %v5960_v12  ;;  %v6091_v59 = vld [vmem:[%s5778_s25 + $0x40] sm:$0xff]  ;;  %v6103_v63 = vld [vmem:[%s5778_s25 + $0x50] sm:$0xff]  ;;  %v6111_v2 = vld [vmem:[%s5778_s25 + $0x58] sm:$0xff]  ;;  %s7109_s2 = sld [smem:[#allocation38_spill]] }
  0xc9   :  { %4646 = vmatprep.subr.mxu0 %v287_v6  ;;  %4660 = vmatprep.subr.mxu1 %v5964_v13  ;;  %v6115_v3 = vld [vmem:[%s5778_s25 + $0x60] sm:$0xff]  ;;  %s7110_s7 = sld [smem:[#allocation39_spill]] }
  0xca   :  { %4647 = vmatpush3.msra.mxu0 %v287_v6  ;;  %4661 = vmatpush3.msra.mxu1 %v5964_v13  ;;  %v6123_v6 = vld [vmem:[%s5778_s25 + $0x68] sm:$0xff]  ;;  %s7111_s14 = sld [smem:[#allocation40_spill]] }
  0xcb   :  { %4649 = vmatmul.mubr.msk.f32.vlgmr.msra.gmra.mxu0 %vm300_vm0, %v284_v7  ;;  %v6127_v7 = vld [vmem:[%s5778_s25 + $0x70] sm:$0xff] }
  0xcc   :  { %4651 = vmatprep.mubr.msk.f32.mxu0 %vm300_vm0, %v285_v8 }
  0xcf   :  { %4652 = vmatmul.mubr.msk.f32.gmra.mxu0 %vm300_vm0, %v286_v9 }
 0x18b   :  { %v4650_v15 = vpop.f32.mrf.mxu0 }
 0x18c   :  { %v385_v16 = vadd.f32 %v4650_v15, %v4214_v14 }
 0x18d   :  { %v379_v17 = vpop.f32.mrf.mxu0 }
 0x18e   :  { %v380_v20 = vadd.f32 %v4214_v14, %v379_v17  ;;  %v5973_v23 = vadd.f32 %v399_v19, %v385_v16  ;;  %v408_v19 = vld [vmem:[%s7099_s13 + $0x10] sm:$0xff] }
 0x18f   :  { %v4653_v21 = vpop.f32.mrf.mxu0 }
 0x190   :  { %v5971_v22 = vadd.f32 %v398_v18, %v380_v20  ;;  %v395_v24 = vadd.f32 %v4653_v21, %v4214_v14 }
 0x191   :  { %v389_v25 = vpop.f32.mrf.mxu0 }
 0x192   :  { %v390_v28 = vadd.f32 %v4214_v14, %v389_v25  ;;  %4662 = vmatprep.mubr.msk.f32.mxu1 %vm514_vm1, %v5971_v22  ;;  %v5983_v30 = vadd.f32 %v401_v27, %v395_v24  ;;  %v406_v14 = vld [vmem:[%s7099_s13] sm:$0xff]  ;;  %v409_v24 = vld [vmem:[%s7099_s13 + $0x18] sm:$0xff] }
 0x193   :  { %4663 = vmatmul.mubr.msk.f32.vlgmr.msra.gmra.mxu1 %vm514_vm1, %v5973_v23 }
 0x194   :  { %v5981_v29 = vadd.f32 %v400_v26, %v390_v28  ;;  %v410_v26 = vld [vmem:[%s7099_s13 + $0x20] sm:$0xff] }
 0x196   :  { %4665 = vmatprep.mubr.msk.f32.mxu1 %vm514_vm1, %v5981_v29 }
 0x197   :  { %4666 = vmatmul.mubr.msk.f32.gmra.mxu1 %vm514_vm1, %v5983_v30 }
 0x253   :  { %v4664_v32 = vpop.f32.mrf.mxu1 }
 0x254   :  { %v5990_v33 = vadd.f32 %v4664_v32, %v4219_v31  ;;  %v411_v32 = vld [vmem:[%s7099_s13 + $0x28] sm:$0xff] }
 0x255   :  { %v593_v34 = vpop.f32.mrf.mxu1 }
 0x256   :  { %v5995_v36 = vadd.f32 %v4219_v31, %v593_v34  ;;  %634 = vrot.lane.b32.xlu1 %v5990_v33, %s5741_s5  ;;  %v613_v48 = vmul.f32 %v5990_v33, %v6044_v46  ;;  %v617_v56 = vmul.f32 %v5990_v33, %v6070_v54  ;;  %v621_v0 = vmul.f32 %v5990_v33, %v6099_v62 }
 0x257   :  { %v4667_v37 = vpop.f32.mrf.mxu1  ;;  %v625_v8 = vmul.f32 %v5990_v33, %v6123_v6 }
 0x258   :  { %v5999_v38 = vadd.f32 %v4667_v37, %v4219_v31  ;;  %v612_v39 = vmul.f32 %v5995_v36, %v5993_v35  ;;  %v616_v53 = vmul.f32 %v5995_v36, %v6060_v51  ;;  %v620_v61 = vmul.f32 %v5995_v36, %v6091_v59  ;;  %v412_v37 = vld [vmem:[%s7099_s13 + $0x30] sm:$0xff] }
 0x259   :  { %v603_v40 = vpop.f32.mrf.mxu1  ;;  %v624_v5 = vmul.f32 %v5995_v36, %v6115_v3 }
 0x25a   :  { %638 = vrot.lane.b32.xlu0 %v5999_v38, %s5741_s5  ;;  %632 = vrot.lane.b32.xlu1 %v5995_v36, %s5741_s5  ;;  %v6008_v41 = vadd.f32 %v4219_v31, %v603_v40  ;;  %v615_v52 = vmul.f32 %v5999_v38, %v6056_v50  ;;  %v619_v60 = vmul.f32 %v5999_v38, %v6086_v58 }
 0x25b   :  { %4700 = vmatprep.mubr.msk.f32.mxu1 %vm514_vm1, %v612_v39  ;;  %v623_v4 = vmul.f32 %v5999_v38, %v6111_v2 }
 0x25c   :  { %v614_v49 = vmul.f32 %v6008_v41, %v6047_v47  ;;  %v618_v57 = vmul.f32 %v6008_v41, %v6075_v55  ;;  %v622_v1 = vmul.f32 %v6008_v41, %v6103_v63  ;;  %v626_v9 = vmul.f32 %v6008_v41, %v6127_v7 }
 0x25e   :  { %636 = vrot.lane.b32.xlu0 %v6008_v41, %s5741_s5 }
 0x2c8   :  { %v635_v43 = vpop.permute.xlu1 %634 }
 0x2cc   :  { %v639_v42 = vpop.permute.xlu0 %638  ;;  %v633_v45 = vpop.permute.xlu1 %632 }
 0x2cd   :  { %4668 = vmatprep.subr.msk.mxu1 %vm514_vm1, %v639_v42 }
 0x2ce   :  { %4669 = vmatpush3.xpose.msk.msra.mxu1 %vm514_vm1, %v639_v42 }
 0x2d0   :  { %v637_v44 = vpop.permute.xlu0 %636 }
 0x2d1   :  { %4670 = vmatprep.subr.msk.mxu1 %vm514_vm1, %v637_v44 }
 0x2d2   :  { %4671 = vmatpush3.xpose.msk.msra.mxu1 %vm514_vm1, %v637_v44 }
 0x2d3   :  { %4672 = vmatprep.subr.msk.mxu1 %vm514_vm1, %v635_v43 }
 0x2d6   :  { %4673 = vmatpush3.xpose.msk.msra.mxu1 %vm514_vm1, %v635_v43 }
 0x2d7   :  { %4674 = vmatprep.subr.msk.mxu1 %vm514_vm1, %v633_v45 }
 0x2da   :  { %4675 = vmatpush3.xpose.msk.msra.mxu1 %vm514_vm1, %v633_v45 }
 0x2db   :  { %4676 = vmatprep.subr.msk.mxu1 %vm514_vm1, %v639_v42 }
 0x2de   :  { %4677 = vmatpush3.xpose.msk.msra.mxu1 %vm514_vm1, %v639_v42 }
 0x2df   :  { %4678 = vmatprep.subr.msk.mxu1 %vm514_vm1, %v637_v44 }
 0x2e2   :  { %4679 = vmatpush3.xpose.msk.msra.mxu1 %vm514_vm1, %v637_v44 }
 0x2e3   :  { %4680 = vmatprep.subr.msk.mxu1 %vm514_vm1, %v635_v43 }
 0x2e6   :  { %4681 = vmatpush3.xpose.msk.msra.mxu1 %vm514_vm1, %v635_v43 }
 0x2e7   :  { %4682 = vmatprep.subr.msk.mxu1 %vm514_vm1, %v633_v45 }
 0x2ea   :  { %4683 = vmatpush3.xpose.msk.msra.mxu1 %vm514_vm1, %v633_v45 }
 0x2eb   :  { %4684 = vmatprep.subr.msk.mxu1 %vm514_vm1, %v639_v42 }
 0x2ee   :  { %4685 = vmatpush3.xpose.msk.msra.mxu1 %vm514_vm1, %v639_v42 }
 0x2ef   :  { %4686 = vmatprep.subr.msk.mxu1 %vm514_vm1, %v637_v44 }
 0x2f2   :  { %4687 = vmatpush3.xpose.msk.msra.mxu1 %vm514_vm1, %v637_v44 }
 0x2f3   :  { %4688 = vmatprep.subr.msk.mxu1 %vm514_vm1, %v635_v43 }
 0x2f6   :  { %4689 = vmatpush3.xpose.msk.msra.mxu1 %vm514_vm1, %v635_v43 }
 0x2f7   :  { %4690 = vmatprep.subr.msk.mxu1 %vm514_vm1, %v633_v45 }
 0x2fa   :  { %4691 = vmatpush3.xpose.msk.msra.mxu1 %vm514_vm1, %v633_v45 }
 0x2fb   :  { %4692 = vmatprep.subr.msk.mxu1 %vm514_vm1, %v639_v42 }
 0x2fe   :  { %4693 = vmatpush3.xpose.msk.msra.mxu1 %vm514_vm1, %v639_v42 }
 0x2ff   :  { %4694 = vmatprep.subr.msk.mxu1 %vm514_vm1, %v637_v44 }
 0x302   :  { %4695 = vmatpush3.xpose.msk.msra.mxu1 %vm514_vm1, %v637_v44 }
 0x303   :  { %4696 = vmatprep.subr.msk.mxu1 %vm514_vm1, %v635_v43 }
 0x306   :  { %4697 = vmatpush3.xpose.msk.msra.mxu1 %vm514_vm1, %v635_v43  ;;  %v413_v43 = vld [vmem:[%s7099_s13 + $0x38] sm:$0xff] }
 0x307   :  { %4698 = vmatprep.subr.msk.mxu1 %vm514_vm1, %v633_v45 }
 0x30a   :  { %4699 = vmatpush3.xpose.msk.msra.mxu1 %vm514_vm1, %v633_v45  ;;  %v414_v45 = vld [vmem:[%s7099_s13 + $0x40] sm:$0xff] }
 0x30b   :  { %4830 = vmatprep.subr.mxu1 %v5952_v10 }
 0x30d   :  { %4701 = vmatmul.mubr.msk.f32.vlgmr.msra.gmra.mxu1 %vm514_vm1, %v613_v48 }
 0x30e   :  { %4703 = vmatprep.mubr.msk.f32.mxu1 %vm514_vm1, %v614_v49  ;;  %4831 = vmatpush3.msra.mxu1 %v5952_v10  ;;  %v6135_v10 = vld [vmem:[%s5778_s25 + $0x78] sm:$0xff] }
 0x30f   :  { %4832 = vmatprep.subr.mxu1 %v5956_v11 }
 0x310   :  { %4833 = vmatpush3.msra.mxu1 %v5956_v11  ;;  %v627_v11 = vmul.f32 %v5999_v38, %v6135_v10 }
 0x311   :  { %4704 = vmatmul.mubr.msk.f32.gmra.mxu1 %vm514_vm1, %v615_v52  ;;  %4834 = vmatprep.subr.mxu1 %v5960_v12 }
 0x312   :  { %4706 = vmatprep.mubr.msk.f32.mxu1 %vm514_vm1, %v616_v53  ;;  %4835 = vmatpush3.msra.mxu1 %v5960_v12  ;;  %v407_v12 = vld [vmem:[%s7099_s13 + $0x8] sm:$0xff] }
 0x313   :  { %4836 = vmatprep.subr.mxu1 %v5964_v13  ;;  %v415_v53 = vld [vmem:[%s7099_s13 + $0x48] sm:$0xff] }
 0x314   :  { %4837 = vmatpush3.msra.mxu1 %v5964_v13 }
 0x315   :  { %4707 = vmatmul.mubr.msk.f32.gmra.mxu1 %vm514_vm1, %v617_v56 }
 0x316   :  { %4709 = vmatprep.mubr.msk.f32.mxu1 %vm514_vm1, %v618_v57  ;;  %v416_v57 = vld [vmem:[%s7099_s13 + $0x50] sm:$0xff] }
 0x319   :  { %4710 = vmatmul.mubr.msk.f32.gmra.mxu1 %vm514_vm1, %v619_v60 }
 0x31a   :  { %4712 = vmatprep.mubr.msk.f32.mxu1 %vm514_vm1, %v620_v61 }
 0x31d   :  { %4713 = vmatmul.mubr.msk.f32.gmra.mxu1 %vm514_vm1, %v621_v0 }
 0x31e   :  { %4715 = vmatprep.mubr.msk.f32.mxu1 %vm514_vm1, %v622_v1  ;;  %v417_v1 = vld [vmem:[%s7099_s13 + $0x58] sm:$0xff] }
 0x321   :  { %4716 = vmatmul.mubr.msk.f32.gmra.mxu1 %vm514_vm1, %v623_v4 }
 0x322   :  { %4718 = vmatprep.mubr.msk.f32.mxu1 %vm514_vm1, %v624_v5  ;;  %v418_v5 = vld [vmem:[%s7099_s13 + $0x60] sm:$0xff] }
 0x325   :  { %4719 = vmatmul.mubr.msk.f32.gmra.mxu1 %vm514_vm1, %v625_v8 }
 0x326   :  { %4721 = vmatprep.mubr.msk.f32.mxu1 %vm514_vm1, %v626_v9 }
 0x329   :  { %4722 = vmatmul.mubr.msk.f32.gmra.mxu1 %vm514_vm1, %v627_v11 }
 0x3cd   :  { %v4702_v13 = vpop.f32.mrf.mxu1 }
 0x3ce   :  { %v6144_v15 = vadd.f32 %v4702_v13, %v407_v12  ;;  %v419_v12 = vld [vmem:[%s7099_s13 + $0x68] sm:$0xff] }
 0x3cf   :  { %v762_v16 = vpop.f32.mrf.mxu1 }
 0x3d0   :  { %v6146_v17 = vadd.f32 %v762_v16, %v406_v14  ;;  %843 = vmax.xlane.f32.xlu1 %v6144_v15  ;;  %v420_v14 = vld [vmem:[%s7099_s13 + $0x70] sm:$0xff] }
 0x3d1   :  { %v4705_v18 = vpop.f32.mrf.mxu1 }
 0x3d2   :  { %841 = vmax.xlane.f32.xlu0 %v6146_v17  ;;  %v6156_v28 = vadd.f32 %v4705_v18, %v409_v24 }
 0x3d3   :  { %v772_v20 = vpop.f32.mrf.mxu1 }
 0x3d4   :  { %v6151_v21 = vadd.f32 %v772_v20, %v408_v19  ;;  %v421_v20 = vld [vmem:[%s7099_s13 + $0x78] sm:$0xff] }
 0x3d5   :  { %v4708_v25 = vpop.f32.mrf.mxu1 }
 0x3d6   :  { %845 = vmax.xlane.f32.xlu0 %v6151_v21  ;;  %v6164_v40 = vadd.f32 %v4708_v25, %v411_v32 }
 0x3d7   :  { %v782_v27 = vpop.f32.mrf.mxu1 }
 0x3d8   :  { %v6158_v31 = vadd.f32 %v782_v27, %v410_v26 }
 0x3d9   :  { %v4711_v34 = vpop.f32.mrf.mxu1 }
 0x3da   :  { %849 = vmax.xlane.f32.xlu1 %v6158_v31  ;;  %847 = vmax.xlane.f32.xlu0 %v6156_v28  ;;  %v6172_v49 = vadd.f32 %v4711_v34, %v413_v43 }
 0x3db   :  { %v792_v39 = vpop.f32.mrf.mxu1 }
 0x3dc   :  { %v6166_v42 = vadd.f32 %v792_v39, %v412_v37 }
 0x3dd   :  { %v4714_v44 = vpop.f32.mrf.mxu1 }
 0x3de   :  { %853 = vmax.xlane.f32.xlu1 %v6166_v42  ;;  %851 = vmax.xlane.f32.xlu0 %v6164_v40  ;;  %v6180_v61 = vadd.f32 %v4714_v44, %v415_v53 }
 0x3df   :  { %v802_v48 = vpop.f32.mrf.mxu1 }
 0x3e0   :  { %v6174_v52 = vadd.f32 %v802_v48, %v414_v45 }
 0x3e1   :  { %v4717_v56 = vpop.f32.mrf.mxu1 }
 0x3e2   :  { %857 = vmax.xlane.f32.xlu1 %v6174_v52  ;;  %855 = vmax.xlane.f32.xlu0 %v6172_v49  ;;  %v6188_v9 = vadd.f32 %v4717_v56, %v417_v1 }
 0x3e3   :  { %v812_v60 = vpop.f32.mrf.mxu1 }
 0x3e4   :  { %v6182_v0 = vadd.f32 %v812_v60, %v416_v57 }
 0x3e5   :  { %v4720_v4 = vpop.f32.mrf.mxu1 }
 0x3e6   :  { %861 = vmax.xlane.f32.xlu1 %v6182_v0  ;;  %859 = vmax.xlane.f32.xlu0 %v6180_v61  ;;  %v6196_v18 = vadd.f32 %v4720_v4, %v419_v12 }
 0x3e7   :  { %v822_v8 = vpop.f32.mrf.mxu1 }
 0x3e8   :  { %v6190_v11 = vadd.f32 %v822_v8, %v418_v5 }
 0x3e9   :  { %v4723_v13 = vpop.f32.mrf.mxu1 }
 0x3ea   :  { %865 = vmax.xlane.f32.xlu1 %v6190_v11  ;;  %863 = vmax.xlane.f32.xlu0 %v6188_v9  ;;  %v6203_v24 = vadd.f32 %v4723_v13, %v421_v20 }
 0x3eb   :  { %v832_v16 = vpop.f32.mrf.mxu1 }
 0x3ec   :  { %v6198_v19 = vadd.f32 %v832_v16, %v420_v14 }
 0x3ee   :  { %869 = vmax.xlane.f32.xlu1 %v6198_v19  ;;  %867 = vmax.xlane.f32.xlu0 %v6196_v18 }
 0x3f2   :  { %871 = vmax.xlane.f32.xlu0 %v6203_v24 }
 0x3ff   :  { %1007 = vrot.lane.b32.xlu1 %v5999_v38, %s5742_s17 }
 0x403   :  { %1003 = vrot.lane.b32.xlu1 %v5990_v33, %s5742_s17 }
 0x408   :  { %1005 = vrot.lane.b32.xlu0 %v6008_v41, %s5742_s17 }
 0x40c   :  { %1001 = vrot.lane.b32.xlu0 %v5995_v36, %s5742_s17 }
 0x459   :  { %v844_v25 = vpop.xlane.xlu1 %843 }
 0x45a   :  { %v874_v26 = vsub.f32 %v6144_v15, %v844_v25 }
 0x45b   :  { %v842_v27 = vpop.xlane.xlu0 %841 }
 0x45c   :  { %v891_v32 = vmul.f32 1.442695, %v874_v26  ;;  %v873_v34 = vsub.f32 %v6146_v17, %v842_v27 }
 0x45e   :  { %5195 = vpow2.f32 %v891_v32  ;;  %v889_v37 = vmul.f32 1.442695, %v873_v34 }
 0x45f   :  { %v846_v39 = vpop.xlane.xlu0 %845 }
 0x460   :  { %5197 = vpow2.f32 %v889_v37  ;;  %v875_v38 = vsub.f32 %v6151_v21, %v846_v39 }
 0x462   :  { %v893_v33 = vmul.f32 1.442695, %v875_v38 }
 0x463   :  { %v850_v43 = vpop.xlane.xlu1 %849  ;;  %v848_v44 = vpop.xlane.xlu0 %847 }
 0x464   :  { %5199 = vpow2.f32 %v893_v33  ;;  %v877_v41 = vsub.f32 %v6158_v31, %v850_v43  ;;  %v876_v36 = vsub.f32 %v6156_v28, %v848_v44 }
 0x466   :  { %v897_v45 = vmul.f32 1.442695, %v877_v41  ;;  %v895_v15 = vmul.f32 1.442695, %v876_v36 }
 0x467   :  { %v854_v48 = vpop.xlane.xlu1 %853  ;;  %v852_v53 = vpop.xlane.xlu0 %851 }
 0x468   :  { %5201 = vpow2.f32 %v897_v45  ;;  %v879_v17 = vsub.f32 %v6166_v42, %v854_v48  ;;  %v878_v56 = vsub.f32 %v6164_v40, %v852_v53 }
 0x469   :  { %5203 = vpow2.f32 %v895_v15 }
 0x46a   :  { %v901_v57 = vmul.f32 1.442695, %v879_v17  ;;  %v899_v21 = vmul.f32 1.442695, %v878_v56 }
 0x46b   :  { %v6221_v60 = vpop.eup %5195  ;;  %v858_v1 = vpop.xlane.xlu1 %857 }
 0x46c   :  { %v856_v4 = vpop.xlane.xlu0 %855  ;;  %5205 = vpow2.f32 %v901_v57  ;;  %v881_v31 = vsub.f32 %v6174_v52, %v858_v1  ;;  %923 = vadd.xlane.f32.xlu0 %v6221_v60 }
 0x46d   :  { %v880_v28 = vsub.f32 %v6172_v49, %v856_v4  ;;  %v6226_v5 = vpop.eup %5197  ;;  %5207 = vpow2.f32 %v899_v21 }
 0x46e   :  { %v905_v42 = vmul.f32 1.442695, %v881_v31  ;;  %921 = vadd.xlane.f32.xlu1 %v6226_v5 }
 0x46f   :  { %v903_v8 = vmul.f32 1.442695, %v880_v28  ;;  %v862_v40 = vpop.xlane.xlu1 %861 }
 0x470   :  { %v860_v12 = vpop.xlane.xlu0 %859  ;;  %5209 = vpow2.f32 %v905_v42  ;;  %v883_v13 = vsub.f32 %v6182_v0, %v862_v40 }
 0x471   :  { %v882_v14 = vsub.f32 %v6180_v61, %v860_v12  ;;  %v6231_v16 = vpop.eup %5199  ;;  %5211 = vpow2.f32 %v903_v8 }
 0x472   :  { %v909_v49 = vmul.f32 1.442695, %v883_v13  ;;  %925 = vadd.xlane.f32.xlu1 %v6231_v16 }
 0x473   :  { %v907_v52 = vmul.f32 1.442695, %v882_v14  ;;  %v866_v20 = vpop.xlane.xlu1 %865 }
 0x474   :  { %v864_v25 = vpop.xlane.xlu0 %863  ;;  %5213 = vpow2.f32 %v909_v49  ;;  %v885_v26 = vsub.f32 %v6190_v11, %v866_v20 }
 0x475   :  { %v884_v27 = vsub.f32 %v6188_v9, %v864_v25  ;;  %v6236_v32 = vpop.eup %5201  ;;  %5215 = vpow2.f32 %v907_v52 }
 0x476   :  { %v6238_v0 = vpop.eup %5203  ;;  %v913_v61 = vmul.f32 1.442695, %v885_v26  ;;  %929 = vadd.xlane.f32.xlu1 %v6236_v32 }
 0x477   :  { %v911_v34 = vmul.f32 1.442695, %v884_v27  ;;  %927 = vadd.xlane.f32.xlu0 %v6238_v0  ;;  %v870_v37 = vpop.xlane.xlu1 %869 }
 0x478   :  { %v868_v39 = vpop.xlane.xlu0 %867  ;;  %5217 = vpow2.f32 %v913_v61  ;;  %v887_v38 = vsub.f32 %v6198_v19, %v870_v37 }
 0x479   :  { %v886_v11 = vsub.f32 %v6196_v18, %v868_v39  ;;  %v6244_v33 = vpop.eup %5205  ;;  %5219 = vpow2.f32 %v911_v34 }
 0x47a   :  { %v6246_v9 = vpop.eup %5207  ;;  %v917_v43 = vmul.f32 1.442695, %v887_v38  ;;  %933 = vadd.xlane.f32.xlu1 %v6244_v33 }
 0x47b   :  { %v915_v44 = vmul.f32 1.442695, %v886_v11  ;;  %931 = vadd.xlane.f32.xlu0 %v6246_v9  ;;  %v1008_v41 = vpop.permute.xlu1 %1007 }
 0x47c   :  { %v872_v36 = vpop.xlane.xlu0 %871  ;;  %5221 = vpow2.f32 %v917_v43  ;;  %4724 = vmatprep.subr.mxu0 %v1008_v41 }
 0x47d   :  { %v888_v45 = vsub.f32 %v6203_v24, %v872_v36  ;;  %v6251_v19 = vpop.eup %5209  ;;  %5223 = vpow2.f32 %v915_v44  ;;  %4725 = vmatpush3.msra.mxu0 %v1008_v41 }
 0x47e   :  { %v6253_v18 = vpop.eup %5211  ;;  %937 = vadd.xlane.f32.xlu1 %v6251_v19 }
 0x47f   :  { %v919_v15 = vmul.f32 1.442695, %v888_v45  ;;  %935 = vadd.xlane.f32.xlu0 %v6253_v18  ;;  %v1004_v17 = vpop.permute.xlu1 %1003 }
 0x480   :  { %v1006_v48 = vpop.permute.xlu0 %1005 }
 0x481   :  { %5225 = vpow2.f32 %v919_v15  ;;  %4726 = vmatprep.subr.mxu0 %v1006_v48  ;;  %v6257_v53 = vpop.eup %5213 }
 0x482   :  { %4727 = vmatpush3.msra.mxu0 %v1006_v48  ;;  %v6259_v24 = vpop.eup %5215  ;;  %941 = vadd.xlane.f32.xlu1 %v6257_v53 }
 0x483   :  { %4728 = vmatprep.subr.mxu0 %v1004_v17  ;;  %939 = vadd.xlane.f32.xlu0 %v6259_v24 }
 0x484   :  { %4729 = vmatpush3.msra.mxu0 %v1004_v17  ;;  %v1002_v56 = vpop.permute.xlu0 %1001 }
 0x485   :  { %4730 = vmatprep.subr.mxu0 %v1002_v56  ;;  %v6263_v57 = vpop.eup %5217 }
 0x486   :  { %4731 = vmatpush3.msra.mxu0 %v1002_v56  ;;  %v6265_v21 = vpop.eup %5219  ;;  %945 = vadd.xlane.f32.xlu1 %v6263_v57 }
 0x487   :  { %4732 = vmatprep.subr.mxu0 %v1008_v41  ;;  %943 = vadd.xlane.f32.xlu0 %v6265_v21 }
 0x488   :  { %4733 = vmatpush3.msra.mxu0 %v1008_v41 }
 0x489   :  { %4734 = vmatprep.subr.mxu0 %v1006_v48  ;;  %v6269_v1 = vpop.eup %5221 }
 0x48a   :  { %4735 = vmatpush3.msra.mxu0 %v1006_v48  ;;  %v6271_v4 = vpop.eup %5223  ;;  %949 = vadd.xlane.f32.xlu1 %v6269_v1 }
 0x48b   :  { %4736 = vmatprep.subr.mxu0 %v1004_v17  ;;  %947 = vadd.xlane.f32.xlu0 %v6271_v4 }
 0x48c   :  { %4737 = vmatpush3.msra.mxu0 %v1004_v17 }
 0x48d   :  { %4738 = vmatprep.subr.mxu0 %v1002_v56 }
 0x48e   :  { %v6275_v31 = vpop.eup %5225  ;;  %4739 = vmatpush3.msra.mxu0 %v1002_v56 }
 0x48f   :  { %4740 = vmatprep.subr.mxu0 %v1008_v41  ;;  %951 = vadd.xlane.f32.xlu0 %v6275_v31 }
 0x490   :  { %4741 = vmatpush3.msra.mxu0 %v1008_v41 }
 0x491   :  { %4742 = vmatprep.subr.mxu0 %v1006_v48 }
 0x492   :  { %4743 = vmatpush3.msra.mxu0 %v1006_v48 }
 0x493   :  { %4744 = vmatprep.subr.mxu0 %v1004_v17 }
 0x494   :  { %4745 = vmatpush3.msra.mxu0 %v1004_v17 }
 0x495   :  { %4746 = vmatprep.subr.mxu0 %v1002_v56 }
 0x496   :  { %4747 = vmatpush3.msra.mxu0 %v1002_v56 }
 0x497   :  { %4748 = vmatprep.subr.mxu0 %v1008_v41 }
 0x498   :  { %4749 = vmatpush3.msra.mxu0 %v1008_v41 }
 0x499   :  { %4750 = vmatprep.subr.mxu0 %v1006_v48 }
 0x49a   :  { %4751 = vmatpush3.msra.mxu0 %v1006_v48 }
 0x49b   :  { %4752 = vmatprep.subr.mxu0 %v1004_v17 }
 0x49c   :  { %4753 = vmatpush3.msra.mxu0 %v1004_v17 }
 0x49d   :  { %4754 = vmatprep.subr.mxu0 %v1002_v56 }
 0x49e   :  { %4755 = vmatpush3.msra.mxu0 %v1002_v56 }
 0x4f5   :  { %v924_v28 = vpop.xlane.xlu0 %923 }
 0x4f6   :  { %5227 = vrcp.f32 %v924_v28 }
 0x4f7   :  { %v922_v42 = vpop.xlane.xlu1 %921 }
 0x4f8   :  { %5229 = vrcp.f32 %v922_v42 }
 0x4fb   :  { %v926_v8 = vpop.xlane.xlu1 %925 }
 0x4fc   :  { %5231 = vrcp.f32 %v926_v8 }
 0x4ff   :  { %v930_v40 = vpop.xlane.xlu1 %929 }
 0x500   :  { %5233 = vrcp.f32 %v930_v40  ;;  %v928_v12 = vpop.xlane.xlu0 %927 }
 0x501   :  { %5235 = vrcp.f32 %v928_v12 }
 0x503   :  { %v934_v13 = vpop.xlane.xlu1 %933  ;;  %v5228_v14 = vpop.eup %5227 }
 0x504   :  { %5237 = vrcp.f32 %v934_v13  ;;  %v932_v49 = vpop.xlane.xlu0 %931  ;;  %v986_v26 = vmul.f32 %v5228_v14, %v6221_v60 }
 0x505   :  { %v5230_v52 = vpop.eup %5229  ;;  %5239 = vrcp.f32 %v932_v49 }
 0x506   :  { %v985_v20 = vmul.f32 %v5230_v52, %v6226_v5 }
 0x507   :  { %v938_v25 = vpop.xlane.xlu1 %937 }
 0x508   :  { %5241 = vrcp.f32 %v938_v25  ;;  %v936_v27 = vpop.xlane.xlu0 %935  ;;  %4756 = vmatprep.mubr.f32.mxu0 %v985_v20  ;;  %v445_v20 = vld [vmem:[#allocation6 + $0x18] sm:$0xff]  ;;  %v442_v25 = vld [vmem:[#allocation6] sm:$0xff] }
 0x509   :  { %v5232_v61 = vpop.eup %5231  ;;  %5243 = vrcp.f32 %v936_v27  ;;  %4757 = vmatmul.mubr.f32.vlgmr.msra.gmra.mxu0 %v986_v26  ;;  %4780 = vmatprep.subr.mxu0 %v445_v20 }
 0x50a   :  { %v987_v34 = vmul.f32 %v5232_v61, %v6231_v16  ;;  %4781 = vmatpush3.msra.mxu0 %v445_v20 }
 0x50b   :  { %v942_v37 = vpop.xlane.xlu1 %941 }
 0x50c   :  { %5245 = vrcp.f32 %v942_v37  ;;  %v940_v39 = vpop.xlane.xlu0 %939  ;;  %4759 = vmatprep.mubr.f32.mxu0 %v987_v34 }
 0x50d   :  { %v5234_v38 = vpop.eup %5233  ;;  %5247 = vrcp.f32 %v940_v39 }
 0x50e   :  { %v5236_v11 = vpop.eup %5235  ;;  %v989_v5 = vmul.f32 %v5234_v38, %v6236_v32 }
 0x50f   :  { %v946_v43 = vpop.xlane.xlu1 %945  ;;  %v988_v60 = vmul.f32 %v5236_v11, %v6238_v0 }
 0x510   :  { %5249 = vrcp.f32 %v946_v43  ;;  %v944_v44 = vpop.xlane.xlu0 %943 }
 0x511   :  { %v5238_v41 = vpop.eup %5237  ;;  %5251 = vrcp.f32 %v944_v44  ;;  %4760 = vmatmul.mubr.f32.gmra.mxu0 %v988_v60 }
 0x512   :  { %v5240_v36 = vpop.eup %5239  ;;  %4762 = vmatprep.mubr.f32.mxu0 %v989_v5  ;;  %v991_v16 = vmul.f32 %v5238_v41, %v6244_v33 }
 0x513   :  { %v950_v45 = vpop.xlane.xlu1 %949  ;;  %v990_v15 = vmul.f32 %v5240_v36, %v6246_v9 }
 0x514   :  { %5253 = vrcp.f32 %v950_v45  ;;  %v948_v48 = vpop.xlane.xlu0 %947 }
 0x515   :  { %v5242_v17 = vpop.eup %5241  ;;  %5255 = vrcp.f32 %v948_v48  ;;  %4763 = vmatmul.mubr.f32.gmra.mxu0 %v990_v15 }
 0x516   :  { %v5244_v32 = vpop.eup %5243  ;;  %4765 = vmatprep.mubr.f32.mxu0 %v991_v16  ;;  %v993_v0 = vmul.f32 %v5242_v17, %v6251_v19 }
 0x517   :  { %v992_v56 = vmul.f32 %v5244_v32, %v6253_v18 }
 0x518   :  { %v952_v28 = vpop.xlane.xlu0 %951 }
 0x519   :  { %v5246_v42 = vpop.eup %5245  ;;  %5257 = vrcp.f32 %v952_v28  ;;  %4766 = vmatmul.mubr.f32.gmra.mxu0 %v992_v56 }
 0x51a   :  { %v5248_v8 = vpop.eup %5247  ;;  %4768 = vmatprep.mubr.f32.mxu0 %v993_v0  ;;  %v995_v33 = vmul.f32 %v5246_v42, %v6257_v53 }
 0x51b   :  { %v994_v9 = vmul.f32 %v5248_v8, %v6259_v24 }
 0x51d   :  { %v5250_v40 = vpop.eup %5249  ;;  %4769 = vmatmul.mubr.f32.gmra.mxu0 %v994_v9 }
 0x51e   :  { %v5252_v12 = vpop.eup %5251  ;;  %4771 = vmatprep.mubr.f32.mxu0 %v995_v33  ;;  %v997_v13 = vmul.f32 %v5250_v40, %v6263_v57  ;;  %v444_v57 = vld [vmem:[#allocation6 + $0x10] sm:$0xff] }
 0x51f   :  { %v996_v19 = vmul.f32 %v5252_v12, %v6265_v21  ;;  %4782 = vmatprep.subr.mxu0 %v444_v57  ;;  %v443_v21 = vld [vmem:[#allocation6 + $0x8] sm:$0xff] }
 0x520   :  { %4783 = vmatpush3.msra.mxu0 %v444_v57 }
 0x521   :  { %v5254_v14 = vpop.eup %5253  ;;  %4772 = vmatmul.mubr.f32.gmra.mxu0 %v996_v19  ;;  %4784 = vmatprep.subr.mxu0 %v443_v21 }
 0x522   :  { %v5256_v18 = vpop.eup %5255  ;;  %4774 = vmatprep.mubr.f32.mxu0 %v997_v13  ;;  %v999_v49 = vmul.f32 %v5254_v14, %v6269_v1  ;;  %4785 = vmatpush3.msra.mxu0 %v443_v21 }
 0x523   :  { %v998_v52 = vmul.f32 %v5256_v18, %v6271_v4  ;;  %4786 = vmatprep.subr.mxu0 %v442_v25 }
 0x524   :  { %4787 = vmatpush3.msra.mxu0 %v442_v25 }
 0x525   :  { %4775 = vmatmul.mubr.f32.gmra.mxu0 %v998_v52 }
 0x526   :  { %v5258_v53 = vpop.eup %5257  ;;  %4777 = vmatprep.mubr.f32.mxu0 %v999_v49 }
 0x527   :  { %v1000_v24 = vmul.f32 %v5258_v53, %v6275_v31 }
 0x529   :  { %4778 = vmatmul.mubr.f32.gmra.mxu0 %v1000_v24 }
 0x5c9   :  { %v4758_v1 = vpop.f32.mrf.mxu0 }
 0x5ca   :  { %v1159_v36 = vmul.f32 %v4758_v1, %v6044_v46 }
 0x5cb   :  { %v1079_v4 = vpop.f32.mrf.mxu0 }
 0x5cc   :  { %v1158_v44 = vmul.f32 %v1079_v4, %v5993_v35 }
 0x5d1   :  { %v4761_v26 = vpop.f32.mrf.mxu0 }
 0x5d2   :  { %v1161_v46 = vmul.f32 %v4761_v26, %v6056_v50 }
 0x5d3   :  { %v1089_v27 = vpop.f32.mrf.mxu0 }
 0x5d5   :  { %v4764_v61 = vpop.f32.mrf.mxu0 }
 0x5d6   :  { %v1163_v43 = vmul.f32 %v4764_v61, %v6070_v54  ;;  %v1160_v54 = vmul.f32 %v1089_v27, %v6047_v47 }
 0x5d7   :  { %v1099_v34 = vpop.f32.mrf.mxu0 }
 0x5d8   :  { %v1162_v5 = vmul.f32 %v1099_v34, %v6060_v51  ;;  %v1175_v17 = vadd.f32 %v1163_v43, %v1159_v36 }
 0x5d9   :  { %v4767_v31 = vpop.f32.mrf.mxu0 }
 0x5da   :  { %v1174_v15 = vadd.f32 %v1162_v5, %v1158_v44  ;;  %v1165_v32 = vmul.f32 %v4767_v31, %v6086_v58 }
 0x5db   :  { %v1109_v37 = vpop.f32.mrf.mxu0 }
 0x5dc   :  { %v1164_v48 = vmul.f32 %v1109_v37, %v6075_v55  ;;  %v1177_v58 = vadd.f32 %v1165_v32, %v1161_v46 }
 0x5dd   :  { %v4770_v39 = vpop.f32.mrf.mxu0 }
 0x5de   :  { %v1167_v16 = vmul.f32 %v4770_v39, %v6099_v62  ;;  %v1176_v55 = vadd.f32 %v1164_v48, %v1160_v54  ;;  %v446_v48 = vld [vmem:[#allocation7] sm:$0xff] }
 0x5df   :  { %v1119_v38 = vpop.f32.mrf.mxu0 }
 0x5e0   :  { %v1166_v41 = vmul.f32 %v1119_v38, %v6091_v59  ;;  %v1179_v62 = vadd.f32 %v1175_v17, %v1167_v16  ;;  %v449_v16 = vld [vmem:[#allocation7 + $0x18] sm:$0xff] }
 0x5e1   :  { %v4773_v11 = vpop.f32.mrf.mxu0  ;;  %4794 = vmatprep.subr.mxu0 %v449_v16 }
 0x5e2   :  { %v1178_v56 = vadd.f32 %v1174_v15, %v1166_v41  ;;  %v1169_v28 = vmul.f32 %v4773_v11, %v6111_v2  ;;  %v4220_v2 = vld [vmem:[%s7100_s21] ss:$0 sm:$0xff]  ;;  %v447_v15 = vld [vmem:[#allocation7 + $0x8] sm:$0xff] }
 0x5e3   :  { %v1129_v60 = vpop.f32.mrf.mxu0 }
 0x5e4   :  { %v1168_v35 = vmul.f32 %v1129_v60, %v6103_v63  ;;  %v1181_v63 = vadd.f32 %v1177_v58, %v1169_v28 }
 0x5e5   :  { %v4776_v45 = vpop.f32.mrf.mxu0 }
 0x5e6   :  { %v1171_v51 = vmul.f32 %v4776_v45, %v6123_v6  ;;  %v1180_v47 = vadd.f32 %v1176_v55, %v1168_v35  ;;  %v448_v45 = vld [vmem:[#allocation7 + $0x10] sm:$0xff] }
 0x5e7   :  { %v1139_v0 = vpop.f32.mrf.mxu0 }
 0x5e8   :  { %v1170_v59 = vmul.f32 %v1139_v0, %v6115_v3  ;;  %v1183_v33 = vadd.f32 %v1179_v62, %v1171_v51 }
 0x5e9   :  { %v4779_v42 = vpop.f32.mrf.mxu0 }
 0x5ea   :  { %v1182_v8 = vadd.f32 %v1178_v56, %v1170_v59  ;;  %v1173_v6 = vmul.f32 %v4779_v42, %v6135_v10 }
 0x5eb   :  { %v1149_v9 = vpop.f32.mrf.mxu0 }
 0x5ec   :  { %v1172_v40 = vmul.f32 %v1149_v9, %v6127_v7  ;;  %4788 = vmatprep.mubr.msk.f32.mxu0 %vm514_vm1, %v1182_v8  ;;  %v1185_v3 = vadd.f32 %v1181_v63, %v1173_v6  ;;  %v4223_v8 = vld [vmem:[%s7101_s19] ss:$0 sm:$0xff] }
 0x5ed   :  { %4789 = vmatmul.mubr.msk.f32.vlgmr.msra.gmra.mxu0 %vm514_vm1, %v1183_v33 }
 0x5ee   :  { %v1184_v50 = vadd.f32 %v1180_v47, %v1172_v40  ;;  %4795 = vmatpush3.msra.mxu0 %v449_v16  ;;  %v4224_v40 = vld [vmem:[%s7102_s24] ss:$0 sm:$0xff] }
 0x5ef   :  { %4796 = vmatprep.subr.mxu0 %v448_v45 }
 0x5f0   :  { %4791 = vmatprep.mubr.msk.f32.mxu0 %vm514_vm1, %v1184_v50  ;;  %4797 = vmatpush3.msra.mxu0 %v448_v45 }
 0x5f1   :  { %4792 = vmatmul.mubr.msk.f32.gmra.mxu0 %vm514_vm1, %v1185_v3  ;;  %4798 = vmatprep.subr.mxu0 %v447_v15 }
 0x5f2   :  { %4799 = vmatpush3.msra.mxu0 %v447_v15 }
 0x5f3   :  { %4800 = vmatprep.subr.mxu0 %v446_v48 }
 0x5f4   :  { %4801 = vmatpush3.msra.mxu0 %v446_v48 }
 0x6ad   :  { %v4790_v12 = vpop.f32.mrf.mxu0 }
 0x6ae   :  { %v1270_v13 = vadd.f32 %v4790_v12, %v4220_v2 }
 0x6af   :  { %v1264_v19 = vpop.f32.mrf.mxu0 }
 0x6b0   :  { %v1265_v10 = vadd.f32 %v4220_v2, %v1264_v19  ;;  %v1284_v14 = vadd.f32 %v1270_v13, %v5973_v23 }
 0x6b1   :  { %v4793_v18 = vpop.f32.mrf.mxu0 }
 0x6b2   :  { %v1280_v7 = vadd.f32 %v4793_v18, %v4220_v2  ;;  %v1290_v49 = vsel %vm514_vm1, %v1284_v14, 0.0  ;;  %v1283_v52 = vadd.f32 %v1265_v10, %v5971_v22 }
 0x6b3   :  { %1291 = vadd.xlane.f32.xlu0 %v1290_v49  ;;  %v1274_v53 = vpop.f32.mrf.mxu0  ;;  %v456_v49 = vld [vmem:[%s7103_s0 + $0x30] sm:$0xff] }
 0x6b4   :  { %v1275_v24 = vadd.f32 %v4220_v2, %v1274_v53  ;;  %v1287_v20 = vsel %vm514_vm1, %v1283_v52, 0.0  ;;  %v1286_v57 = vadd.f32 %v1280_v7, %v5983_v30  ;;  %v457_v7 = vld [vmem:[%s7103_s0 + $0x38] sm:$0xff]  ;;  %v454_v53 = vld [vmem:[%s7103_s0 + $0x20] sm:$0xff] }
 0x6b5   :  { %1288 = vadd.xlane.f32.xlu1 %v1287_v20  ;;  %4808 = vmatprep.subr.mxu0 %v457_v7  ;;  %v452_v20 = vld [vmem:[%s7103_s0 + $0x10] sm:$0xff] }
 0x6b6   :  { %v1296_v21 = vsel %vm514_vm1, %v1286_v57, 0.0  ;;  %v1285_v25 = vadd.f32 %v1275_v24, %v5981_v29  ;;  %v453_v24 = vld [vmem:[%s7103_s0 + $0x18] sm:$0xff] }
 0x6b7   :  { %1297 = vadd.xlane.f32.xlu0 %v1296_v21  ;;  %v450_v21 = vld [vmem:[%s7103_s0] sm:$0xff] }
 0x6b8   :  { %v1293_v23 = vsel %vm514_vm1, %v1285_v25, 0.0 }
 0x6b9   :  { %1294 = vadd.xlane.f32.xlu1 %v1293_v23 }
 0x73c   :  { %v1292_v1 = vpop.xlane.xlu0 %1291 }
 0x73d   :  { %v1301_v4 = vmul.f32 0.03125, %v1292_v1 }
 0x73e   :  { %v1289_v26 = vpop.xlane.xlu1 %1288 }
 0x73f   :  { %v1305_v22 = vsub.f32 %v1284_v14, %v1301_v4  ;;  %v1300_v27 = vmul.f32 0.03125, %v1289_v26 }
 0x740   :  { %v1298_v61 = vpop.xlane.xlu0 %1297 }
 0x741   :  { %v1304_v34 = vsub.f32 %v1283_v52, %v1300_v27  ;;  %v1303_v31 = vmul.f32 0.03125, %v1298_v61  ;;  %v1309_v37 = vmul.f32 %v1305_v22, %v1305_v22  ;;  %v455_v52 = vld [vmem:[%s7103_s0 + $0x28] sm:$0xff] }
 0x742   :  { %v1295_v39 = vpop.xlane.xlu1 %1294 }
 0x743   :  { %v1307_v30 = vsub.f32 %v1286_v57, %v1303_v31  ;;  %v1302_v38 = vmul.f32 0.03125, %v1295_v39  ;;  %v1315_v11 = vsel %vm514_vm1, %v1309_v37, 0.0  ;;  %v1308_v5 = vmul.f32 %v1304_v34, %v1304_v34  ;;  %v451_v57 = vld [vmem:[%s7103_s0 + $0x8] sm:$0xff] }
 0x744   :  { %1316 = vadd.xlane.f32.xlu0 %v1315_v11 }
 0x745   :  { %v1306_v29 = vsub.f32 %v1285_v25, %v1302_v38  ;;  %v1312_v43 = vsel %vm514_vm1, %v1308_v5, 0.0  ;;  %v1311_v60 = vmul.f32 %v1307_v30, %v1307_v30  ;;  %v4221_v25 = vld [vmem:[%s7104_s26] ss:$0 sm:$0xff] }
 0x746   :  { %1313 = vadd.xlane.f32.xlu1 %v1312_v43 }
 0x747   :  { %v1321_v44 = vsel %vm514_vm1, %v1311_v60, 0.0  ;;  %v1310_v41 = vmul.f32 %v1306_v29, %v1306_v29 }
 0x748   :  { %1322 = vadd.xlane.f32.xlu0 %v1321_v44 }
 0x749   :  { %v1318_v36 = vsel %vm514_vm1, %v1310_v41, 0.0 }
 0x74a   :  { %1319 = vadd.xlane.f32.xlu1 %v1318_v36 }
 0x7cd   :  { %v1317_v17 = vpop.xlane.xlu0 %1316 }
 0x7ce   :  { %v1325_v32 = vmul.f32 0.03125, %v1317_v17 }
 0x7cf   :  { %v1314_v51 = vpop.xlane.xlu1 %1313 }
 0x7d0   :  { %v1329_v0 = vadd.f32 1e-05, %v1325_v32  ;;  %v1324_v54 = vmul.f32 0.03125, %v1314_v51 }
 0x7d1   :  { %v1323_v56 = vpop.xlane.xlu0 %1322 }
 0x7d2   :  { %5259 = vrsqrt.f32 %v1329_v0  ;;  %v1328_v35 = vadd.f32 1e-05, %v1324_v54  ;;  %v1327_v59 = vmul.f32 0.03125, %v1323_v56 }
 0x7d3   :  { %v1320_v46 = vpop.xlane.xlu1 %1319 }
 0x7d4   :  { %5261 = vrsqrt.f32 %v1328_v35  ;;  %v1331_v62 = vadd.f32 1e-05, %v1327_v59  ;;  %v1326_v28 = vmul.f32 0.03125, %v1320_v46 }
 0x7d6   :  { %5263 = vrsqrt.f32 %v1331_v62  ;;  %v1330_v42 = vadd.f32 1e-05, %v1326_v28 }
 0x7d8   :  { %5265 = vrsqrt.f32 %v1330_v42 }
 0x7df   :  { %v5260_v55 = vpop.eup %5259 }
 0x7e0   :  { %v1337_v58 = vmul.f32 %v5260_v55, %v1305_v22 }
 0x7e1   :  { %v5262_v33 = vpop.eup %5261 }
 0x7e2   :  { %v1336_v6 = vmul.f32 %v5262_v33, %v1304_v34  ;;  %v1341_v47 = vmul.f32 %v4223_v8, %v1337_v58 }
 0x7e3   :  { %v5264_v9 = vpop.eup %5263 }
 0x7e4   :  { %v1340_v63 = vmul.f32 %v4223_v8, %v1336_v6  ;;  %v1339_v50 = vmul.f32 %v5264_v9, %v1307_v30  ;;  %v6331_v13 = vadd.f32 %v4224_v40, %v1341_v47 }
 0x7e5   :  { %v5266_v3 = vpop.eup %5265 }
 0x7e6   :  { %v6329_v2 = vadd.f32 %v4224_v40, %v1340_v63  ;;  %v1338_v12 = vmul.f32 %v5266_v3, %v1306_v29  ;;  %v1343_v19 = vmul.f32 %v4223_v8, %v1339_v50 }
 0x7e8   :  { %4802 = vmatprep.mubr.msk.f32.mxu0 %vm514_vm1, %v6329_v2  ;;  %v1342_v10 = vmul.f32 %v4223_v8, %v1338_v12  ;;  %v6339_v18 = vadd.f32 %v4224_v40, %v1343_v19 }
 0x7e9   :  { %4803 = vmatmul.mubr.msk.f32.vlgmr.msra.gmra.mxu0 %vm514_vm1, %v6331_v13 }
 0x7ea   :  { %v6337_v14 = vadd.f32 %v4224_v40, %v1342_v10  ;;  %4809 = vmatpush3.msra.mxu0 %v457_v7 }
 0x7eb   :  { %4810 = vmatprep.subr.mxu0 %v456_v49 }
 0x7ec   :  { %4805 = vmatprep.mubr.msk.f32.mxu0 %vm514_vm1, %v6337_v14  ;;  %4811 = vmatpush3.msra.mxu0 %v456_v49 }
 0x7ed   :  { %4806 = vmatmul.mubr.msk.f32.gmra.mxu0 %vm514_vm1, %v6339_v18  ;;  %4812 = vmatprep.subr.mxu0 %v455_v52 }
 0x7ee   :  { %4813 = vmatpush3.msra.mxu0 %v455_v52 }
 0x7ef   :  { %4814 = vmatprep.subr.mxu0 %v454_v53 }
 0x7f0   :  { %4815 = vmatpush3.msra.mxu0 %v454_v53 }
 0x7f1   :  { %4816 = vmatprep.subr.mxu0 %v453_v24 }
 0x7f2   :  { %4817 = vmatpush3.msra.mxu0 %v453_v24 }
 0x7f3   :  { %4818 = vmatprep.subr.mxu0 %v452_v20 }
 0x7f4   :  { %4819 = vmatpush3.msra.mxu0 %v452_v20 }
 0x7f5   :  { %4820 = vmatprep.subr.mxu0 %v451_v57 }
 0x7f6   :  { %4821 = vmatpush3.msra.mxu0 %v451_v57 }
 0x7f7   :  { %4822 = vmatprep.subr.mxu0 %v450_v21 }
 0x7f8   :  { %4823 = vmatpush3.msra.mxu0 %v450_v21 }
 0x8a9   :  { %v4804_v23 = vpop.f32.mrf.mxu0 }
 0x8aa   :  { %v6354_v1 = vadd.f32 %v4804_v23, %v4221_v25 }
 0x8ab   :  { %v1426_v4 = vpop.f32.mrf.mxu0 }
 0x8ac   :  { %v6357_v26 = vmul.f32 0.70710677, %v6354_v1  ;;  %v6359_v22 = vadd.f32 %v4221_v25, %v1426_v4 }
 0x8ad   :  { %v4807_v27 = vpop.f32.mrf.mxu0 }
 0x8ae   :  { %v1454_v61 = vand.u32 2147483647, %v6357_v26  ;;  %v6363_v34 = vmul.f32 0.70710677, %v6359_v22  ;;  %v6365_v31 = vadd.f32 %v4807_v27, %v4221_v25  ;;  %vm1534_vm2 = vcmp.lt.f32.partialorder %v6357_v26, 0.0 }
 0x8af   :  { %v1436_v37 = vpop.f32.mrf.mxu0  ;;  %v1446_v26 = vmul.f32 0.5, %v6354_v1 }
 0x8b0   :  { %v1458_v39 = vmul.f32 0.3275911, %v1454_v61  ;;  %v1453_v30 = vand.u32 2147483647, %v6363_v34  ;;  %v6369_v38 = vmul.f32 0.70710677, %v6365_v31  ;;  %v6371_v11 = vadd.f32 %v4221_v25, %v1436_v37 }
 0x8b1   :  { %v1510_v48 = vsub.f32 0.0, %v1454_v61  ;;  %vm1533_vm3 = vcmp.lt.f32.partialorder %v6363_v34, 0.0 }
 0x8b2   :  { %v1462_v5 = vadd.f32 1.0, %v1458_v39  ;;  %v1457_v29 = vmul.f32 0.3275911, %v1453_v30  ;;  %v1456_v43 = vand.u32 2147483647, %v6369_v38  ;;  %v1509_v17 = vsub.f32 0.0, %v1453_v30 }
 0x8b3   :  { %v6375_v60 = vmul.f32 0.70710677, %v6371_v11  ;;  %v1514_v32 = vmul.f32 %v1510_v48, %v1454_v61  ;;  %vm1536_vm4 = vcmp.lt.f32.partialorder %v6369_v38, 0.0  ;;  %v1448_v38 = vmul.f32 0.5, %v6365_v31 }
 0x8b4   :  { %5267 = vrcp.f32 %v1462_v5  ;;  %v1461_v44 = vadd.f32 1.0, %v1457_v29  ;;  %v1460_v41 = vmul.f32 0.3275911, %v1456_v43  ;;  %v1512_v51 = vsub.f32 0.0, %v1456_v43 }
 0x8b5   :  { %v1455_v36 = vand.u32 2147483647, %v6375_v60  ;;  %v1513_v54 = vmul.f32 %v1509_v17, %v1453_v30  ;;  %v1519_v35 = vmul.f32 1.442695, %v1514_v32  ;;  %vm1535_vm6 = vcmp.lt.f32.partialorder %v6375_v60, 0.0 }
 0x8b6   :  { %5269 = vrcp.f32 %v1461_v44  ;;  %v1464_v16 = vadd.f32 1.0, %v1460_v41  ;;  %v1516_v46 = vmul.f32 %v1512_v51, %v1456_v43 }
 0x8b7   :  { %v1459_v45 = vmul.f32 0.3275911, %v1455_v36  ;;  %v1511_v59 = vsub.f32 0.0, %v1455_v36  ;;  %v1517_v55 = vmul.f32 1.442695, %v1513_v54 }
 0x8b8   :  { %5271 = vrcp.f32 %v1464_v16  ;;  %v1523_v47 = vmul.f32 1.442695, %v1516_v46 }
 0x8b9   :  { %v1463_v15 = vadd.f32 1.0, %v1459_v45  ;;  %v1515_v33 = vmul.f32 %v1511_v59, %v1455_v36 }
 0x8bb   :  { %5273 = vrcp.f32 %v1463_v15  ;;  %v1521_v10 = vmul.f32 1.442695, %v1515_v33 }
 0x8bc   :  { %5275 = vpow2.f32 %v1519_v35 }
 0x8bd   :  { %5277 = vpow2.f32 %v1517_v55 }
 0x8be   :  { %5279 = vpow2.f32 %v1523_v47 }
 0x8bf   :  { %5281 = vpow2.f32 %v1521_v10 }
 0x8c1   :  { %v5268_v0 = vpop.eup %5267 }
 0x8c2   :  { %v1474_v56 = vmul.f32 1.0614054, %v5268_v0 }
 0x8c3   :  { %v5270_v62 = vpop.eup %5269 }
 0x8c4   :  { %v1478_v28 = vadd.f32 -1.4531521, %v1474_v56  ;;  %v1473_v42 = vmul.f32 1.0614054, %v5270_v62 }
 0x8c5   :  { %v5272_v8 = vpop.eup %5271 }
 0x8c6   :  { %v1482_v58 = vmul.f32 %v5268_v0, %v1478_v28  ;;  %v1477_v6 = vadd.f32 -1.4531521, %v1473_v42  ;;  %v1476_v9 = vmul.f32 1.0614054, %v5272_v8 }
 0x8c8   :  { %v1486_v40 = vadd.f32 1.4214138, %v1482_v58  ;;  %v5274_v63 = vpop.eup %5273  ;;  %v1481_v50 = vmul.f32 %v5270_v62, %v1477_v6  ;;  %v1480_v3 = vadd.f32 -1.4531521, %v1476_v9 }
 0x8c9   :  { %v1475_v19 = vmul.f32 1.0614054, %v5274_v63  ;;  %v5276_v5 = vpop.eup %5275 }
 0x8ca   :  { %v1490_v12 = vmul.f32 %v5268_v0, %v1486_v40  ;;  %v1485_v7 = vadd.f32 1.4214138, %v1481_v50  ;;  %v1484_v49 = vmul.f32 %v5272_v8, %v1480_v3  ;;  %v5278_v45 = vpop.eup %5277 }
 0x8cb   :  { %v1479_v53 = vadd.f32 -1.4531521, %v1475_v19  ;;  %v5280_v51 = vpop.eup %5279 }
 0x8cc   :  { %v1494_v52 = vadd.f32 -0.28449672, %v1490_v12  ;;  %v1489_v24 = vmul.f32 %v5270_v62, %v1485_v7  ;;  %v1488_v20 = vadd.f32 1.4214138, %v1484_v49  ;;  %v5282_v28 = vpop.eup %5281  ;;  %v4222_v7 = vld [vmem:[%s7105_s20] ss:$0 sm:$0xff] }
 0x8cd   :  { %v1483_v21 = vmul.f32 %v5274_v63, %v1479_v53 }
 0x8ce   :  { %v1498_v57 = vmul.f32 %v5268_v0, %v1494_v52  ;;  %v1493_v25 = vadd.f32 -0.28449672, %v1489_v24  ;;  %v1492_v23 = vmul.f32 %v5272_v8, %v1488_v20 }
 0x8cf   :  { %v1487_v27 = vadd.f32 1.4214138, %v1483_v21 }
 0x8d0   :  { %v1502_v4 = vadd.f32 0.2548296, %v1498_v57  ;;  %v1497_v61 = vmul.f32 %v5270_v62, %v1493_v25  ;;  %v1496_v37 = vadd.f32 -0.28449672, %v1492_v23 }
 0x8d1   :  { %v1491_v30 = vmul.f32 %v5274_v63, %v1487_v27 }
 0x8d2   :  { %v1506_v39 = vmul.f32 %v5268_v0, %v1502_v4  ;;  %v1501_v29 = vadd.f32 0.2548296, %v1497_v61  ;;  %v1500_v43 = vmul.f32 %v5272_v8, %v1496_v37 }
 0x8d3   :  { %v1495_v41 = vadd.f32 -0.28449672, %v1491_v30 }
 0x8d4   :  { %v1526_v44 = vmul.f32 %v5276_v5, %v1506_v39  ;;  %v1505_v36 = vmul.f32 %v5270_v62, %v1501_v29  ;;  %v1504_v16 = vadd.f32 0.2548296, %v1500_v43 }
 0x8d5   :  { %v1499_v48 = vmul.f32 %v5274_v63, %v1495_v41 }
 0x8d6   :  { %v1530_v15 = vsub.f32 1.0, %v1526_v44  ;;  %v1525_v17 = vmul.f32 %v5278_v45, %v1505_v36  ;;  %v1508_v32 = vmul.f32 %v5272_v8, %v1504_v16  ;;  %v1445_v8 = vmul.f32 0.5, %v6359_v22 }
 0x8d7   :  { %v1503_v56 = vadd.f32 0.2548296, %v1499_v48  ;;  %v1447_v22 = vmul.f32 0.5, %v6371_v11 }
 0x8d8   :  { %v1538_v54 = vsub.f32 0.0, %v1530_v15  ;;  %v1529_v35 = vsub.f32 1.0, %v1525_v17  ;;  %v1528_v0 = vmul.f32 %v5280_v51, %v1508_v32 }
 0x8d9   :  { %v1507_v46 = vmul.f32 %v5274_v63, %v1503_v56 }
 0x8da   :  { %v1542_v59 = vsel %vm1534_vm2, %v1538_v54, %v1530_v15  ;;  %v1537_v42 = vsub.f32 0.0, %v1529_v35  ;;  %v1532_v55 = vsub.f32 1.0, %v1528_v0 }
 0x8db   :  { %v1527_v62 = vmul.f32 %v5282_v28, %v1507_v46  ;;  %v1546_v58 = vadd.f32 1.0, %v1542_v59 }
 0x8dc   :  { %v1541_v33 = vsel %vm1533_vm3, %v1537_v42, %v1529_v35  ;;  %v1540_v6 = vsub.f32 0.0, %v1532_v55 }
 0x8dd   :  { %v1545_v9 = vadd.f32 1.0, %v1541_v33  ;;  %v1531_v47 = vsub.f32 1.0, %v1527_v62  ;;  %v1550_v3 = vmul.f32 %v1546_v58, %v1446_v26 }
 0x8de   :  { %v1544_v40 = vsel %vm1536_vm4, %v1540_v6, %v1532_v55 }
 0x8df   :  { %v1549_v63 = vmul.f32 %v1545_v9, %v1445_v8  ;;  %v1539_v50 = vsub.f32 0.0, %v1531_v47  ;;  %v1548_v34 = vadd.f32 1.0, %v1544_v40  ;;  %v4225_v9 = vld [vmem:[%s7106_s28] ss:$0 sm:$0xff] }
 0x8e1   :  { %v1543_v12 = vsel %vm1535_vm6, %v1539_v50, %v1531_v47  ;;  %4824 = vmatprep.mubr.msk.f32.mxu0 %vm1553_vm5, %v1549_v63  ;;  %v1552_v10 = vmul.f32 %v1548_v34, %v1448_v38 }
 0x8e2   :  { %v1547_v19 = vadd.f32 1.0, %v1543_v12  ;;  %4825 = vmatmul.mubr.msk.f32.vlgmr.msra.gmra.mxu0 %vm1553_vm5, %v1550_v3  ;;  %v4226_v3 = vld [vmem:[%s7107_s1] ss:$0 sm:$0xff] }
 0x8e4   :  { %v1551_v1 = vmul.f32 %v1547_v19, %v1447_v22 }
 0x8e6   :  { %4827 = vmatprep.mubr.msk.f32.mxu0 %vm1553_vm5, %v1551_v1 }
 0x8e7   :  { %4828 = vmatmul.mubr.msk.f32.gmra.mxu0 %vm1553_vm5, %v1552_v10 }
 0x9a2   :  { %v4826_v49 = vpop.f32.mrf.mxu0 }
 0x9a3   :  { %v1638_v60 = vadd.f32 %v4826_v49, %v4222_v7 }
 0x9a4   :  { %v1632_v52 = vpop.f32.mrf.mxu0 }
 0x9a5   :  { %v1633_v53 = vadd.f32 %v4222_v7, %v1632_v52  ;;  %v1652_v24 = vadd.f32 %v1638_v60, %v6331_v13 }
 0x9a7   :  { %v4829_v20 = vpop.f32.mrf.mxu0  ;;  %v1658_v11 = vsel %vm514_vm1, %v1652_v24, 0.0  ;;  %v1651_v57 = vadd.f32 %v1633_v53, %v6329_v2 }
 0x9a8   :  { %v1648_v21 = vadd.f32 %v4829_v20, %v4222_v7  ;;  %1659 = vadd.xlane.f32.xlu0 %v1658_v11 }
 0x9a9   :  { %v1642_v31 = vpop.f32.mrf.mxu0  ;;  %v1655_v25 = vsel %vm514_vm1, %v1651_v57, 0.0 }
 0x9aa   :  { %v1643_v23 = vadd.f32 %v4222_v7, %v1642_v31  ;;  %1656 = vadd.xlane.f32.xlu1 %v1655_v25  ;;  %v1654_v4 = vadd.f32 %v1648_v21, %v6339_v18 }
 0x9ac   :  { %v1664_v27 = vsel %vm514_vm1, %v1654_v4, 0.0  ;;  %v1653_v61 = vadd.f32 %v1643_v23, %v6337_v14 }
 0x9ad   :  { %1665 = vadd.xlane.f32.xlu0 %v1664_v27 }
 0x9ae   :  { %v1661_v13 = vsel %vm514_vm1, %v1653_v61, 0.0 }
 0x9af   :  { %1662 = vadd.xlane.f32.xlu1 %v1661_v13 }
 0xa31   :  { %v1660_v37 = vpop.xlane.xlu0 %1659 }
 0xa32   :  { %v1668_v39 = vmul.f32 0.03125, %v1660_v37 }
 0xa33   :  { %v1657_v2 = vpop.xlane.xlu1 %1656 }
 0xa34   :  { %v1672_v30 = vsub.f32 %v1652_v24, %v1668_v39  ;;  %v1667_v5 = vmul.f32 0.03125, %v1657_v2  ;;  %v5387_v24 = vld [vmem:[%s5788_s3] ss:$0 sm:$0xff]  ;;  %v6477_v39 = vld [vmem:[%s5778_s25 + $0x8] sm:$0xff]  ;;  %s5744_s3 = smov 32  }
 0xa36   :  { %v1671_v29 = vsub.f32 %v1651_v57, %v1667_v5  ;;  %v1666_v43 = vpop.xlane.xlu0 %1665  ;;  %v1676_v44 = vmul.f32 %v1672_v30, %v1672_v30  ;;  %v6425_v57 = vld [vmem:[%s5778_s25] sm:$0xff] }
 0xa37   :  { %v1670_v41 = vmul.f32 0.03125, %v1666_v43 }
 0xa38   :  { %v1663_v36 = vpop.xlane.xlu1 %1662  ;;  %v1682_v18 = vsel %vm514_vm1, %v1676_v44, 0.0  ;;  %v1675_v16 = vmul.f32 %v1671_v29, %v1671_v29  ;;  %v6494_v44 = vld [vmem:[%s5778_s25 + $0x20] sm:$0xff] }
 0xa39   :  { %v1674_v45 = vsub.f32 %v1654_v4, %v1670_v41  ;;  %v1669_v15 = vmul.f32 0.03125, %v1663_v36  ;;  %1683 = vadd.xlane.f32.xlu0 %v1682_v18  ;;  %v6501_v36 = vld [vmem:[%s5778_s25 + $0x28] sm:$0xff] }
 0xa3a   :  { %v1679_v14 = vsel %vm514_vm1, %v1675_v16, 0.0  ;;  %v6506_v16 = vld [vmem:[%s5778_s25 + $0x30] sm:$0xff] }
 0xa3b   :  { %v1673_v48 = vsub.f32 %v1653_v61, %v1669_v15  ;;  %1680 = vadd.xlane.f32.xlu1 %v1679_v14  ;;  %v1678_v17 = vmul.f32 %v1674_v45, %v1674_v45  ;;  %v6513_v15 = vld [vmem:[%s5778_s25 + $0x38] sm:$0xff] }
 0xa3d   :  { %v1688_v32 = vsel %vm514_vm1, %v1678_v17, 0.0  ;;  %v1677_v51 = vmul.f32 %v1673_v48, %v1673_v48 }
 0xa3e   :  { %1689 = vadd.xlane.f32.xlu0 %v1688_v32  ;;  %v6525_v32 = vld [vmem:[%s5778_s25 + $0x48] sm:$0xff] }
 0xa3f   :  { %v1685_v54 = vsel %vm514_vm1, %v1677_v51, 0.0 }
 0xa40   :  { %1686 = vadd.xlane.f32.xlu1 %v1685_v54  ;;  %v6530_v54 = vld [vmem:[%s5778_s25 + $0x50] sm:$0xff] }
 0xac2   :  { %v1684_v56 = vpop.xlane.xlu0 %1683 }
 0xac3   :  { %v1692_v35 = vmul.f32 0.03125, %v1684_v56 }
 0xac4   :  { %v1681_v0 = vpop.xlane.xlu1 %1680 }
 0xac5   :  { %v1696_v59 = vadd.f32 1e-05, %v1692_v35  ;;  %v1691_v46 = vmul.f32 0.03125, %v1681_v0  ;;  %v6537_v35 = vld [vmem:[%s5778_s25 + $0x58] sm:$0xff] }
 0xac7   :  { %5283 = vrsqrt.f32 %v1696_v59  ;;  %v1695_v28 = vadd.f32 1e-05, %v1691_v46  ;;  %v1690_v42 = vpop.xlane.xlu0 %1689  ;;  %v6542_v59 = vld [vmem:[%s5778_s25 + $0x60] sm:$0xff] }
 0xac8   :  { %v1694_v55 = vmul.f32 0.03125, %v1690_v42 }
 0xac9   :  { %5285 = vrsqrt.f32 %v1695_v28  ;;  %v1687_v62 = vpop.xlane.xlu1 %1686  ;;  %v6549_v28 = vld [vmem:[%s5778_s25 + $0x68] sm:$0xff] }
 0xaca   :  { %v1698_v58 = vadd.f32 1e-05, %v1694_v55  ;;  %v1693_v33 = vmul.f32 0.03125, %v1687_v62  ;;  %v6554_v55 = vld [vmem:[%s5778_s25 + $0x70] sm:$0xff] }
 0xacc   :  { %5287 = vrsqrt.f32 %v1698_v58  ;;  %v1697_v6 = vadd.f32 1e-05, %v1693_v33  ;;  %v6561_v58 = vld [vmem:[%s5778_s25 + $0x78] sm:$0xff] }
 0xace   :  { %5289 = vrsqrt.f32 %v1697_v6 }
 0xad4   :  { %v5284_v8 = vpop.eup %5283 }
 0xad5   :  { %v1704_v47 = vmul.f32 %v5284_v8, %v1672_v30  ;;  %v6482_v30 = vld [vmem:[%s5778_s25 + $0x10] sm:$0xff]  ;;  %v5404_v8 = vld [vmem:[%s7099_s13 + $0x8] sm:$0xff] }
 0xad6   :  { %v5286_v26 = vpop.eup %5285 }
 0xad7   :  { %v1703_v40 = vmul.f32 %v5286_v26, %v1671_v29  ;;  %v1708_v63 = vmul.f32 %v4225_v9, %v1704_v47  ;;  %v6489_v29 = vld [vmem:[%s5778_s25 + $0x18] sm:$0xff]  ;;  %v5405_v26 = vld [vmem:[%s7099_s13] sm:$0xff] }
 0xad9   :  { %v5288_v50 = vpop.eup %5287  ;;  %v1707_v34 = vmul.f32 %v4225_v9, %v1703_v40  ;;  %v6407_v38 = vadd.f32 %v4226_v3, %v1708_v63 }
 0xada   :  { %v1706_v12 = vmul.f32 %v5288_v50, %v1674_v45 }
 0xadb   :  { %v5290_v22 = vpop.eup %5289  ;;  %v6405_v19 = vadd.f32 %v4226_v3, %v1707_v34 }
 0xadc   :  { %v1705_v1 = vmul.f32 %v5290_v22, %v1673_v48  ;;  %v1710_v10 = vmul.f32 %v4225_v9, %v1706_v12  ;;  %v6518_v48 = vld [vmem:[%s5778_s25 + $0x40] sm:$0xff]  ;;  %s7108_s25 = sld [smem:[#allocation37_spill]] }
 0xadd   :  { %4838 = vmatprep.mubr.msk.f32.mxu1 %vm514_vm1, %v6405_v19 }
 0xade   :  { %4839 = vmatmul.mubr.msk.f32.vlgmr.msra.gmra.mxu1 %vm514_vm1, %v6407_v38  ;;  %v1709_v7 = vmul.f32 %v4225_v9, %v1705_v1  ;;  %v6415_v60 = vadd.f32 %v4226_v3, %v1710_v10  ;;  %v5407_v1 = vld [vmem:[%s7099_s13 + $0x18] sm:$0xff] }
 0xae0   :  { %v6413_v49 = vadd.f32 %v4226_v3, %v1709_v7  ;;  %v5406_v3 = vld [vmem:[%s7099_s13 + $0x10] sm:$0xff]  ;;  %v5408_v7 = vld [vmem:[%s7099_s13 + $0x20] sm:$0xff] }
 0xae2   :  { %4841 = vmatprep.mubr.msk.f32.mxu1 %vm514_vm1, %v6413_v49 }
 0xae3   :  { %4842 = vmatmul.mubr.msk.f32.gmra.mxu1 %vm514_vm1, %v6415_v60 }
 0xb9e   :  { %v4840_v52 = vpop.f32.mrf.mxu1 }
 0xb9f   :  { %v6436_v4 = vadd.f32 %v5387_v24, %v4840_v52 }
 0xba0   :  { %v1793_v53 = vpop.f32.mrf.mxu1 }
 0xba1   :  { %v6422_v20 = vadd.f32 %v5387_v24, %v1793_v53  ;;  %v1813_v2 = vmul.f32 %v6477_v39, %v6436_v4  ;;  %v1817_v18 = vmul.f32 %v6501_v36, %v6436_v4  ;;  %v1821_v51 = vmul.f32 %v6525_v32, %v6436_v4 }
 0xba2   :  { %v1825_v42 = vmul.f32 %v6549_v28, %v6436_v4 }
 0xba3   :  { %v4843_v11 = vpop.f32.mrf.mxu1  ;;  %v1812_v21 = vmul.f32 %v6425_v57, %v6422_v20  ;;  %v1816_v41 = vmul.f32 %v6494_v44, %v6422_v20  ;;  %v1820_v17 = vmul.f32 %v6518_v48, %v6422_v20  ;;  %v1824_v46 = vmul.f32 %v6542_v59, %v6422_v20 }
 0xba4   :  { %v6429_v31 = vadd.f32 %v5387_v24, %v4843_v11  ;;  %v5409_v11 = vld [vmem:[%s7099_s13 + $0x28] sm:$0xff] }
 0xba5   :  { %v1803_v25 = vpop.f32.mrf.mxu1  ;;  %4876 = vmatprep.mubr.msk.f32.mxu0 %vm514_vm1, %v1812_v21 }
 0xba6   :  { %v6432_v23 = vadd.f32 %v5387_v24, %v1803_v25  ;;  %1838 = vrot.lane.b32.xlu1 %v6429_v31, %s5741_s5  ;;  %v1815_v43 = vmul.f32 %v6489_v29, %v6429_v31  ;;  %v1819_v14 = vmul.f32 %v6513_v15, %v6429_v31  ;;  %v1823_v0 = vmul.f32 %v6537_v35, %v6429_v31  ;;  %v5410_v25 = vld [vmem:[%s7099_s13 + $0x30] sm:$0xff] }
 0xba7   :  { %v1827_v33 = vmul.f32 %v6561_v58, %v6429_v31 }
 0xba8   :  { %1836 = vrot.lane.b32.xlu0 %v6432_v23, %s5741_s5  ;;  %v1814_v5 = vmul.f32 %v6482_v30, %v6432_v23  ;;  %v1818_v45 = vmul.f32 %v6506_v16, %v6432_v23  ;;  %v1822_v56 = vmul.f32 %v6530_v54, %v6432_v23  ;;  %v1826_v62 = vmul.f32 %v6554_v55, %v6432_v23 }
 0xbaa   :  { %1834 = vrot.lane.b32.xlu1 %v6436_v4, %s5741_s5 }
 0xbae   :  { %1832 = vrot.lane.b32.xlu1 %v6422_v20, %s5741_s5 }
 0xc18   :  { %v1839_v27 = vpop.permute.xlu1 %1838 }
 0xc19   :  { %4844 = vmatprep.subr.msk.mxu0 %vm514_vm1, %v1839_v27 }
 0xc1a   :  { %4845 = vmatpush3.xpose.msk.msra.mxu0 %vm514_vm1, %v1839_v27  ;;  %v1837_v61 = vpop.permute.xlu0 %1836 }
 0xc1b   :  { %4846 = vmatprep.subr.msk.mxu0 %vm514_vm1, %v1837_v61 }
 0xc1c   :  { %v1835_v13 = vpop.permute.xlu1 %1834 }
 0xc1e   :  { %4847 = vmatpush3.xpose.msk.msra.mxu0 %vm514_vm1, %v1837_v61 }
 0xc1f   :  { %4848 = vmatprep.subr.msk.mxu0 %vm514_vm1, %v1835_v13 }
 0xc20   :  { %v1833_v37 = vpop.permute.xlu1 %1832 }
 0xc22   :  { %4849 = vmatpush3.xpose.msk.msra.mxu0 %vm514_vm1, %v1835_v13 }
 0xc23   :  { %4850 = vmatprep.subr.msk.mxu0 %vm514_vm1, %v1833_v37 }
 0xc26   :  { %4851 = vmatpush3.xpose.msk.msra.mxu0 %vm514_vm1, %v1833_v37 }
 0xc27   :  { %4852 = vmatprep.subr.msk.mxu0 %vm514_vm1, %v1839_v27 }
 0xc2a   :  { %4853 = vmatpush3.xpose.msk.msra.mxu0 %vm514_vm1, %v1839_v27 }
 0xc2b   :  { %4854 = vmatprep.subr.msk.mxu0 %vm514_vm1, %v1837_v61 }
 0xc2e   :  { %4855 = vmatpush3.xpose.msk.msra.mxu0 %vm514_vm1, %v1837_v61 }
 0xc2f   :  { %4856 = vmatprep.subr.msk.mxu0 %vm514_vm1, %v1835_v13 }
 0xc32   :  { %4857 = vmatpush3.xpose.msk.msra.mxu0 %vm514_vm1, %v1835_v13 }
 0xc33   :  { %4858 = vmatprep.subr.msk.mxu0 %vm514_vm1, %v1833_v37 }
 0xc36   :  { %4859 = vmatpush3.xpose.msk.msra.mxu0 %vm514_vm1, %v1833_v37 }
 0xc37   :  { %4860 = vmatprep.subr.msk.mxu0 %vm514_vm1, %v1839_v27 }
 0xc3a   :  { %4861 = vmatpush3.xpose.msk.msra.mxu0 %vm514_vm1, %v1839_v27 }
 0xc3b   :  { %4862 = vmatprep.subr.msk.mxu0 %vm514_vm1, %v1837_v61 }
 0xc3e   :  { %4863 = vmatpush3.xpose.msk.msra.mxu0 %vm514_vm1, %v1837_v61 }
 0xc3f   :  { %4864 = vmatprep.subr.msk.mxu0 %vm514_vm1, %v1835_v13 }
 0xc42   :  { %4865 = vmatpush3.xpose.msk.msra.mxu0 %vm514_vm1, %v1835_v13 }
 0xc43   :  { %4866 = vmatprep.subr.msk.mxu0 %vm514_vm1, %v1833_v37 }
 0xc46   :  { %4867 = vmatpush3.xpose.msk.msra.mxu0 %vm514_vm1, %v1833_v37 }
 0xc47   :  { %4868 = vmatprep.subr.msk.mxu0 %vm514_vm1, %v1839_v27 }
 0xc4a   :  { %4869 = vmatpush3.xpose.msk.msra.mxu0 %vm514_vm1, %v1839_v27 }
 0xc4b   :  { %4870 = vmatprep.subr.msk.mxu0 %vm514_vm1, %v1837_v61 }
 0xc4e   :  { %4871 = vmatpush3.xpose.msk.msra.mxu0 %vm514_vm1, %v1837_v61 }
 0xc4f   :  { %4872 = vmatprep.subr.msk.mxu0 %vm514_vm1, %v1835_v13 }
 0xc52   :  { %4873 = vmatpush3.xpose.msk.msra.mxu0 %vm514_vm1, %v1835_v13 }
 0xc53   :  { %4874 = vmatprep.subr.msk.mxu0 %vm514_vm1, %v1833_v37 }
 0xc56   :  { %4875 = vmatpush3.xpose.msk.msra.mxu0 %vm514_vm1, %v1833_v37  ;;  %v5411_v37 = vld [vmem:[%s7099_s13 + $0x38] sm:$0xff] }
 0xc59   :  { %4877 = vmatmul.mubr.msk.f32.vlgmr.msra.gmra.mxu0 %vm514_vm1, %v1813_v2 }
 0xc5a   :  { %4879 = vmatprep.mubr.msk.f32.mxu0 %vm514_vm1, %v1814_v5  ;;  %v5412_v5 = vld [vmem:[%s7099_s13 + $0x40] sm:$0xff] }
 0xc5d   :  { %4880 = vmatmul.mubr.msk.f32.gmra.mxu0 %vm514_vm1, %v1815_v43 }
 0xc5e   :  { %4882 = vmatprep.mubr.msk.f32.mxu0 %vm514_vm1, %v1816_v41 }
 0xc61   :  { %4883 = vmatmul.mubr.msk.f32.gmra.mxu0 %vm514_vm1, %v1817_v18 }
 0xc62   :  { %4885 = vmatprep.mubr.msk.f32.mxu0 %vm514_vm1, %v1818_v45  ;;  %v5413_v45 = vld [vmem:[%s7099_s13 + $0x48] sm:$0xff] }
 0xc65   :  { %4886 = vmatmul.mubr.msk.f32.gmra.mxu0 %vm514_vm1, %v1819_v14 }
 0xc66   :  { %4888 = vmatprep.mubr.msk.f32.mxu0 %vm514_vm1, %v1820_v17  ;;  %v5414_v17 = vld [vmem:[%s7099_s13 + $0x50] sm:$0xff] }
 0xc69   :  { %4889 = vmatmul.mubr.msk.f32.gmra.mxu0 %vm514_vm1, %v1821_v51 }
 0xc6a   :  { %4891 = vmatprep.mubr.msk.f32.mxu0 %vm514_vm1, %v1822_v56 }
 0xc6d   :  { %4892 = vmatmul.mubr.msk.f32.gmra.mxu0 %vm514_vm1, %v1823_v0 }
 0xc6e   :  { %4894 = vmatprep.mubr.msk.f32.mxu0 %vm514_vm1, %v1824_v46  ;;  %v5415_v46 = vld [vmem:[%s7099_s13 + $0x58] sm:$0xff] }
 0xc71   :  { %4895 = vmatmul.mubr.msk.f32.gmra.mxu0 %vm514_vm1, %v1825_v42 }
 0xc72   :  { %4897 = vmatprep.mubr.msk.f32.mxu0 %vm514_vm1, %v1826_v62  ;;  %v5416_v62 = vld [vmem:[%s7099_s13 + $0x60] sm:$0xff] }
 0xc75   :  { %4898 = vmatmul.mubr.msk.f32.gmra.mxu0 %vm514_vm1, %v1827_v33 }
 0xd19   :  { %v4878_v6 = vpop.f32.mrf.mxu0 }
 0xd1a   :  { %v6567_v9 = vadd.f32 %v5404_v8, %v4878_v6 }
 0xd1b   :  { %v1962_v47 = vpop.f32.mrf.mxu0 }
 0xd1c   :  { %v6570_v40 = vadd.f32 %v5405_v26, %v1962_v47  ;;  %2043 = vmax.xlane.f32.xlu1 %v6567_v9  ;;  %v5417_v47 = vld [vmem:[%s7099_s13 + $0x68] sm:$0xff] }
 0xd1d   :  { %v4881_v63 = vpop.f32.mrf.mxu0 }
 0xd1e   :  { %2041 = vmax.xlane.f32.xlu0 %v6570_v40  ;;  %v6579_v10 = vadd.f32 %v5407_v1, %v4881_v63  ;;  %v5418_v63 = vld [vmem:[%s7099_s13 + $0x70] sm:$0xff] }
 0xd1f   :  { %v1972_v50 = vpop.f32.mrf.mxu0 }
 0xd20   :  { %v6575_v34 = vadd.f32 %v5406_v3, %v1972_v50  ;;  %v5419_v3 = vld [vmem:[%s7099_s13 + $0x78] sm:$0xff] }
 0xd21   :  { %v4884_v12 = vpop.f32.mrf.mxu0 }
 0xd22   :  { %2045 = vmax.xlane.f32.xlu0 %v6575_v34  ;;  %v6587_v21 = vadd.f32 %v5409_v11, %v4884_v12 }
 0xd23   :  { %v1982_v22 = vpop.f32.mrf.mxu0 }
 0xd24   :  { %v6582_v52 = vadd.f32 %v5408_v7, %v1982_v22 }
 0xd25   :  { %v4887_v53 = vpop.f32.mrf.mxu0 }
 0xd26   :  { %2049 = vmax.xlane.f32.xlu1 %v6582_v52  ;;  %2047 = vmax.xlane.f32.xlu0 %v6579_v10  ;;  %v6595_v2 = vadd.f32 %v5411_v37, %v4887_v53 }
 0xd27   :  { %v1992_v24 = vpop.f32.mrf.mxu0 }
 0xd28   :  { %v6590_v27 = vadd.f32 %v5410_v25, %v1992_v24 }
 0xd29   :  { %v4890_v61 = vpop.f32.mrf.mxu0 }
 0xd2a   :  { %2053 = vmax.xlane.f32.xlu1 %v6590_v27  ;;  %2051 = vmax.xlane.f32.xlu0 %v6587_v21  ;;  %v6603_v14 = vadd.f32 %v5413_v45, %v4890_v61 }
 0xd2b   :  { %v2002_v13 = vpop.f32.mrf.mxu0 }
 0xd2c   :  { %v6598_v43 = vadd.f32 %v5412_v5, %v2002_v13 }
 0xd2d   :  { %v4893_v41 = vpop.f32.mrf.mxu0 }
 0xd2e   :  { %2057 = vmax.xlane.f32.xlu1 %v6598_v43  ;;  %2055 = vmax.xlane.f32.xlu0 %v6595_v2  ;;  %v6611_v42 = vadd.f32 %v5415_v46, %v4893_v41 }
 0xd2f   :  { %v2012_v18 = vpop.f32.mrf.mxu0 }
 0xd30   :  { %v6606_v51 = vadd.f32 %v5414_v17, %v2012_v18 }
 0xd31   :  { %v4896_v56 = vpop.f32.mrf.mxu0 }
 0xd32   :  { %2061 = vmax.xlane.f32.xlu1 %v6606_v51  ;;  %2059 = vmax.xlane.f32.xlu0 %v6603_v14  ;;  %v6619_v26 = vadd.f32 %v5417_v47, %v4896_v56 }
 0xd33   :  { %v2022_v0 = vpop.f32.mrf.mxu0 }
 0xd34   :  { %v6614_v33 = vadd.f32 %v5416_v62, %v2022_v0 }
 0xd35   :  { %v4899_v6 = vpop.f32.mrf.mxu0 }
 0xd36   :  { %2065 = vmax.xlane.f32.xlu1 %v6614_v33  ;;  %2063 = vmax.xlane.f32.xlu0 %v6611_v42  ;;  %v6627_v12 = vadd.f32 %v5419_v3, %v4899_v6 }
 0xd37   :  { %v2032_v8 = vpop.f32.mrf.mxu0 }
 0xd38   :  { %v6622_v50 = vadd.f32 %v5418_v63, %v2032_v8 }
 0xd3a   :  { %2069 = vmax.xlane.f32.xlu1 %v6622_v50  ;;  %2067 = vmax.xlane.f32.xlu0 %v6619_v26 }
 0xd3e   :  { %2071 = vmax.xlane.f32.xlu0 %v6627_v12 }
 0xd4b   :  { %2207 = vrot.lane.b32.xlu1 %v6429_v31, %s5742_s17 }
 0xd4f   :  { %2203 = vrot.lane.b32.xlu1 %v6436_v4, %s5742_s17 }
 0xd54   :  { %2205 = vrot.lane.b32.xlu0 %v6432_v23, %s5742_s17 }
 0xd58   :  { %2201 = vrot.lane.b32.xlu0 %v6422_v20, %s5742_s17 }
 0xda5   :  { %v2044_v22 = vpop.xlane.xlu1 %2043 }
 0xda6   :  { %v2074_v1 = vsub.f32 %v6567_v9, %v2044_v22 }
 0xda7   :  { %v2042_v7 = vpop.xlane.xlu0 %2041 }
 0xda8   :  { %v2091_v53 = vmul.f32 1.442695, %v2074_v1  ;;  %v2073_v24 = vsub.f32 %v6570_v40, %v2042_v7 }
 0xdaa   :  { %5291 = vpow2.f32 %v2091_v53  ;;  %v2089_v11 = vmul.f32 1.442695, %v2073_v24 }
 0xdab   :  { %v2046_v25 = vpop.xlane.xlu0 %2045 }
 0xdac   :  { %5293 = vpow2.f32 %v2089_v11  ;;  %v2075_v31 = vsub.f32 %v6575_v34, %v2046_v25 }
 0xdae   :  { %v2093_v4 = vmul.f32 1.442695, %v2075_v31 }
 0xdaf   :  { %v2050_v61 = vpop.xlane.xlu1 %2049  ;;  %v2048_v13 = vpop.xlane.xlu0 %2047 }
 0xdb0   :  { %5295 = vpow2.f32 %v2093_v4  ;;  %v2077_v23 = vsub.f32 %v6582_v52, %v2050_v61  ;;  %v2076_v20 = vsub.f32 %v6579_v10, %v2048_v13 }
 0xdb2   :  { %v2097_v37 = vmul.f32 1.442695, %v2077_v23  ;;  %v2095_v9 = vmul.f32 1.442695, %v2076_v20 }
 0xdb3   :  { %v2054_v5 = vpop.xlane.xlu1 %2053  ;;  %v2052_v41 = vpop.xlane.xlu0 %2051 }
 0xdb4   :  { %5297 = vpow2.f32 %v2097_v37  ;;  %v2079_v40 = vsub.f32 %v6590_v27, %v2054_v5  ;;  %v2078_v18 = vsub.f32 %v6587_v21, %v2052_v41 }
 0xdb5   :  { %5299 = vpow2.f32 %v2095_v9 }
 0xdb6   :  { %v2101_v45 = vmul.f32 1.442695, %v2079_v40  ;;  %v2099_v34 = vmul.f32 1.442695, %v2078_v18 }
 0xdb7   :  { %v6645_v17 = vpop.eup %5291  ;;  %v2058_v56 = vpop.xlane.xlu1 %2057 }
 0xdb8   :  { %v2056_v0 = vpop.xlane.xlu0 %2055  ;;  %5301 = vpow2.f32 %v2101_v45  ;;  %v2081_v52 = vsub.f32 %v6598_v43, %v2058_v56  ;;  %2123 = vadd.xlane.f32.xlu0 %v6645_v17 }
 0xdb9   :  { %v2080_v10 = vsub.f32 %v6595_v2, %v2056_v0  ;;  %v6650_v46 = vpop.eup %5293  ;;  %5303 = vpow2.f32 %v2099_v34 }
 0xdba   :  { %v2105_v27 = vmul.f32 1.442695, %v2081_v52  ;;  %2121 = vadd.xlane.f32.xlu1 %v6650_v46 }
 0xdbb   :  { %v2103_v62 = vmul.f32 1.442695, %v2080_v10  ;;  %v2062_v21 = vpop.xlane.xlu1 %2061  ;;  %v5420_v10 = vld [vmem:[#allocation6 + $0x18] sm:$0xff] }
 0xdbc   :  { %v2060_v6 = vpop.xlane.xlu0 %2059  ;;  %5305 = vpow2.f32 %v2105_v27  ;;  %v2083_v8 = vsub.f32 %v6606_v51, %v2062_v21 }
 0xdbd   :  { %v2082_v47 = vsub.f32 %v6603_v14, %v2060_v6  ;;  %v6655_v63 = vpop.eup %5295  ;;  %5307 = vpow2.f32 %v2103_v62 }
 0xdbe   :  { %v2109_v2 = vmul.f32 1.442695, %v2083_v8  ;;  %2125 = vadd.xlane.f32.xlu1 %v6655_v63 }
 0xdbf   :  { %v2107_v43 = vmul.f32 1.442695, %v2082_v47  ;;  %v2066_v3 = vpop.xlane.xlu1 %2065 }
 0xdc0   :  { %v2064_v22 = vpop.xlane.xlu0 %2063  ;;  %5309 = vpow2.f32 %v2109_v2  ;;  %v2085_v1 = vsub.f32 %v6614_v33, %v2066_v3 }
 0xdc1   :  { %v2084_v7 = vsub.f32 %v6611_v42, %v2064_v22  ;;  %v6660_v53 = vpop.eup %5297  ;;  %5311 = vpow2.f32 %v2107_v43 }
 0xdc2   :  { %v6662_v51 = vpop.eup %5299  ;;  %v2113_v14 = vmul.f32 1.442695, %v2085_v1  ;;  %2129 = vadd.xlane.f32.xlu1 %v6660_v53 }
 0xdc3   :  { %v2111_v24 = vmul.f32 1.442695, %v2084_v7  ;;  %2127 = vadd.xlane.f32.xlu0 %v6662_v51  ;;  %v2070_v11 = vpop.xlane.xlu1 %2069 }
 0xdc4   :  { %v2068_v25 = vpop.xlane.xlu0 %2067  ;;  %5313 = vpow2.f32 %v2113_v14  ;;  %v2087_v31 = vsub.f32 %v6622_v50, %v2070_v11 }
 0xdc5   :  { %v2086_v33 = vsub.f32 %v6619_v26, %v2068_v25  ;;  %v6668_v4 = vpop.eup %5301  ;;  %5315 = vpow2.f32 %v2111_v24 }
 0xdc6   :  { %v6670_v42 = vpop.eup %5303  ;;  %v2117_v61 = vmul.f32 1.442695, %v2087_v31  ;;  %2133 = vadd.xlane.f32.xlu1 %v6668_v4  ;;  %v5421_v31 = vld [vmem:[#allocation6 + $0x10] sm:$0xff] }
 0xdc7   :  { %v2115_v13 = vmul.f32 1.442695, %v2086_v33  ;;  %2131 = vadd.xlane.f32.xlu0 %v6670_v42  ;;  %v2208_v23 = vpop.permute.xlu1 %2207 }
 0xdc8   :  { %v2072_v20 = vpop.xlane.xlu0 %2071  ;;  %5317 = vpow2.f32 %v2117_v61  ;;  %4900 = vmatprep.subr.mxu1 %v2208_v23  ;;  %v5422_v61 = vld [vmem:[#allocation6 + $0x8] sm:$0xff] }
 0xdc9   :  { %v2088_v37 = vsub.f32 %v6627_v12, %v2072_v20  ;;  %v6675_v50 = vpop.eup %5305  ;;  %5319 = vpow2.f32 %v2115_v13  ;;  %4901 = vmatpush3.msra.mxu1 %v2208_v23 }
 0xdca   :  { %v6677_v26 = vpop.eup %5307  ;;  %2137 = vadd.xlane.f32.xlu1 %v6675_v50 }
 0xdcb   :  { %v2119_v9 = vmul.f32 1.442695, %v2088_v37  ;;  %2135 = vadd.xlane.f32.xlu0 %v6677_v26  ;;  %v2204_v40 = vpop.permute.xlu1 %2203 }
 0xdcc   :  { %v2206_v5 = vpop.permute.xlu0 %2205 }
 0xdcd   :  { %5321 = vpow2.f32 %v2119_v9  ;;  %4902 = vmatprep.subr.mxu1 %v2206_v5  ;;  %v6681_v41 = vpop.eup %5309 }
 0xdce   :  { %4903 = vmatpush3.msra.mxu1 %v2206_v5  ;;  %v6683_v12 = vpop.eup %5311  ;;  %2141 = vadd.xlane.f32.xlu1 %v6681_v41 }
 0xdcf   :  { %4904 = vmatprep.subr.mxu1 %v2204_v40  ;;  %2139 = vadd.xlane.f32.xlu0 %v6683_v12 }
 0xdd0   :  { %4905 = vmatpush3.msra.mxu1 %v2204_v40  ;;  %v2202_v18 = vpop.permute.xlu0 %2201 }
 0xdd1   :  { %4906 = vmatprep.subr.mxu1 %v2202_v18  ;;  %v6687_v45 = vpop.eup %5313 }
 0xdd2   :  { %4907 = vmatpush3.msra.mxu1 %v2202_v18  ;;  %v6689_v34 = vpop.eup %5315  ;;  %2145 = vadd.xlane.f32.xlu1 %v6687_v45 }
 0xdd3   :  { %4908 = vmatprep.subr.mxu1 %v2208_v23  ;;  %2143 = vadd.xlane.f32.xlu0 %v6689_v34 }
 0xdd4   :  { %4909 = vmatpush3.msra.mxu1 %v2208_v23 }
 0xdd5   :  { %4910 = vmatprep.subr.mxu1 %v2206_v5  ;;  %v6693_v56 = vpop.eup %5317 }
 0xdd6   :  { %4911 = vmatpush3.msra.mxu1 %v2206_v5  ;;  %v6695_v0 = vpop.eup %5319  ;;  %2149 = vadd.xlane.f32.xlu1 %v6693_v56 }
 0xdd7   :  { %4912 = vmatprep.subr.mxu1 %v2204_v40  ;;  %2147 = vadd.xlane.f32.xlu0 %v6695_v0 }
 0xdd8   :  { %4913 = vmatpush3.msra.mxu1 %v2204_v40 }
 0xdd9   :  { %4914 = vmatprep.subr.mxu1 %v2202_v18 }
 0xdda   :  { %v6699_v52 = vpop.eup %5321  ;;  %4915 = vmatpush3.msra.mxu1 %v2202_v18 }
 0xddb   :  { %4916 = vmatprep.subr.mxu1 %v2208_v23  ;;  %2151 = vadd.xlane.f32.xlu0 %v6699_v52 }
 0xddc   :  { %4917 = vmatpush3.msra.mxu1 %v2208_v23 }
 0xddd   :  { %4918 = vmatprep.subr.mxu1 %v2206_v5 }
 0xdde   :  { %4919 = vmatpush3.msra.mxu1 %v2206_v5 }
 0xddf   :  { %4920 = vmatprep.subr.mxu1 %v2204_v40 }
 0xde0   :  { %4921 = vmatpush3.msra.mxu1 %v2204_v40 }
 0xde1   :  { %4922 = vmatprep.subr.mxu1 %v2202_v18 }
 0xde2   :  { %4923 = vmatpush3.msra.mxu1 %v2202_v18 }
 0xde3   :  { %4924 = vmatprep.subr.mxu1 %v2208_v23 }
 0xde4   :  { %4925 = vmatpush3.msra.mxu1 %v2208_v23 }
 0xde5   :  { %4926 = vmatprep.subr.mxu1 %v2206_v5 }
 0xde6   :  { %4927 = vmatpush3.msra.mxu1 %v2206_v5  ;;  %v6707_v5 = vld [vmem:[#allocation7 + $0x18] sm:$0xff] }
 0xde7   :  { %4928 = vmatprep.subr.mxu1 %v2204_v40 }
 0xde8   :  { %4929 = vmatpush3.msra.mxu1 %v2204_v40 }
 0xde9   :  { %4930 = vmatprep.subr.mxu1 %v2202_v18 }
 0xdea   :  { %4931 = vmatpush3.msra.mxu1 %v2202_v18 }
 0xdeb   :  { %4956 = vmatprep.subr.mxu1 %v5420_v10 }
 0xe41   :  { %v2124_v27 = vpop.xlane.xlu0 %2123 }
 0xe42   :  { %5323 = vrcp.f32 %v2124_v27 }
 0xe43   :  { %v2122_v62 = vpop.xlane.xlu1 %2121 }
 0xe44   :  { %5325 = vrcp.f32 %v2122_v62 }
 0xe47   :  { %v2126_v21 = vpop.xlane.xlu1 %2125 }
 0xe48   :  { %5327 = vrcp.f32 %v2126_v21 }
 0xe4b   :  { %v2130_v6 = vpop.xlane.xlu1 %2129 }
 0xe4c   :  { %5329 = vrcp.f32 %v2130_v6  ;;  %v2128_v8 = vpop.xlane.xlu0 %2127 }
 0xe4d   :  { %5331 = vrcp.f32 %v2128_v8 }
 0xe4f   :  { %v2134_v47 = vpop.xlane.xlu1 %2133  ;;  %v5324_v2 = vpop.eup %5323 }
 0xe50   :  { %5333 = vrcp.f32 %v2134_v47  ;;  %v2132_v43 = vpop.xlane.xlu0 %2131  ;;  %v2186_v7 = vmul.f32 %v5324_v2, %v6645_v17 }
 0xe51   :  { %v5326_v3 = vpop.eup %5325  ;;  %5335 = vrcp.f32 %v2132_v43 }
 0xe52   :  { %v2185_v22 = vmul.f32 %v5326_v3, %v6650_v46 }
 0xe53   :  { %v2138_v1 = vpop.xlane.xlu1 %2137 }
 0xe54   :  { %5337 = vrcp.f32 %v2138_v1  ;;  %v2136_v14 = vpop.xlane.xlu0 %2135  ;;  %4932 = vmatprep.mubr.f32.mxu1 %v2185_v22 }
 0xe55   :  { %v5328_v24 = vpop.eup %5327  ;;  %5339 = vrcp.f32 %v2136_v14  ;;  %4933 = vmatmul.mubr.f32.vlgmr.msra.gmra.mxu1 %v2186_v7 }
 0xe56   :  { %v2187_v11 = vmul.f32 %v5328_v24, %v6655_v63  ;;  %4957 = vmatpush3.msra.mxu1 %v5420_v10  ;;  %v5423_v63 = vld [vmem:[#allocation6] sm:$0xff] }
 0xe57   :  { %v2142_v25 = vpop.xlane.xlu1 %2141  ;;  %4958 = vmatprep.subr.mxu1 %v5421_v31 }
 0xe58   :  { %5341 = vrcp.f32 %v2142_v25  ;;  %v2140_v33 = vpop.xlane.xlu0 %2139  ;;  %4935 = vmatprep.mubr.f32.mxu1 %v2187_v11  ;;  %4959 = vmatpush3.msra.mxu1 %v5421_v31 }
 0xe59   :  { %v5330_v46 = vpop.eup %5329  ;;  %5343 = vrcp.f32 %v2140_v33  ;;  %4960 = vmatprep.subr.mxu1 %v5422_v61 }
 0xe5a   :  { %v5332_v17 = vpop.eup %5331  ;;  %v2189_v13 = vmul.f32 %v5330_v46, %v6660_v53  ;;  %4961 = vmatpush3.msra.mxu1 %v5422_v61 }
 0xe5b   :  { %v2146_v23 = vpop.xlane.xlu1 %2145  ;;  %v2188_v20 = vmul.f32 %v5332_v17, %v6662_v51  ;;  %4962 = vmatprep.subr.mxu1 %v5423_v63 }
 0xe5c   :  { %5345 = vrcp.f32 %v2146_v23  ;;  %v2144_v37 = vpop.xlane.xlu0 %2143  ;;  %4963 = vmatpush3.msra.mxu1 %v5423_v63 }
 0xe5d   :  { %v5334_v9 = vpop.eup %5333  ;;  %5347 = vrcp.f32 %v2144_v37  ;;  %4936 = vmatmul.mubr.f32.gmra.mxu1 %v2188_v20  ;;  %4970 = vmatprep.subr.mxu1 %v6707_v5 }
 0xe5e   :  { %v5336_v40 = vpop.eup %5335  ;;  %4938 = vmatprep.mubr.f32.mxu1 %v2189_v13  ;;  %v2191_v53 = vmul.f32 %v5334_v9, %v6668_v4 }
 0xe5f   :  { %v2150_v18 = vpop.xlane.xlu1 %2149  ;;  %v2190_v10 = vmul.f32 %v5336_v40, %v6670_v42 }
 0xe60   :  { %5349 = vrcp.f32 %v2150_v18  ;;  %v2148_v51 = vpop.xlane.xlu0 %2147 }
 0xe61   :  { %v5338_v27 = vpop.eup %5337  ;;  %5351 = vrcp.f32 %v2148_v51  ;;  %4939 = vmatmul.mubr.f32.gmra.mxu1 %v2190_v10 }
 0xe62   :  { %v5340_v62 = vpop.eup %5339  ;;  %4941 = vmatprep.mubr.f32.mxu1 %v2191_v53  ;;  %v2193_v21 = vmul.f32 %v5338_v27, %v6675_v50 }
 0xe63   :  { %v2192_v6 = vmul.f32 %v5340_v62, %v6677_v26 }
 0xe64   :  { %v2152_v8 = vpop.xlane.xlu0 %2151 }
 0xe65   :  { %v5342_v47 = vpop.eup %5341  ;;  %5353 = vrcp.f32 %v2152_v8  ;;  %4942 = vmatmul.mubr.f32.gmra.mxu1 %v2192_v6 }
 0xe66   :  { %v5344_v2 = vpop.eup %5343  ;;  %4944 = vmatprep.mubr.f32.mxu1 %v2193_v21  ;;  %v2195_v4 = vmul.f32 %v5342_v47, %v6681_v41 }
 0xe67   :  { %v2194_v42 = vmul.f32 %v5344_v2, %v6683_v12 }
 0xe69   :  { %v5346_v43 = vpop.eup %5345  ;;  %4945 = vmatmul.mubr.f32.gmra.mxu1 %v2194_v42  ;;  %v5429_v42 = vld [vmem:[%s7100_s21] ss:$0 sm:$0xff] }
 0xe6a   :  { %v5348_v3 = vpop.eup %5347  ;;  %4947 = vmatprep.mubr.f32.mxu1 %v2195_v4  ;;  %v2197_v22 = vmul.f32 %v5346_v43, %v6687_v45  ;;  %v6743_v4 = vld [vmem:[%s7103_s0 + $0x38] sm:$0xff] }
 0xe6b   :  { %v2196_v50 = vmul.f32 %v5348_v3, %v6689_v34 }
 0xe6d   :  { %v5350_v1 = vpop.eup %5349  ;;  %4948 = vmatmul.mubr.f32.gmra.mxu1 %v2196_v50 }
 0xe6e   :  { %v5352_v26 = vpop.eup %5351  ;;  %4950 = vmatprep.mubr.f32.mxu1 %v2197_v22  ;;  %v2199_v7 = vmul.f32 %v5350_v1, %v6693_v56 }
 0xe6f   :  { %v2198_v14 = vmul.f32 %v5352_v26, %v6695_v0 }
 0xe71   :  { %4951 = vmatmul.mubr.f32.gmra.mxu1 %v2198_v14 }
 0xe72   :  { %v5354_v41 = vpop.eup %5353  ;;  %4953 = vmatprep.mubr.f32.mxu1 %v2199_v7 }
 0xe73   :  { %v2200_v12 = vmul.f32 %v5354_v41, %v6699_v52 }
 0xe75   :  { %4954 = vmatmul.mubr.f32.gmra.mxu1 %v2200_v12 }
 0xf15   :  { %v4934_v24 = vpop.f32.mrf.mxu1 }
 0xf16   :  { %v2359_v63 = vmul.f32 %v6477_v39, %v4934_v24 }
 0xf17   :  { %v2279_v11 = vpop.f32.mrf.mxu1 }
 0xf18   :  { %v2358_v20 = vmul.f32 %v6425_v57, %v2279_v11 }
 0xf1d   :  { %v4937_v25 = vpop.f32.mrf.mxu1 }
 0xf1e   :  { %v2361_v39 = vmul.f32 %v6489_v29, %v4937_v25 }
 0xf1f   :  { %v2289_v45 = vpop.f32.mrf.mxu1 }
 0xf21   :  { %v4940_v31 = vpop.f32.mrf.mxu1 }
 0xf22   :  { %v2363_v0 = vmul.f32 %v6501_v36, %v4940_v31  ;;  %v2360_v36 = vmul.f32 %v6482_v30, %v2289_v45 }
 0xf23   :  { %v2299_v34 = vpop.f32.mrf.mxu1 }
 0xf24   :  { %v2362_v56 = vmul.f32 %v6494_v44, %v2299_v34  ;;  %v2375_v18 = vadd.f32 %v2363_v0, %v2359_v63 }
 0xf25   :  { %v4943_v33 = vpop.f32.mrf.mxu1 }
 0xf26   :  { %v2374_v40 = vadd.f32 %v2362_v56, %v2358_v20  ;;  %v2365_v10 = vmul.f32 %v6513_v15, %v4943_v33 }
 0xf27   :  { %v2309_v46 = vpop.f32.mrf.mxu1 }
 0xf28   :  { %v2364_v53 = vmul.f32 %v6506_v16, %v2309_v46  ;;  %v2377_v8 = vadd.f32 %v2365_v10, %v2361_v39 }
 0xf29   :  { %v4946_v61 = vpop.f32.mrf.mxu1 }
 0xf2a   :  { %v2367_v37 = vmul.f32 %v6525_v32, %v4946_v61  ;;  %v2376_v16 = vadd.f32 %v2364_v53, %v2360_v36 }
 0xf2b   :  { %v2319_v17 = vpop.f32.mrf.mxu1 }
 0xf2c   :  { %v2366_v52 = vmul.f32 %v6518_v48, %v2319_v17  ;;  %v2379_v32 = vadd.f32 %v2375_v18, %v2367_v37 }
 0xf2d   :  { %v4949_v13 = vpop.f32.mrf.mxu1 }
 0xf2e   :  { %v2378_v27 = vadd.f32 %v2374_v40, %v2366_v52  ;;  %v2369_v62 = vmul.f32 %v6537_v35, %v4949_v13 }
 0xf2f   :  { %v2329_v23 = vpop.f32.mrf.mxu1 }
 0xf30   :  { %v2368_v57 = vmul.f32 %v6530_v54, %v2329_v23  ;;  %v2381_v54 = vadd.f32 %v2377_v8, %v2369_v62 }
 0xf31   :  { %v4952_v9 = vpop.f32.mrf.mxu1 }
 0xf32   :  { %v2371_v44 = vmul.f32 %v6549_v28, %v4952_v9  ;;  %v2380_v2 = vadd.f32 %v2376_v16, %v2368_v57 }
 0xf33   :  { %v2339_v51 = vpop.f32.mrf.mxu1 }
 0xf34   :  { %v2370_v48 = vmul.f32 %v6542_v59, %v2339_v51  ;;  %v2383_v15 = vadd.f32 %v2379_v32, %v2371_v44  ;;  %v5425_v59 = vld [vmem:[#allocation7 + $0x10] sm:$0xff] }
 0xf35   :  { %v4955_v21 = vpop.f32.mrf.mxu1 }
 0xf36   :  { %v2382_v6 = vadd.f32 %v2378_v27, %v2370_v48  ;;  %v2373_v28 = vmul.f32 %v6561_v58, %v4955_v21  ;;  %v5426_v58 = vld [vmem:[#allocation7 + $0x8] sm:$0xff] }
 0xf37   :  { %v2349_v47 = vpop.f32.mrf.mxu1 }
 0xf38   :  { %v2372_v30 = vmul.f32 %v6554_v55, %v2349_v47  ;;  %4964 = vmatprep.mubr.msk.f32.mxu1 %vm514_vm1, %v2382_v6  ;;  %v2385_v35 = vadd.f32 %v2381_v54, %v2373_v28  ;;  %v5427_v55 = vld [vmem:[#allocation7] sm:$0xff]  ;;  %v5430_v47 = vld [vmem:[%s7101_s19] ss:$0 sm:$0xff] }
 0xf39   :  { %4965 = vmatmul.mubr.msk.f32.vlgmr.msra.gmra.mxu1 %vm514_vm1, %v2383_v15 }
 0xf3a   :  { %v2384_v29 = vadd.f32 %v2380_v2, %v2372_v30  ;;  %4971 = vmatpush3.msra.mxu1 %v6707_v5 }
 0xf3b   :  { %4972 = vmatprep.subr.mxu1 %v5425_v59 }
 0xf3c   :  { %4967 = vmatprep.mubr.msk.f32.mxu1 %vm514_vm1, %v2384_v29  ;;  %4973 = vmatpush3.msra.mxu1 %v5425_v59 }
 0xf3d   :  { %4968 = vmatmul.mubr.msk.f32.gmra.mxu1 %vm514_vm1, %v2385_v35  ;;  %4974 = vmatprep.subr.mxu1 %v5426_v58  ;;  %v5431_v35 = vld [vmem:[%s7102_s24] ss:$0 sm:$0xff] }
 0xf3e   :  { %4975 = vmatpush3.msra.mxu1 %v5426_v58 }
 0xf3f   :  { %4976 = vmatprep.subr.mxu1 %v5427_v55 }
 0xf40   :  { %4977 = vmatpush3.msra.mxu1 %v5427_v55 }
 0xf41   :  { %4984 = vmatprep.subr.mxu1 %v6743_v4 }
 0xff9   :  { %v4966_v5 = vpop.f32.mrf.mxu1 }
 0xffa   :  { %v2470_v43 = vadd.f32 %v5429_v42, %v4966_v5 }
 0xffb   :  { %v2464_v3 = vpop.f32.mrf.mxu1 }
 0xffc   :  { %v2484_v22 = vadd.f32 %v2470_v43, %v6407_v38  ;;  %v2465_v50 = vadd.f32 %v5429_v42, %v2464_v3 }
 0xffd   :  { %v4969_v1 = vpop.f32.mrf.mxu1 }
 0xffe   :  { %v2480_v26 = vadd.f32 %v5429_v42, %v4969_v1  ;;  %v2490_v7 = vsel %vm514_vm1, %v2484_v22, 0.0  ;;  %v2483_v14 = vadd.f32 %v2465_v50, %v6405_v19  ;;  %v5433_v50 = vld [vmem:[%s7103_s0 + $0x28] sm:$0xff]  ;;  %v5434_v1 = vld [vmem:[%s7103_s0 + $0x20] sm:$0xff] }
 0xfff   :  { %2491 = vadd.xlane.f32.xlu0 %v2490_v7  ;;  %v2474_v41 = vpop.f32.mrf.mxu1  ;;  %v5437_v7 = vld [vmem:[%s7103_s0 + $0x8] sm:$0xff] }
0x1000   :  { %v2486_v12 = vadd.f32 %v2480_v26, %v6415_v60  ;;  %v2475_v24 = vadd.f32 %v5429_v42, %v2474_v41  ;;  %v2487_v11 = vsel %vm514_vm1, %v2483_v14, 0.0  ;;  %v5436_v26 = vld [vmem:[%s7103_s0 + $0x10] sm:$0xff] }
0x1001   :  { %2488 = vadd.xlane.f32.xlu1 %v2487_v11 }
0x1002   :  { %v2496_v25 = vsel %vm514_vm1, %v2486_v12, 0.0  ;;  %v2485_v45 = vadd.f32 %v2475_v24, %v6413_v49 }
0x1003   :  { %2497 = vadd.xlane.f32.xlu0 %v2496_v25 }
0x1004   :  { %v2493_v38 = vsel %vm514_vm1, %v2485_v45, 0.0 }
0x1005   :  { %2494 = vadd.xlane.f32.xlu1 %v2493_v38 }
0x1088   :  { %v2492_v31 = vpop.xlane.xlu0 %2491 }
0x1089   :  { %v2500_v34 = vmul.f32 0.03125, %v2492_v31 }
0x108a   :  { %v2489_v33 = vpop.xlane.xlu1 %2488 }
0x108b   :  { %v2504_v19 = vsub.f32 %v2484_v22, %v2500_v34  ;;  %v2499_v46 = vmul.f32 0.03125, %v2489_v33  ;;  %v5432_v22 = vld [vmem:[%s7103_s0 + $0x30] sm:$0xff] }
0x108c   :  { %v2498_v61 = vpop.xlane.xlu0 %2497 }
0x108d   :  { %v2503_v17 = vsub.f32 %v2483_v14, %v2499_v46  ;;  %v2502_v60 = vmul.f32 0.03125, %v2498_v61  ;;  %v2508_v13 = vmul.f32 %v2504_v19, %v2504_v19  ;;  %v5438_v14 = vld [vmem:[%s7103_s0] sm:$0xff] }
0x108e   :  { %v2495_v56 = vpop.xlane.xlu1 %2494 }
0x108f   :  { %v2506_v0 = vsub.f32 %v2486_v12, %v2502_v60  ;;  %v2501_v23 = vmul.f32 0.03125, %v2495_v56  ;;  %v2514_v20 = vsel %vm514_vm1, %v2508_v13, 0.0  ;;  %v2507_v52 = vmul.f32 %v2503_v17, %v2503_v17  ;;  %v5439_v12 = vld [vmem:[%s7104_s26] ss:$0 sm:$0xff] }
0x1090   :  { %2515 = vadd.xlane.f32.xlu0 %v2514_v20 }
0x1091   :  { %v2505_v49 = vsub.f32 %v2485_v45, %v2501_v23  ;;  %v2511_v63 = vsel %vm514_vm1, %v2507_v52, 0.0  ;;  %v2510_v37 = vmul.f32 %v2506_v0, %v2506_v0 }
0x1092   :  { %2512 = vadd.xlane.f32.xlu1 %v2511_v63 }
0x1093   :  { %v2520_v9 = vsel %vm514_vm1, %v2510_v37, 0.0  ;;  %v2509_v40 = vmul.f32 %v2505_v49, %v2505_v49 }
0x1094   :  { %2521 = vadd.xlane.f32.xlu0 %v2520_v9 }
0x1095   :  { %v2517_v53 = vsel %vm514_vm1, %v2509_v40, 0.0 }
0x1096   :  { %2518 = vadd.xlane.f32.xlu1 %v2517_v53 }
0x1119   :  { %v2516_v18 = vpop.xlane.xlu0 %2515 }
0x111a   :  { %v2524_v10 = vmul.f32 0.03125, %v2516_v18 }
0x111b   :  { %v2513_v44 = vpop.xlane.xlu1 %2512 }
0x111c   :  { %v2528_v51 = vadd.f32 1e-05, %v2524_v10  ;;  %v2523_v36 = vmul.f32 0.03125, %v2513_v44 }
0x111d   :  { %v2522_v27 = vpop.xlane.xlu0 %2521 }
0x111e   :  { %5355 = vrsqrt.f32 %v2528_v51  ;;  %v2527_v57 = vadd.f32 1e-05, %v2523_v36  ;;  %v2526_v48 = vmul.f32 0.03125, %v2522_v27 }
0x111f   :  { %v2519_v39 = vpop.xlane.xlu1 %2518 }
0x1120   :  { %5357 = vrsqrt.f32 %v2527_v57  ;;  %v2530_v32 = vadd.f32 1e-05, %v2526_v48  ;;  %v2525_v62 = vmul.f32 0.03125, %v2519_v39 }
0x1122   :  { %5359 = vrsqrt.f32 %v2530_v32  ;;  %v2529_v21 = vadd.f32 1e-05, %v2525_v62 }
0x1124   :  { %5361 = vrsqrt.f32 %v2529_v21 }
0x112b   :  { %v5356_v16 = vpop.eup %5355 }
0x112c   :  { %v2536_v6 = vmul.f32 %v5356_v16, %v2504_v19 }
0x112d   :  { %v5358_v8 = vpop.eup %5357 }
0x112e   :  { %v2535_v15 = vmul.f32 %v5358_v8, %v2503_v17  ;;  %v2540_v2 = vmul.f32 %v5430_v47, %v2536_v6 }
0x112f   :  { %v5360_v28 = vpop.eup %5359 }
0x1130   :  { %v2539_v30 = vmul.f32 %v5430_v47, %v2535_v15  ;;  %v2538_v54 = vmul.f32 %v5360_v28, %v2506_v0  ;;  %v6763_v55 = vadd.f32 %v5431_v35, %v2540_v2 }
0x1131   :  { %v5362_v29 = vpop.eup %5361 }
0x1132   :  { %v6761_v59 = vadd.f32 %v5431_v35, %v2539_v30  ;;  %v2537_v58 = vmul.f32 %v5362_v29, %v2505_v49  ;;  %v2542_v5 = vmul.f32 %v5430_v47, %v2538_v54 }
0x1134   :  { %4978 = vmatprep.mubr.msk.f32.mxu1 %vm514_vm1, %v6761_v59  ;;  %v2541_v42 = vmul.f32 %v5430_v47, %v2537_v58  ;;  %v6772_v3 = vadd.f32 %v5431_v35, %v2542_v5 }
0x1135   :  { %4979 = vmatmul.mubr.msk.f32.vlgmr.msra.gmra.mxu1 %vm514_vm1, %v6763_v55 }
0x1136   :  { %v6769_v43 = vadd.f32 %v5431_v35, %v2541_v42  ;;  %4985 = vmatpush3.msra.mxu1 %v6743_v4  ;;  %v5435_v4 = vld [vmem:[%s7103_s0 + $0x18] sm:$0xff] }
0x1137   :  { %4986 = vmatprep.subr.mxu1 %v5432_v22 }
0x1138   :  { %4981 = vmatprep.mubr.msk.f32.mxu1 %vm514_vm1, %v6769_v43  ;;  %4987 = vmatpush3.msra.mxu1 %v5432_v22 }
0x1139   :  { %4982 = vmatmul.mubr.msk.f32.gmra.mxu1 %vm514_vm1, %v6772_v3  ;;  %4988 = vmatprep.subr.mxu1 %v5433_v50 }
0x113a   :  { %4989 = vmatpush3.msra.mxu1 %v5433_v50 }
0x113b   :  { %4990 = vmatprep.subr.mxu1 %v5434_v1 }
0x113c   :  { %4991 = vmatpush3.msra.mxu1 %v5434_v1 }
0x113d   :  { %4992 = vmatprep.subr.mxu1 %v5435_v4 }
0x113e   :  { %4993 = vmatpush3.msra.mxu1 %v5435_v4 }
0x113f   :  { %4994 = vmatprep.subr.mxu1 %v5436_v26 }
0x1140   :  { %4995 = vmatpush3.msra.mxu1 %v5436_v26 }
0x1141   :  { %4996 = vmatprep.subr.mxu1 %v5437_v7 }
0x1142   :  { %4997 = vmatpush3.msra.mxu1 %v5437_v7 }
0x1143   :  { %4998 = vmatprep.subr.mxu1 %v5438_v14 }
0x1144   :  { %4999 = vmatpush3.msra.mxu1 %v5438_v14 }
0x11f5   :  { %v4980_v41 = vpop.f32.mrf.mxu1 }
0x11f6   :  { %v6786_v24 = vadd.f32 %v5439_v12, %v4980_v41 }
0x11f7   :  { %v2625_v11 = vpop.f32.mrf.mxu1 }
0x11f8   :  { %v6789_v25 = vmul.f32 0.70710677, %v6786_v24  ;;  %v6791_v45 = vadd.f32 %v5439_v12, %v2625_v11 }
0x11f9   :  { %v4983_v38 = vpop.f32.mrf.mxu1 }
0x11fa   :  { %v2653_v31 = vand.u32 2147483647, %v6789_v25  ;;  %v6795_v34 = vmul.f32 0.70710677, %v6791_v45  ;;  %v6797_v33 = vadd.f32 %v5439_v12, %v4983_v38  ;;  %vm2733_vm7 = vcmp.lt.f32.partialorder %v6789_v25, 0.0 }
0x11fb   :  { %v2635_v19 = vpop.f32.mrf.mxu1  ;;  %v2645_v25 = vmul.f32 0.5, %v6786_v24 }
0x11fc   :  { %v2657_v46 = vmul.f32 0.3275911, %v2653_v31  ;;  %v2652_v61 = vand.u32 2147483647, %v6795_v34  ;;  %v6801_v17 = vmul.f32 0.70710677, %v6797_v33  ;;  %v6803_v60 = vadd.f32 %v5439_v12, %v2635_v19 }
0x11fd   :  { %v2709_v40 = vsub.f32 0.0, %v2653_v31  ;;  %vm2732_vm8 = vcmp.lt.f32.partialorder %v6795_v34, 0.0 }
0x11fe   :  { %v2661_v13 = vadd.f32 1.0, %v2657_v46  ;;  %v2656_v56 = vmul.f32 0.3275911, %v2652_v61  ;;  %v2655_v0 = vand.u32 2147483647, %v6801_v17  ;;  %v2708_v53 = vsub.f32 0.0, %v2652_v61 }
0x11ff   :  { %v6807_v23 = vmul.f32 0.70710677, %v6803_v60  ;;  %v2713_v18 = vmul.f32 %v2709_v40, %v2653_v31  ;;  %vm2735_vm9 = vcmp.lt.f32.partialorder %v6801_v17, 0.0  ;;  %v2647_v17 = vmul.f32 0.5, %v6797_v33 }
0x1200   :  { %5363 = vrcp.f32 %v2661_v13  ;;  %v2660_v20 = vadd.f32 1.0, %v2656_v56  ;;  %v2659_v52 = vmul.f32 0.3275911, %v2655_v0  ;;  %v2711_v10 = vsub.f32 0.0, %v2655_v0 }
0x1201   :  { %v2654_v49 = vand.u32 2147483647, %v6807_v23  ;;  %v2712_v51 = vmul.f32 %v2708_v53, %v2652_v61  ;;  %v2718_v27 = vmul.f32 1.442695, %v2713_v18  ;;  %vm2734_vm10 = vcmp.lt.f32.partialorder %v6807_v23, 0.0 }
0x1202   :  { %5365 = vrcp.f32 %v2660_v20  ;;  %v2663_v63 = vadd.f32 1.0, %v2659_v52  ;;  %v2715_v48 = vmul.f32 %v2711_v10, %v2655_v0 }
0x1203   :  { %v2658_v37 = vmul.f32 0.3275911, %v2654_v49  ;;  %v2710_v57 = vsub.f32 0.0, %v2654_v49  ;;  %v2716_v21 = vmul.f32 1.442695, %v2712_v51 }
0x1204   :  { %5367 = vrcp.f32 %v2663_v63  ;;  %v2722_v47 = vmul.f32 1.442695, %v2715_v48 }
0x1205   :  { %v2662_v9 = vadd.f32 1.0, %v2658_v37  ;;  %v2714_v8 = vmul.f32 %v2710_v57, %v2654_v49 }
0x1207   :  { %5369 = vrcp.f32 %v2662_v9  ;;  %v2720_v5 = vmul.f32 1.442695, %v2714_v8 }
0x1208   :  { %5371 = vpow2.f32 %v2718_v27 }
0x1209   :  { %5373 = vpow2.f32 %v2716_v21 }
0x120a   :  { %5375 = vpow2.f32 %v2722_v47 }
0x120b   :  { %5377 = vpow2.f32 %v2720_v5 }
0x120d   :  { %v5364_v44 = vpop.eup %5363 }
0x120e   :  { %v2673_v36 = vmul.f32 1.0614054, %v5364_v44 }
0x120f   :  { %v5366_v39 = vpop.eup %5365 }
0x1210   :  { %v2677_v32 = vadd.f32 -1.4531521, %v2673_v36  ;;  %v2672_v62 = vmul.f32 1.0614054, %v5366_v39 }
0x1211   :  { %v5368_v16 = vpop.eup %5367 }
0x1212   :  { %v2681_v6 = vmul.f32 %v5364_v44, %v2677_v32  ;;  %v2676_v15 = vadd.f32 -1.4531521, %v2672_v62  ;;  %v2675_v28 = vmul.f32 1.0614054, %v5368_v16 }
0x1214   :  { %v2685_v2 = vadd.f32 1.4214138, %v2681_v6  ;;  %v5370_v30 = vpop.eup %5369  ;;  %v2680_v54 = vmul.f32 %v5366_v39, %v2676_v15  ;;  %v2679_v29 = vadd.f32 -1.4531521, %v2675_v28 }
0x1215   :  { %v2674_v58 = vmul.f32 1.0614054, %v5370_v30  ;;  %v5372_v13 = vpop.eup %5371 }
0x1216   :  { %v2689_v35 = vmul.f32 %v5364_v44, %v2685_v2  ;;  %v2684_v42 = vadd.f32 1.4214138, %v2680_v54  ;;  %v2683_v22 = vmul.f32 %v5368_v16, %v2679_v29  ;;  %v5374_v37 = vpop.eup %5373 }
0x1217   :  { %v2678_v1 = vadd.f32 -1.4531521, %v2674_v58  ;;  %v5376_v10 = vpop.eup %5375  ;;  %v2646_v58 = vmul.f32 0.5, %v6803_v60 }
0x1218   :  { %v2693_v50 = vadd.f32 -0.28449672, %v2689_v35  ;;  %v2688_v4 = vmul.f32 %v5366_v39, %v2684_v42  ;;  %v2687_v26 = vadd.f32 1.4214138, %v2683_v22  ;;  %v5378_v32 = vpop.eup %5377 }
0x1219   :  { %v2682_v14 = vmul.f32 %v5370_v30, %v2678_v1 }
0x121a   :  { %v2697_v7 = vmul.f32 %v5364_v44, %v2693_v50  ;;  %v2692_v41 = vadd.f32 -0.28449672, %v2688_v4  ;;  %v2691_v12 = vmul.f32 %v5368_v16, %v2687_v26  ;;  %v5440_v50 = vld [vmem:[%s7105_s20] ss:$0 sm:$0xff] }
0x121b   :  { %v2686_v38 = vadd.f32 1.4214138, %v2682_v14 }
0x121c   :  { %v2701_v11 = vadd.f32 0.2548296, %v2697_v7  ;;  %v2696_v31 = vmul.f32 %v5366_v39, %v2692_v41  ;;  %v2695_v19 = vadd.f32 -0.28449672, %v2691_v12 }
0x121d   :  { %v2690_v61 = vmul.f32 %v5370_v30, %v2686_v38 }
0x121e   :  { %v2705_v46 = vmul.f32 %v5364_v44, %v2701_v11  ;;  %v2700_v56 = vadd.f32 0.2548296, %v2696_v31  ;;  %v2699_v0 = vmul.f32 %v5368_v16, %v2695_v19 }
0x121f   :  { %v2694_v52 = vadd.f32 -0.28449672, %v2690_v61 }
0x1220   :  { %v2725_v20 = vmul.f32 %v5372_v13, %v2705_v46  ;;  %v2704_v49 = vmul.f32 %v5366_v39, %v2700_v56  ;;  %v2703_v63 = vadd.f32 0.2548296, %v2699_v0 }
0x1221   :  { %v2698_v40 = vmul.f32 %v5370_v30, %v2694_v52 }
0x1222   :  { %v2729_v9 = vsub.f32 1.0, %v2725_v20  ;;  %v2724_v53 = vmul.f32 %v5374_v37, %v2704_v49  ;;  %v2707_v18 = vmul.f32 %v5368_v16, %v2703_v63  ;;  %v2644_v16 = vmul.f32 0.5, %v6791_v45 }
0x1223   :  { %v2702_v36 = vadd.f32 0.2548296, %v2698_v40 }
0x1224   :  { %v2737_v51 = vsub.f32 0.0, %v2729_v9  ;;  %v2728_v27 = vsub.f32 1.0, %v2724_v53  ;;  %v2727_v44 = vmul.f32 %v5376_v10, %v2707_v18 }
0x1225   :  { %v2706_v48 = vmul.f32 %v5370_v30, %v2702_v36  ;;  %v2913_v36 = vld [vmem:[#allocation9] sm:$0xff] }
0x1226   :  { %v2741_v57 = vsel %vm2733_vm7, %v2737_v51, %v2729_v9  ;;  %v2736_v62 = vsub.f32 0.0, %v2728_v27  ;;  %v2731_v21 = vsub.f32 1.0, %v2727_v44  ;;  %5014 = vmatprep.mubr.msk.f32.mxu0 %vm514_vm1, %v2913_v36  ;;  %v3062_v36 = vld [vmem:[%s7108_s25 + $0x100] sm:$0xff] }
0x1227   :  { %v2726_v39 = vmul.f32 %v5378_v32, %v2706_v48  ;;  %v2745_v6 = vadd.f32 1.0, %v2741_v57 }
0x1228   :  { %v2740_v8 = vsel %vm2732_vm8, %v2736_v62, %v2728_v27  ;;  %v2739_v15 = vsub.f32 0.0, %v2731_v21 }
0x1229   :  { %v2744_v28 = vadd.f32 1.0, %v2740_v8  ;;  %v2730_v47 = vsub.f32 1.0, %v2726_v39  ;;  %v2749_v29 = vmul.f32 %v2745_v6, %v2645_v25 }
0x122a   :  { %v2743_v2 = vsel %vm2735_vm9, %v2739_v15, %v2731_v21 }
0x122b   :  { %v2748_v54 = vmul.f32 %v2744_v28, %v2644_v16  ;;  %v2738_v30 = vsub.f32 0.0, %v2730_v47  ;;  %v2747_v34 = vadd.f32 1.0, %v2743_v2  ;;  %v5441_v2 = vld [vmem:[%s7106_s28] ss:$0 sm:$0xff] }
0x122d   :  { %v2742_v35 = vsel %vm2734_vm10, %v2738_v30, %v2730_v47  ;;  %5000 = vmatprep.mubr.msk.f32.mxu1 %vm1553_vm5, %v2748_v54  ;;  %v2751_v24 = vmul.f32 %v2747_v34, %v2647_v17  ;;  %v5442_v34 = vld [vmem:[%s7107_s1] ss:$0 sm:$0xff] }
0x122e   :  { %v2746_v45 = vadd.f32 1.0, %v2742_v35  ;;  %5001 = vmatmul.mubr.msk.f32.vlgmr.msra.gmra.mxu1 %vm1553_vm5, %v2749_v29 }
0x1230   :  { %v2750_v5 = vmul.f32 %v2746_v45, %v2646_v58 }
0x1232   :  { %5003 = vmatprep.mubr.msk.f32.mxu1 %vm1553_vm5, %v2750_v5 }
0x1233   :  { %5004 = vmatmul.mubr.msk.f32.gmra.mxu1 %vm1553_vm5, %v2751_v24 }
0x12ee   :  { %v5002_v42 = vpop.f32.mrf.mxu1 }
0x12ef   :  { %v2836_v1 = vadd.f32 %v5440_v50, %v5002_v42 }
0x12f0   :  { %v2830_v22 = vpop.f32.mrf.mxu1 }
0x12f1   :  { %v2831_v7 = vadd.f32 %v5440_v50, %v2830_v22  ;;  %v2850_v41 = vadd.f32 %v2836_v1, %v6763_v55  ;;  %v2914_v1 = vld [vmem:[#allocation9 + $0x8] sm:$0xff] }
0x12f3   :  { %v5005_v23 = vpop.f32.mrf.mxu1  ;;  %v2849_v11 = vadd.f32 %v2831_v7, %v6761_v59  ;;  %v2856_v31 = vsel %vm514_vm1, %v2850_v41, 0.0  ;;  %v3091_v7 = vld [vmem:[%s7108_s25 + $0x1e8] sm:$0xff] }
0x12f4   :  { %v2846_v4 = vadd.f32 %v5440_v50, %v5005_v23  ;;  %3094 = vmatprep.subr.mxu1 %v3091_v7  ;;  %v5743_v7 = vmov 0.0  }
0x12f5   :  { %v2840_v26 = vpop.f32.mrf.mxu1  ;;  %v2853_v19 = vsel %vm514_vm1, %v2849_v11, 0.0  ;;  %3158 = vmatprep.mubr.f32.mxu1 %v5743_v7 }
0x12f6   :  { %v2852_v60 = vadd.f32 %v2846_v4, %v6772_v3  ;;  %v2841_v14 = vadd.f32 %v5440_v50, %v2840_v26  ;;  %v2915_v4 = vld [vmem:[#allocation9 + $0x10] sm:$0xff]  ;;  %v2916_v26 = vld [vmem:[#allocation9 + $0x18] sm:$0xff] }
0x12f8   :  { %v2851_v33 = vadd.f32 %v2841_v14, %v6769_v43  ;;  %v2862_v12 = vsel %vm514_vm1, %v2852_v60, 0.0  ;;  %v3090_v14 = vld [vmem:[%s7108_s25 + $0x1e0] sm:$0xff] }
0x12f9   :  { %2863 = vadd.xlane.f32.xlu1 %v2862_v12  ;;  %v3089_v12 = vld [vmem:[%s7108_s25 + $0x1d8] sm:$0xff]  ;;  %3095 = vmatpush1.msra.mxu1 %v3090_v14 }
0x12fa   :  { %v2859_v38 = vsel %vm514_vm1, %v2851_v33, 0.0 }
0x12fb   :  { %2860 = vadd.xlane.f32.xlu0 %v2859_v38  ;;  %v3088_v38 = vld [vmem:[%s7108_s25 + $0x1d0] sm:$0xff] }
0x12fd   :  { %2857 = vadd.xlane.f32.xlu1 %v2856_v31  ;;  %v3083_v31 = vld [vmem:[%s7108_s25 + $0x1a8] sm:$0xff] }
0x12ff   :  { %2854 = vadd.xlane.f32.xlu0 %v2853_v19  ;;  %v3085_v19 = vld [vmem:[%s7108_s25 + $0x1b8] sm:$0xff] }
0x1382   :  { %v2864_v3 = vpop.xlane.xlu1 %2863 }
0x1383   :  { %v2868_v46 = vmul.f32 0.03125, %v2864_v3  ;;  %v3082_v3 = vld [vmem:[%s7108_s25 + $0x1a0] sm:$0xff] }
0x1384   :  { %v2861_v61 = vpop.xlane.xlu0 %2860 }
0x1385   :  { %v2872_v55 = vsub.f32 %v2852_v60, %v2868_v46  ;;  %v2867_v13 = vmul.f32 0.03125, %v2861_v61  ;;  %v3093_v60 = vld [vmem:[%s7108_s25 + $0x1f8] sm:$0xff]  ;;  %v3084_v46 = vld [vmem:[%s7108_s25 + $0x1b0] sm:$0xff]  ;;  %v3079_v61 = vld [vmem:[%s7108_s25 + $0x188] sm:$0xff] }
0x1386   :  { %v2858_v43 = vpop.xlane.xlu1 %2857 }
0x1387   :  { %v2871_v56 = vsub.f32 %v2851_v33, %v2867_v13  ;;  %v2866_v0 = vmul.f32 0.03125, %v2858_v43  ;;  %v2876_v20 = vmul.f32 %v2872_v55, %v2872_v55  ;;  %v3087_v33 = vld [vmem:[%s7108_s25 + $0x1c8] sm:$0xff]  ;;  %v3078_v13 = vld [vmem:[%s7108_s25 + $0x180] sm:$0xff]  ;;  %v3080_v43 = vld [vmem:[%s7108_s25 + $0x190] sm:$0xff] }
0x1388   :  { %v2855_v52 = vpop.xlane.xlu0 %2854  ;;  %3096 = vmatprep.subr.mxu1 %v3087_v33 }
0x1389   :  { %v2870_v59 = vsub.f32 %v2850_v41, %v2866_v0  ;;  %v2865_v49 = vmul.f32 0.03125, %v2855_v52  ;;  %v2886_v63 = vsel %vm514_vm1, %v2876_v20, 0.0  ;;  %v2875_v37 = vmul.f32 %v2871_v56, %v2871_v56  ;;  %v3092_v41 = vld [vmem:[%s7108_s25 + $0x1f0] sm:$0xff]  ;;  %v3077_v0 = vld [vmem:[%s7108_s25 + $0x178] sm:$0xff]  ;;  %v3074_v20 = vld [vmem:[%s7108_s25 + $0x160] sm:$0xff] }
0x138a   :  { %2887 = vadd.xlane.f32.xlu1 %v2886_v63  ;;  %v3076_v52 = vld [vmem:[%s7108_s25 + $0x170] sm:$0xff]  ;;  %v3070_v63 = vld [vmem:[%s7108_s25 + $0x140] sm:$0xff] }
0x138b   :  { %v2869_v9 = vsub.f32 %v2849_v11, %v2865_v49  ;;  %v2883_v40 = vsel %vm514_vm1, %v2875_v37, 0.0  ;;  %v2874_v53 = vmul.f32 %v2870_v59, %v2870_v59  ;;  %v3086_v11 = vld [vmem:[%s7108_s25 + $0x1c0] sm:$0xff]  ;;  %v3073_v49 = vld [vmem:[%s7108_s25 + $0x158] sm:$0xff]  ;;  %v3072_v37 = vld [vmem:[%s7108_s25 + $0x150] sm:$0xff] }
0x138c   :  { %2884 = vadd.xlane.f32.xlu0 %v2883_v40  ;;  %3097 = vmatpush1.msra.mxu1 %v3086_v11  ;;  %v3069_v40 = vld [vmem:[%s7108_s25 + $0x138] sm:$0xff] }
0x138d   :  { %v2880_v18 = vsel %vm514_vm1, %v2874_v53, 0.0  ;;  %v2873_v10 = vmul.f32 %v2869_v9, %v2869_v9  ;;  %3098 = vmatprep.subr.mxu1 %v3083_v31  ;;  %v3066_v53 = vld [vmem:[%s7108_s25 + $0x120] sm:$0xff] }
0x138e   :  { %2881 = vadd.xlane.f32.xlu1 %v2880_v18  ;;  %3099 = vmatpush1.msra.mxu1 %v3082_v3  ;;  %v3068_v18 = vld [vmem:[%s7108_s25 + $0x130] sm:$0xff] }
0x138f   :  { %v2877_v51 = vsel %vm514_vm1, %v2873_v10, 0.0  ;;  %3100 = vmatprep.subr.mxu1 %v3079_v61  ;;  %v3063_v10 = vld [vmem:[%s7108_s25 + $0x108] sm:$0xff] }
0x1390   :  { %2878 = vadd.xlane.f32.xlu0 %v2877_v51  ;;  %3101 = vmatpush1.msra.mxu1 %v3078_v13  ;;  %v3065_v51 = vld [vmem:[%s7108_s25 + $0x118] sm:$0xff]  ;;  %v3389_v61 = vld [vmem:[%s7109_s2 + $0x1e8] sm:$0xff] }
0x1391   :  { %v3385_v13 = vld [vmem:[%s7109_s2 + $0x1c8] sm:$0xff] }
0x1413   :  { %v2888_v27 = vpop.xlane.xlu1 %2887 }
0x1414   :  { %v2892_v44 = vmul.f32 0.03125, %v2888_v27  ;;  %v3064_v27 = vld [vmem:[%s7108_s25 + $0x110] sm:$0xff] }
0x1415   :  { %v2885_v57 = vpop.xlane.xlu0 %2884 }
0x1416   :  { %v2896_v48 = vadd.f32 1e-05, %v2892_v44  ;;  %v2891_v32 = vmul.f32 0.03125, %v2885_v57  ;;  %v3059_v44 = vld [vmem:[%s7108_s25 + $0xe8] sm:$0xff]  ;;  %v3061_v57 = vld [vmem:[%s7108_s25 + $0xf8] sm:$0xff] }
0x1417   :  { %v2882_v62 = vpop.xlane.xlu1 %2881 }
0x1418   :  { %5379 = vrsqrt.f32 %v2896_v48  ;;  %v2895_v21 = vadd.f32 1e-05, %v2891_v32  ;;  %v2890_v39 = vmul.f32 0.03125, %v2882_v62  ;;  %v3058_v48 = vld [vmem:[%s7108_s25 + $0xe0] sm:$0xff]  ;;  %v3060_v32 = vld [vmem:[%s7108_s25 + $0xf0] sm:$0xff]  ;;  %v3055_v62 = vld [vmem:[%s7108_s25 + $0xc8] sm:$0xff] }
0x1419   :  { %v2879_v6 = vpop.xlane.xlu0 %2878 }
0x141a   :  { %5381 = vrsqrt.f32 %v2895_v21  ;;  %v2894_v8 = vadd.f32 1e-05, %v2890_v39  ;;  %v2889_v15 = vmul.f32 0.03125, %v2879_v6  ;;  %v3057_v21 = vld [vmem:[%s7108_s25 + $0xd8] sm:$0xff]  ;;  %v3054_v39 = vld [vmem:[%s7108_s25 + $0xc0] sm:$0xff]  ;;  %v3056_v6 = vld [vmem:[%s7108_s25 + $0xd0] sm:$0xff] }
0x141c   :  { %5383 = vrsqrt.f32 %v2894_v8  ;;  %v2893_v16 = vadd.f32 1e-05, %v2889_v15  ;;  %v3051_v8 = vld [vmem:[%s7108_s25 + $0xa8] sm:$0xff]  ;;  %v3053_v15 = vld [vmem:[%s7108_s25 + $0xb8] sm:$0xff] }
0x141e   :  { %5385 = vrsqrt.f32 %v2893_v16  ;;  %v3050_v16 = vld [vmem:[%s7108_s25 + $0xa0] sm:$0xff] }
0x1425   :  { %v5380_v28 = vpop.eup %5379 }
0x1426   :  { %v2904_v47 = vmul.f32 %v5380_v28, %v2872_v55  ;;  %v3081_v55 = vld [vmem:[%s7108_s25 + $0x198] sm:$0xff]  ;;  %v3052_v28 = vld [vmem:[%s7108_s25 + $0xb0] sm:$0xff] }
0x1427   :  { %v5382_v25 = vpop.eup %5381 }
0x1428   :  { %v2908_v54 = vmul.f32 %v5441_v2, %v2904_v47  ;;  %v2903_v30 = vmul.f32 %v5382_v25, %v2871_v56  ;;  %v3075_v56 = vld [vmem:[%s7108_s25 + $0x168] sm:$0xff]  ;;  %v3049_v25 = vld [vmem:[%s7108_s25 + $0x98] sm:$0xff] }
0x1429   :  { %v5384_v29 = vpop.eup %5383  ;;  %3102 = vmatprep.subr.mxu1 %v3075_v56  ;;  %v3047_v47 = vld [vmem:[%s7108_s25 + $0x88] sm:$0xff] }
0x142a   :  { %v2912_v35 = vadd.f32 %v5442_v34, %v2908_v54  ;;  %v2907_v58 = vmul.f32 %v5441_v2, %v2903_v30  ;;  %v2902_v45 = vmul.f32 %v5384_v29, %v2870_v59  ;;  %v3071_v59 = vld [vmem:[%s7108_s25 + $0x148] sm:$0xff]  ;;  %3103 = vmatpush1.msra.mxu1 %v3074_v20  ;;  %v3048_v54 = vld [vmem:[%s7108_s25 + $0x90] sm:$0xff]  ;;  %v3045_v29 = vld [vmem:[%s7108_s25 + $0x78] sm:$0xff] }
0x142b   :  { %v5386_v17 = vpop.eup %5385  ;;  %3104 = vmatprep.subr.mxu1 %v3071_v59  ;;  %v3043_v30 = vld [vmem:[%s7108_s25 + $0x68] sm:$0xff] }
0x142c   :  { %5006 = vmatprep.subr.mxu0 %v2912_v35  ;;  %v2911_v5 = vadd.f32 %v5442_v34, %v2907_v58  ;;  %v2906_v24 = vmul.f32 %v5441_v2, %v2902_v45  ;;  %v2901_v42 = vmul.f32 %v5386_v17, %v2869_v9  ;;  %v3067_v9 = vld [vmem:[%s7108_s25 + $0x128] sm:$0xff]  ;;  %3105 = vmatpush1.msra.mxu1 %v3070_v63  ;;  %v3041_v45 = vld [vmem:[%s7108_s25 + $0x58] sm:$0xff]  ;;  %v3038_v17 = vld [vmem:[%s7108_s25 + $0x40] sm:$0xff] }
0x142d   :  { %5007 = vmatpush3.msra.mxu0 %v2912_v35  ;;  %3106 = vmatprep.subr.mxu1 %v3067_v9  ;;  %v3044_v35 = vld [vmem:[%s7108_s25 + $0x70] sm:$0xff]  ;;  %v3039_v58 = vld [vmem:[%s7108_s25 + $0x48] sm:$0xff] }
0x142e   :  { %5008 = vmatprep.subr.mxu0 %v2911_v5  ;;  %v2910_v22 = vadd.f32 %v5442_v34, %v2906_v24  ;;  %v2905_v23 = vmul.f32 %v5441_v2, %v2901_v42  ;;  %3107 = vmatpush1.msra.mxu1 %v3066_v53  ;;  %v3046_v2 = vld [vmem:[%s7108_s25 + $0x80] sm:$0xff]  ;;  %v3035_v24 = vld [vmem:[%s7108_s25 + $0x28] sm:$0xff]  ;;  %v3037_v42 = vld [vmem:[%s7108_s25 + $0x38] sm:$0xff] }
0x142f   :  { %5009 = vmatpush3.msra.mxu0 %v2911_v5  ;;  %3108 = vmatprep.subr.mxu1 %v3063_v10  ;;  %v3040_v5 = vld [vmem:[%s7108_s25 + $0x50] sm:$0xff]  ;;  %v3381_v56 = vld [vmem:[%s7109_s2 + $0x1a8] sm:$0xff] }
0x1430   :  { %5010 = vmatprep.subr.mxu0 %v2910_v22  ;;  %v2909_v50 = vadd.f32 %v5442_v34, %v2905_v23  ;;  %3109 = vmatpush1.msra.mxu1 %v3062_v36  ;;  %v3042_v34 = vld [vmem:[%s7108_s25 + $0x60] sm:$0xff]  ;;  %v3036_v23 = vld [vmem:[%s7108_s25 + $0x30] sm:$0xff]  ;;  %v3377_v20 = vld [vmem:[%s7109_s2 + $0x188] sm:$0xff] }
0x1431   :  { %5011 = vmatpush3.msra.mxu0 %v2910_v22  ;;  %3110 = vmatprep.subr.mxu1 %v3059_v44  ;;  %v3034_v22 = vld [vmem:[%s7108_s25 + $0x20] sm:$0xff]  ;;  %v3373_v59 = vld [vmem:[%s7109_s2 + $0x168] sm:$0xff] }
0x1432   :  { %5012 = vmatprep.subr.mxu0 %v2909_v50  ;;  %3111 = vmatpush1.msra.mxu1 %v3058_v48  ;;  %v3369_v63 = vld [vmem:[%s7109_s2 + $0x148] sm:$0xff]  ;;  %v3391_v48 = vld [vmem:[%s7109_s2 + $0x1f8] sm:$0xff] }
0x1433   :  { %5013 = vmatpush3.msra.mxu0 %v2909_v50  ;;  %3112 = vmatprep.subr.mxu1 %v3055_v62  ;;  %v3031_v50 = vld [vmem:[%s7108_s25 + $0x8] sm:$0xff]  ;;  %v3387_v62 = vld [vmem:[%s7109_s2 + $0x1d8] sm:$0xff] }
0x1434   :  { %5015 = vmatmul.mubr.msk.f32.vlgmr.msra.gmra.mxu0 %vm514_vm1, %v2914_v1  ;;  %3165 = vmatprep.subr.mxu0 %v3093_v60  ;;  %v3033_v1 = vld [vmem:[%s7108_s25 + $0x18] sm:$0xff]  ;;  %v3365_v9 = vld [vmem:[%s7109_s2 + $0x128] sm:$0xff] }
0x1435   :  { %5017 = vmatprep.mubr.msk.f32.mxu0 %vm514_vm1, %v2915_v4  ;;  %3166 = vmatpush1.msra.mxu0 %v3092_v41  ;;  %v3030_v4 = vld [vmem:[%s7108_s25] sm:$0xff]  ;;  %v3361_v53 = vld [vmem:[%s7109_s2 + $0x108] sm:$0xff] }
0x1436   :  { %3167 = vmatprep.subr.mxu0 %v3089_v12  ;;  %3113 = vmatpush1.msra.mxu1 %v3054_v39  ;;  %v3357_v10 = vld [vmem:[%s7109_s2 + $0xe8] sm:$0xff]  ;;  %v3383_v39 = vld [vmem:[%s7109_s2 + $0x1b8] sm:$0xff] }
0x1437   :  { %3168 = vmatpush1.msra.mxu0 %v3088_v38  ;;  %3114 = vmatprep.subr.mxu1 %v3051_v8  ;;  %v3379_v8 = vld [vmem:[%s7109_s2 + $0x198] sm:$0xff] }
0x1438   :  { %5018 = vmatmul.mubr.msk.f32.gmra.mxu0 %vm514_vm1, %v2916_v26  ;;  %3169 = vmatprep.subr.mxu0 %v3085_v19  ;;  %v3032_v26 = vld [vmem:[%s7108_s25 + $0x10] sm:$0xff] }
0x1439   :  { %3170 = vmatpush1.msra.mxu0 %v3084_v46  ;;  %3115 = vmatpush1.msra.mxu1 %v3050_v16  ;;  %v3236_v46 = vld [vmem:[#allocation10] sm:$0xff]  ;;  %v3375_v16 = vld [vmem:[%s7109_s2 + $0x178] sm:$0xff] }
0x143a   :  { %3171 = vmatprep.subr.mxu0 %v3081_v55  ;;  %3116 = vmatprep.subr.mxu1 %v3047_v47  ;;  %v3388_v55 = vld [vmem:[%s7109_s2 + $0x1e0] sm:$0xff]  ;;  %v3371_v47 = vld [vmem:[%s7109_s2 + $0x158] sm:$0xff] }
0x143b   :  { %3172 = vmatpush1.msra.mxu0 %v3080_v43  ;;  %3117 = vmatpush1.msra.mxu1 %v3046_v2  ;;  %v3384_v43 = vld [vmem:[%s7109_s2 + $0x1c0] sm:$0xff]  ;;  %v3367_v2 = vld [vmem:[%s7109_s2 + $0x138] sm:$0xff] }
0x143c   :  { %3173 = vmatprep.subr.mxu0 %v3077_v0  ;;  %3118 = vmatprep.subr.mxu1 %v3043_v30  ;;  %v3380_v0 = vld [vmem:[%s7109_s2 + $0x1a0] sm:$0xff]  ;;  %v3363_v30 = vld [vmem:[%s7109_s2 + $0x118] sm:$0xff] }
0x143d   :  { %3174 = vmatpush1.msra.mxu0 %v3076_v52  ;;  %3119 = vmatpush1.msra.mxu1 %v3042_v34  ;;  %v3376_v52 = vld [vmem:[%s7109_s2 + $0x180] sm:$0xff]  ;;  %v3359_v34 = vld [vmem:[%s7109_s2 + $0xf8] sm:$0xff] }
0x143e   :  { %3175 = vmatprep.subr.mxu0 %v3073_v49  ;;  %3120 = vmatprep.subr.mxu1 %v3039_v58  ;;  %v3372_v49 = vld [vmem:[%s7109_s2 + $0x160] sm:$0xff]  ;;  %v3355_v58 = vld [vmem:[%s7109_s2 + $0xd8] sm:$0xff] }
0x143f   :  { %3176 = vmatpush1.msra.mxu0 %v3072_v37  ;;  %3121 = vmatpush1.msra.mxu1 %v3038_v17  ;;  %v3368_v37 = vld [vmem:[%s7109_s2 + $0x140] sm:$0xff]  ;;  %v3351_v17 = vld [vmem:[%s7109_s2 + $0xb8] sm:$0xff] }
0x1440   :  { %3177 = vmatprep.subr.mxu0 %v3069_v40  ;;  %3122 = vmatprep.subr.mxu1 %v3035_v24  ;;  %v3364_v40 = vld [vmem:[%s7109_s2 + $0x120] sm:$0xff]  ;;  %v3347_v24 = vld [vmem:[%s7109_s2 + $0x98] sm:$0xff] }
0x1441   :  { %3178 = vmatpush1.msra.mxu0 %v3068_v18  ;;  %3123 = vmatpush1.msra.mxu1 %v3034_v22  ;;  %v3360_v18 = vld [vmem:[%s7109_s2 + $0x100] sm:$0xff]  ;;  %v3343_v22 = vld [vmem:[%s7109_s2 + $0x78] sm:$0xff] }
0x1442   :  { %3179 = vmatprep.subr.mxu0 %v3065_v51  ;;  %3124 = vmatprep.subr.mxu1 %v3031_v50  ;;  %v3353_v50 = vld [vmem:[%s7109_s2 + $0xc8] sm:$0xff] }
0x1443   :  { %3180 = vmatpush1.msra.mxu0 %v3064_v27  ;;  %3125 = vmatpush1.msra.mxu1 %v3030_v4  ;;  %v3349_v4 = vld [vmem:[%s7109_s2 + $0xa8] sm:$0xff] }
0x1444   :  { %3181 = vmatprep.subr.mxu0 %v3061_v57  ;;  %3229 = vmatprep.mubr.f32.mxu0 %v5743_v7  ;;  %v3237_v57 = vld [vmem:[#allocation10 + $0x8] sm:$0xff] }
0x1445   :  { %3182 = vmatpush1.msra.mxu0 %v3060_v32  ;;  %v3390_v32 = vld [vmem:[%s7109_s2 + $0x1f0] sm:$0xff] }
0x1446   :  { %3183 = vmatprep.subr.mxu0 %v3057_v21  ;;  %v3386_v21 = vld [vmem:[%s7109_s2 + $0x1d0] sm:$0xff] }
0x1447   :  { %3184 = vmatpush1.msra.mxu0 %v3056_v6  ;;  %v3382_v6 = vld [vmem:[%s7109_s2 + $0x1b0] sm:$0xff] }
0x1448   :  { %3185 = vmatprep.subr.mxu0 %v3053_v15  ;;  %v3378_v15 = vld [vmem:[%s7109_s2 + $0x190] sm:$0xff] }
0x1449   :  { %3186 = vmatpush1.msra.mxu0 %v3052_v28  ;;  %v3374_v28 = vld [vmem:[%s7109_s2 + $0x170] sm:$0xff] }
0x144a   :  { %3187 = vmatprep.subr.mxu0 %v3049_v25  ;;  %v3370_v25 = vld [vmem:[%s7109_s2 + $0x150] sm:$0xff] }
0x144b   :  { %3188 = vmatpush1.msra.mxu0 %v3048_v54  ;;  %v3366_v54 = vld [vmem:[%s7109_s2 + $0x130] sm:$0xff] }
0x144c   :  { %3189 = vmatprep.subr.mxu0 %v3045_v29  ;;  %v3362_v29 = vld [vmem:[%s7109_s2 + $0x110] sm:$0xff] }
0x144d   :  { %3190 = vmatpush1.msra.mxu0 %v3044_v35  ;;  %v3358_v35 = vld [vmem:[%s7109_s2 + $0xf0] sm:$0xff] }
0x144e   :  { %3191 = vmatprep.subr.mxu0 %v3041_v45  ;;  %v3354_v45 = vld [vmem:[%s7109_s2 + $0xd0] sm:$0xff] }
0x144f   :  { %3192 = vmatpush1.msra.mxu0 %v3040_v5  ;;  %v3350_v5 = vld [vmem:[%s7109_s2 + $0xb0] sm:$0xff] }
0x1450   :  { %3193 = vmatprep.subr.mxu0 %v3037_v42  ;;  %v3346_v42 = vld [vmem:[%s7109_s2 + $0x90] sm:$0xff] }
0x1451   :  { %3194 = vmatpush1.msra.mxu0 %v3036_v23  ;;  %v3356_v23 = vld [vmem:[%s7109_s2 + $0xe0] sm:$0xff] }
0x1452   :  { %3195 = vmatprep.subr.mxu0 %v3033_v1  ;;  %v3352_v1 = vld [vmem:[%s7109_s2 + $0xc0] sm:$0xff] }
0x1453   :  { %3196 = vmatpush1.msra.mxu0 %v3032_v26  ;;  %v3348_v26 = vld [vmem:[%s7109_s2 + $0xa0] sm:$0xff] }
0x1454   :  { %3392 = vmatprep.subr.mxu0 %v3389_v61  ;;  %v3334_v61 = vld [vmem:[%s7109_s2 + $0x30] sm:$0xff] }
0x14f4   :  { %v5016_v60 = vpop.f32.mrf.mxu0 }
0x14f5   :  { %3015 = vrot.lane.b32.xlu1 %v5016_v60, %s5744_s3  ;;  %v3345_v60 = vld [vmem:[%s7109_s2 + $0x88] sm:$0xff] }
0x14f6   :  { %v2995_v14 = vpop.f32.mrf.mxu0 }
0x14f8   :  { %v5019_v41 = vpop.f32.mrf.mxu0 }
0x14f9   :  { %3023 = vrot.lane.b32.xlu1 %v5019_v41, %s5741_s5  ;;  %v3341_v41 = vld [vmem:[%s7109_s2 + $0x68] sm:$0xff] }
0x14fa   :  { %v3005_v33 = vpop.f32.mrf.mxu0 }
0x14fb   :  { %3019 = vrot.lane.b32.xlu0 %v3005_v33, %s5742_s17  ;;  %v3342_v33 = vld [vmem:[%s7109_s2 + $0x70] sm:$0xff] }
0x1567   :  { %v3016_v12 = vpop.permute.xlu1 %3015 }
0x1568   :  { %v3026_v11 = vsel %vm514_vm1, %v2995_v14, %v3016_v12  ;;  %v3344_v14 = vld [vmem:[%s7109_s2 + $0x80] sm:$0xff] }
0x1569   :  { %v3340_v12 = vld [vmem:[%s7109_s2 + $0x60] sm:$0xff] }
0x156b   :  { %v3024_v19 = vpop.permute.xlu1 %3023 }
0x156d   :  { %v3020_v38 = vpop.permute.xlu0 %3019 }
0x156e   :  { %v3027_v31 = vsel %vm1553_vm5, %v3026_v11, %v3020_v38  ;;  %v3339_v11 = vld [vmem:[%s7109_s2 + $0x58] sm:$0xff]  ;;  %v3337_v38 = vld [vmem:[%s7109_s2 + $0x48] sm:$0xff] }
0x156f   :  { %v3029_v3 = vsel %vm3028_vm11, %v3027_v31, %v3024_v19  ;;  %v3338_v31 = vld [vmem:[%s7109_s2 + $0x50] sm:$0xff]  ;;  %v3336_v19 = vld [vmem:[%s7109_s2 + $0x40] sm:$0xff] }
0x1570   :  { %3159 = vmatmul.mubr.f32.vlgmr.msra.gmra.mxu1 %v3029_v3  ;;  %3230 = vmatmul.mubr.f32.vlgmr.msra.gmra.mxu0 %v3029_v3  ;;  %v3335_v3 = vld [vmem:[%s7109_s2 + $0x38] sm:$0xff] }
0x1571   :  { %3456 = vmatprep.mubr.f32.mxu0 %v5743_v7  ;;  %5028 = vmatprep.mubr.msk.f32.mxu1 %vm514_vm1, %v3236_v46  ;;  %v3333_v46 = vld [vmem:[%s7109_s2 + $0x28] sm:$0xff] }
0x1572   :  { %3393 = vmatpush1.msra.mxu0 %v3388_v55  ;;  %v3332_v55 = vld [vmem:[%s7109_s2 + $0x20] sm:$0xff] }
0x1573   :  { %3394 = vmatprep.subr.mxu0 %v3385_v13  ;;  %v3331_v13 = vld [vmem:[%s7109_s2 + $0x18] sm:$0xff] }
0x1574   :  { %3395 = vmatpush1.msra.mxu0 %v3384_v43  ;;  %v3329_v43 = vld [vmem:[%s7109_s2 + $0x8] sm:$0xff] }
0x1575   :  { %3396 = vmatprep.subr.mxu0 %v3381_v56  ;;  %v3330_v56 = vld [vmem:[%s7109_s2 + $0x10] sm:$0xff] }
0x1576   :  { %3397 = vmatpush1.msra.mxu0 %v3380_v0  ;;  %v3328_v0 = vld [vmem:[%s7109_s2] sm:$0xff] }
0x1577   :  { %3398 = vmatprep.subr.mxu0 %v3377_v20 }
0x1578   :  { %3399 = vmatpush1.msra.mxu0 %v3376_v52  ;;  %v4327_v52 = vld [vmem:[#allocation12] ss:$0 sm:$0xff] }
0x1579   :  { %3400 = vmatprep.subr.mxu0 %v3373_v59 }
0x157a   :  { %3401 = vmatpush1.msra.mxu0 %v3372_v49 }
0x157b   :  { %3402 = vmatprep.subr.mxu0 %v3369_v63 }
0x157c   :  { %3403 = vmatpush1.msra.mxu0 %v3368_v37 }
0x157d   :  { %3404 = vmatprep.subr.mxu0 %v3365_v9 }
0x157e   :  { %3405 = vmatpush1.msra.mxu0 %v3364_v40  ;;  %v3546_v40 = vld [vmem:[#allocation13] sm:$0xff] }
0x157f   :  { %3406 = vmatprep.subr.mxu0 %v3361_v53  ;;  %v3689_v53 = vld [vmem:[%s7110_s7 + $0xf8] sm:$0xff] }
0x1580   :  { %3407 = vmatpush1.msra.mxu0 %v3360_v18  ;;  %v3688_v18 = vld [vmem:[%s7110_s7 + $0xf0] sm:$0xff] }
0x1581   :  { %3408 = vmatprep.subr.mxu0 %v3357_v10  ;;  %v3687_v10 = vld [vmem:[%s7110_s7 + $0xe8] sm:$0xff] }
0x1582   :  { %3409 = vmatpush1.msra.mxu0 %v3356_v23  ;;  %v3547_v23 = vld [vmem:[#allocation13 + $0x8] sm:$0xff] }
0x1583   :  { %3410 = vmatprep.subr.mxu0 %v3353_v50  ;;  %v3548_v50 = vld [vmem:[#allocation13 + $0x10] sm:$0xff] }
0x1584   :  { %3411 = vmatpush1.msra.mxu0 %v3352_v1  ;;  %v3549_v1 = vld [vmem:[#allocation13 + $0x18] sm:$0xff] }
0x1585   :  { %3412 = vmatprep.subr.mxu0 %v3349_v4  ;;  %v3664_v4 = vld [vmem:[%s7110_s7 + $0x30] sm:$0xff] }
0x1586   :  { %3413 = vmatpush1.msra.mxu0 %v3348_v26  ;;  %v3663_v26 = vld [vmem:[%s7110_s7 + $0x28] sm:$0xff] }
0x1587   :  { %3414 = vmatprep.subr.mxu0 %v3345_v60  ;;  %v3662_v60 = vld [vmem:[%s7110_s7 + $0x20] sm:$0xff] }
0x1588   :  { %3415 = vmatpush1.msra.mxu0 %v3344_v14  ;;  %v3661_v14 = vld [vmem:[%s7110_s7 + $0x18] sm:$0xff] }
0x1589   :  { %3416 = vmatprep.subr.mxu0 %v3341_v41  ;;  %v3660_v41 = vld [vmem:[%s7110_s7 + $0x10] sm:$0xff] }
0x158a   :  { %3417 = vmatpush1.msra.mxu0 %v3340_v12  ;;  %v3658_v12 = vld [vmem:[%s7110_s7] sm:$0xff] }
0x158b   :  { %3418 = vmatprep.subr.mxu0 %v3337_v38  ;;  %v4330_v38 = vld [vmem:[#allocation15] ss:$0 sm:$0xff] }
0x158c   :  { %3419 = vmatpush1.msra.mxu0 %v3336_v19 }
0x158d   :  { %3420 = vmatprep.subr.mxu0 %v3333_v46 }
0x158e   :  { %3421 = vmatpush1.msra.mxu0 %v3332_v55 }
0x158f   :  { %3422 = vmatprep.subr.mxu0 %v3329_v43 }
0x1590   :  { %3423 = vmatpush1.msra.mxu0 %v3328_v0 }
0x1630   :  { %v3231_v51 = vpop.f32.mrf.mxu0  ;;  %v3160_v36 = vpop.f32.mrf.mxu1 }
0x1632   :  { %v3233_v27 = vpop.f32.mrf.mxu0  ;;  %v3162_v44 = vpop.f32.mrf.mxu1 }
0x1633   :  { %5020 = vmatprep.subr.mxu1 %v3233_v27 }
0x1634   :  { %5021 = vmatpush3.msra.mxu1 %v3233_v27  ;;  %v3684_v27 = vld [vmem:[%s7110_s7 + $0xd0] sm:$0xff] }
0x1635   :  { %5022 = vmatprep.subr.mxu1 %v3231_v51 }
0x1636   :  { %5023 = vmatpush3.msra.mxu1 %v3231_v51  ;;  %v3686_v51 = vld [vmem:[%s7110_s7 + $0xe0] sm:$0xff] }
0x1637   :  { %5024 = vmatprep.subr.mxu1 %v3162_v44 }
0x1638   :  { %5025 = vmatpush3.msra.mxu1 %v3162_v44  ;;  %v3683_v44 = vld [vmem:[%s7110_s7 + $0xc8] sm:$0xff] }
0x1639   :  { %5026 = vmatprep.subr.mxu1 %v3160_v36 }
0x163a   :  { %5027 = vmatpush3.msra.mxu1 %v3160_v36  ;;  %v3685_v36 = vld [vmem:[%s7110_s7 + $0xd8] sm:$0xff] }
0x163b   :  { %5029 = vmatmul.mubr.msk.f32.vlgmr.msra.gmra.mxu1 %vm514_vm1, %v3237_v57  ;;  %3469 = vmatprep.subr.mxu1 %v3391_v48  ;;  %v3682_v57 = vld [vmem:[%s7110_s7 + $0xc0] sm:$0xff]  ;;  %v3681_v48 = vld [vmem:[%s7110_s7 + $0xb8] sm:$0xff] }
0x163c   :  { %3470 = vmatpush1.msra.mxu1 %v3390_v32  ;;  %3533 = vmatprep.mubr.f32.mxu1 %v5743_v7  ;;  %v3680_v32 = vld [vmem:[%s7110_s7 + $0xb0] sm:$0xff] }
0x163d   :  { %3471 = vmatprep.subr.mxu1 %v3387_v62  ;;  %v3679_v62 = vld [vmem:[%s7110_s7 + $0xa8] sm:$0xff] }
0x163e   :  { %3472 = vmatpush1.msra.mxu1 %v3386_v21  ;;  %v3678_v21 = vld [vmem:[%s7110_s7 + $0xa0] sm:$0xff] }
0x163f   :  { %3473 = vmatprep.subr.mxu1 %v3383_v39  ;;  %v3677_v39 = vld [vmem:[%s7110_s7 + $0x98] sm:$0xff] }
0x1640   :  { %3474 = vmatpush1.msra.mxu1 %v3382_v6  ;;  %v3676_v6 = vld [vmem:[%s7110_s7 + $0x90] sm:$0xff] }
0x1641   :  { %3475 = vmatprep.subr.mxu1 %v3379_v8  ;;  %v3675_v8 = vld [vmem:[%s7110_s7 + $0x88] sm:$0xff] }
0x1642   :  { %3476 = vmatpush1.msra.mxu1 %v3378_v15  ;;  %v3674_v15 = vld [vmem:[%s7110_s7 + $0x80] sm:$0xff] }
0x1643   :  { %3477 = vmatprep.subr.mxu1 %v3375_v16  ;;  %v3673_v16 = vld [vmem:[%s7110_s7 + $0x78] sm:$0xff] }
0x1644   :  { %3478 = vmatpush1.msra.mxu1 %v3374_v28  ;;  %v3672_v28 = vld [vmem:[%s7110_s7 + $0x70] sm:$0xff] }
0x1645   :  { %3479 = vmatprep.subr.mxu1 %v3371_v47  ;;  %v3671_v47 = vld [vmem:[%s7110_s7 + $0x68] sm:$0xff] }
0x1646   :  { %3480 = vmatpush1.msra.mxu1 %v3370_v25  ;;  %v3670_v25 = vld [vmem:[%s7110_s7 + $0x60] sm:$0xff] }
0x1647   :  { %3481 = vmatprep.subr.mxu1 %v3367_v2  ;;  %v3669_v2 = vld [vmem:[%s7110_s7 + $0x58] sm:$0xff] }
0x1648   :  { %3482 = vmatpush1.msra.mxu1 %v3366_v54  ;;  %v3668_v54 = vld [vmem:[%s7110_s7 + $0x50] sm:$0xff] }
0x1649   :  { %3483 = vmatprep.subr.mxu1 %v3363_v30  ;;  %v3667_v30 = vld [vmem:[%s7110_s7 + $0x48] sm:$0xff] }
0x164a   :  { %3484 = vmatpush1.msra.mxu1 %v3362_v29  ;;  %v3666_v29 = vld [vmem:[%s7110_s7 + $0x40] sm:$0xff] }
0x164b   :  { %3485 = vmatprep.subr.mxu1 %v3359_v34  ;;  %v3665_v34 = vld [vmem:[%s7110_s7 + $0x38] sm:$0xff] }
0x164c   :  { %3486 = vmatpush1.msra.mxu1 %v3358_v35 }
0x164d   :  { %3487 = vmatprep.subr.mxu1 %v3355_v58 }
0x164e   :  { %3488 = vmatpush1.msra.mxu1 %v3354_v45 }
0x164f   :  { %3489 = vmatprep.subr.mxu1 %v3351_v17 }
0x1650   :  { %3490 = vmatpush1.msra.mxu1 %v3350_v5 }
0x1651   :  { %3491 = vmatprep.subr.mxu1 %v3347_v24 }
0x1652   :  { %3492 = vmatpush1.msra.mxu1 %v3346_v42 }
0x1653   :  { %3493 = vmatprep.subr.mxu1 %v3343_v22 }
0x1654   :  { %3494 = vmatpush1.msra.mxu1 %v3342_v33  ;;  %v3659_v33 = vld [vmem:[%s7110_s7 + $0x8] sm:$0xff] }
0x1655   :  { %3495 = vmatprep.subr.mxu1 %v3339_v11 }
0x1656   :  { %3496 = vmatpush1.msra.mxu1 %v3338_v31 }
0x1657   :  { %3497 = vmatprep.subr.mxu1 %v3335_v3 }
0x1658   :  { %3498 = vmatpush1.msra.mxu1 %v3334_v61 }
0x1659   :  { %3499 = vmatprep.subr.mxu1 %v3331_v13 }
0x165a   :  { %3500 = vmatpush1.msra.mxu1 %v3330_v56 }
0x165b   :  { %3690 = vmatprep.subr.mxu1 %v3689_v53 }
0x16fb   :  { %v5030_v20 = vpop.f32.mrf.mxu1 }
0x16fc   :  { %v3323_v63 = vadd.f32 %v5030_v20, %v4327_v52 }
0x16fd   :  { %v3317_v59 = vpop.f32.mrf.mxu1 }
0x16fe   :  { %v3318_v49 = vadd.f32 %v4327_v52, %v3317_v59  ;;  %v3327_v9 = vmax.f32 %v3323_v63, 0.0 }
0x1700   :  { %v3326_v37 = vmax.f32 %v3318_v49, 0.0 }
0x1702   :  { %3534 = vmatmul.mubr.f32.vlgmr.msra.gmra.mxu1 %v3326_v37  ;;  %3457 = vmatmul.mubr.f32.vlgmr.msra.gmra.mxu0 %v3326_v37 }
0x1703   :  { %3539 = vmatprep.mubr.f32.mxu1 %v5743_v7  ;;  %3462 = vmatprep.mubr.f32.mxu0 %v5743_v7 }
0x1704   :  { %3691 = vmatpush1.msra.mxu1 %v3688_v18  ;;  %v3938_v18 = vld [vmem:[#allocation18 + $0x38] sm:$0xff] }
0x1705   :  { %3692 = vmatprep.subr.mxu1 %v3687_v10  ;;  %v3937_v10 = vld [vmem:[#allocation18 + $0x30] sm:$0xff] }
0x1706   :  { %3540 = vmatmul.mubr.f32.gmra.mxu1 %v3327_v9  ;;  %3463 = vmatmul.mubr.f32.gmra.mxu0 %v3327_v9 }
0x1707   :  { %3754 = vmatprep.mubr.f32.mxu1 %v5743_v7  ;;  %5047 = vmatprep.mubr.msk.f32.mxu0 %vm1553_vm5, %v3546_v40 }
0x1708   :  { %3693 = vmatpush1.msra.mxu1 %v3686_v51  ;;  %v3936_v51 = vld [vmem:[#allocation18 + $0x28] sm:$0xff] }
0x1709   :  { %3694 = vmatprep.subr.mxu1 %v3685_v36  ;;  %v3935_v36 = vld [vmem:[#allocation18 + $0x20] sm:$0xff] }
0x170a   :  { %3695 = vmatpush1.msra.mxu1 %v3684_v27  ;;  %v3934_v27 = vld [vmem:[#allocation18 + $0x18] sm:$0xff] }
0x170b   :  { %3696 = vmatprep.subr.mxu1 %v3683_v44 }
0x170c   :  { %3697 = vmatpush1.msra.mxu1 %v3682_v57 }
0x170d   :  { %3698 = vmatprep.subr.mxu1 %v3681_v48 }
0x170e   :  { %3699 = vmatpush1.msra.mxu1 %v3680_v32 }
0x170f   :  { %3700 = vmatprep.subr.mxu1 %v3679_v62 }
0x1710   :  { %3701 = vmatpush1.msra.mxu1 %v3678_v21 }
0x1711   :  { %3702 = vmatprep.subr.mxu1 %v3677_v39 }
0x1712   :  { %3703 = vmatpush1.msra.mxu1 %v3676_v6 }
0x1713   :  { %3704 = vmatprep.subr.mxu1 %v3675_v8  ;;  %v3812_v8 = vld [vmem:[%s7111_s14 + $0x8] sm:$0xff] }
0x1714   :  { %3705 = vmatpush1.msra.mxu1 %v3674_v15  ;;  %v3813_v15 = vld [vmem:[%s7111_s14 + $0x10] sm:$0xff] }
0x1715   :  { %3706 = vmatprep.subr.mxu1 %v3673_v16  ;;  %v3814_v16 = vld [vmem:[%s7111_s14 + $0x18] sm:$0xff] }
0x1716   :  { %3707 = vmatpush1.msra.mxu1 %v3672_v28  ;;  %v3815_v28 = vld [vmem:[%s7111_s14 + $0x20] sm:$0xff] }
0x1717   :  { %3708 = vmatprep.subr.mxu1 %v3671_v47  ;;  %v3816_v47 = vld [vmem:[%s7111_s14 + $0x28] sm:$0xff] }
0x1718   :  { %3709 = vmatpush1.msra.mxu1 %v3670_v25  ;;  %v3817_v25 = vld [vmem:[%s7111_s14 + $0x30] sm:$0xff] }
0x1719   :  { %3710 = vmatprep.subr.mxu1 %v3669_v2  ;;  %v3818_v2 = vld [vmem:[%s7111_s14 + $0x38] sm:$0xff] }
0x171a   :  { %3711 = vmatpush1.msra.mxu1 %v3668_v54  ;;  %v3933_v54 = vld [vmem:[#allocation18 + $0x10] sm:$0xff] }
0x171b   :  { %3712 = vmatprep.subr.mxu1 %v3667_v30  ;;  %v3932_v30 = vld [vmem:[#allocation18 + $0x8] sm:$0xff] }
0x171c   :  { %3713 = vmatpush1.msra.mxu1 %v3666_v29  ;;  %v3931_v29 = vld [vmem:[#allocation18] sm:$0xff] }
0x171d   :  { %3714 = vmatprep.subr.mxu1 %v3665_v34 }
0x171e   :  { %3715 = vmatpush1.msra.mxu1 %v3664_v4 }
0x171f   :  { %3716 = vmatprep.subr.mxu1 %v3663_v26 }
0x1720   :  { %3717 = vmatpush1.msra.mxu1 %v3662_v60 }
0x1721   :  { %3718 = vmatprep.subr.mxu1 %v3661_v14 }
0x1722   :  { %3719 = vmatpush1.msra.mxu1 %v3660_v41 }
0x1723   :  { %3720 = vmatprep.subr.mxu1 %v3659_v33  ;;  %v4068_v33 = vld [vmem:[#allocation19] sm:$0xff] }
0x1724   :  { %3721 = vmatpush1.msra.mxu1 %v3658_v12 }
0x1725   :  { %5097 = vmatprep.subr.mxu1 %v3938_v18 }
0x17c2   :  { %v3535_v35 = vpop.f32.mrf.mxu1  ;;  %v3458_v45 = vpop.f32.mrf.mxu0 }
0x17c4   :  { %v3537_v58 = vpop.f32.mrf.mxu1  ;;  %v3460_v24 = vpop.f32.mrf.mxu0 }
0x17c6   :  { %v3541_v17 = vpop.f32.mrf.mxu1  ;;  %v3464_v42 = vpop.f32.mrf.mxu0 }
0x17c8   :  { %v3543_v5 = vpop.f32.mrf.mxu1  ;;  %v3466_v22 = vpop.f32.mrf.mxu0 }
0x17c9   :  { %5031 = vmatprep.subr.mxu0 %v3543_v5 }
0x17ca   :  { %5032 = vmatpush3.msra.mxu0 %v3543_v5 }
0x17cb   :  { %5033 = vmatprep.subr.mxu0 %v3537_v58 }
0x17cc   :  { %5034 = vmatpush3.msra.mxu0 %v3537_v58 }
0x17cd   :  { %5035 = vmatprep.subr.mxu0 %v3541_v17 }
0x17ce   :  { %5036 = vmatpush3.msra.mxu0 %v3541_v17 }
0x17cf   :  { %5037 = vmatprep.subr.mxu0 %v3535_v35 }
0x17d0   :  { %5038 = vmatpush3.msra.mxu0 %v3535_v35  ;;  %v4335_v35 = vld [vmem:[#allocation16] ss:$0 sm:$0xff] }
0x17d1   :  { %5039 = vmatprep.subr.mxu0 %v3466_v22 }
0x17d2   :  { %5040 = vmatpush3.msra.mxu0 %v3466_v22 }
0x17d3   :  { %5041 = vmatprep.subr.mxu0 %v3460_v24 }
0x17d4   :  { %5042 = vmatpush3.msra.mxu0 %v3460_v24 }
0x17d5   :  { %5043 = vmatprep.subr.mxu0 %v3464_v42 }
0x17d6   :  { %5044 = vmatpush3.msra.mxu0 %v3464_v42 }
0x17d7   :  { %5045 = vmatprep.subr.mxu0 %v3458_v45 }
0x17d8   :  { %5046 = vmatpush3.msra.mxu0 %v3458_v45 }
0x17d9   :  { %5048 = vmatmul.mubr.msk.f32.vlgmr.msra.gmra.mxu0 %vm1553_vm5, %v3547_v23 }
0x17da   :  { %5050 = vmatprep.mubr.msk.f32.mxu0 %vm1553_vm5, %v3548_v50 }
0x17dd   :  { %5051 = vmatmul.mubr.msk.f32.gmra.mxu0 %vm1553_vm5, %v3549_v1 }
0x1899   :  { %v5049_v11 = vpop.f32.mrf.mxu0 }
0x189a   :  { %v3641_v46 = vadd.f32 %v5049_v11, %v4330_v38 }
0x189b   :  { %v3635_v31 = vpop.f32.mrf.mxu0 }
0x189c   :  { %v3636_v19 = vadd.f32 %v4330_v38, %v3635_v31  ;;  %v3655_v13 = vmax.f32 %v3641_v46, 0.0 }
0x189d   :  { %v5052_v3 = vpop.f32.mrf.mxu0 }
0x189e   :  { %v3654_v61 = vmax.f32 %v3636_v19, 0.0  ;;  %v3651_v56 = vadd.f32 %v5052_v3, %v4330_v38 }
0x189f   :  { %v3645_v55 = vpop.f32.mrf.mxu0 }
0x18a0   :  { %3755 = vmatmul.mubr.f32.vlgmr.msra.gmra.mxu1 %v3654_v61  ;;  %v3646_v43 = vadd.f32 %v4330_v38, %v3645_v55  ;;  %v3657_v20 = vmax.f32 %v3651_v56, 0.0  ;;  %v4069_v55 = vld [vmem:[#allocation19 + $0x8] sm:$0xff] }
0x18a1   :  { %3760 = vmatprep.mubr.f32.mxu1 %v5743_v7  ;;  %5098 = vmatpush3.msra.mxu1 %v3938_v18 }
0x18a2   :  { %v3656_v0 = vmax.f32 %v3646_v43, 0.0  ;;  %5099 = vmatprep.subr.mxu1 %v3937_v10  ;;  %v4071_v43 = vld [vmem:[#allocation19 + $0x18] sm:$0xff] }
0x18a3   :  { %5100 = vmatpush3.msra.mxu1 %v3937_v10 }
0x18a4   :  { %3761 = vmatmul.mubr.f32.gmra.mxu1 %v3655_v13  ;;  %5101 = vmatprep.subr.mxu1 %v3936_v51  ;;  %v4070_v13 = vld [vmem:[#allocation19 + $0x10] sm:$0xff] }
0x18a5   :  { %3766 = vmatprep.mubr.f32.mxu1 %v5743_v7  ;;  %5102 = vmatpush3.msra.mxu1 %v3936_v51 }
0x18a6   :  { %5103 = vmatprep.subr.mxu1 %v3935_v36 }
0x18a7   :  { %5104 = vmatpush3.msra.mxu1 %v3935_v36 }
0x18a8   :  { %3767 = vmatmul.mubr.f32.gmra.mxu1 %v3656_v0  ;;  %5105 = vmatprep.subr.mxu1 %v3934_v27 }
0x18a9   :  { %3772 = vmatprep.mubr.f32.mxu1 %v5743_v7  ;;  %v3811_v7 = vld [vmem:[%s7111_s14] sm:$0xff]  ;;  %5106 = vmatpush3.msra.mxu1 %v3934_v27 }
0x18aa   :  { %5085 = vmatprep.mubr.f32.mxu0 %v3811_v7  ;;  %5107 = vmatprep.subr.mxu1 %v3933_v54 }
0x18ab   :  { %5108 = vmatpush3.msra.mxu1 %v3933_v54 }
0x18ac   :  { %3773 = vmatmul.mubr.f32.gmra.mxu1 %v3657_v20  ;;  %5109 = vmatprep.subr.mxu1 %v3932_v30 }
0x18ad   :  { %5110 = vmatpush3.msra.mxu1 %v3932_v30 }
0x18ae   :  { %5111 = vmatprep.subr.mxu1 %v3931_v29 }
0x18af   :  { %5112 = vmatpush3.msra.mxu1 %v3931_v29 }
0x1960   :  { %v7021_v52 = vpop.f32.mrf.mxu1 }
0x1962   :  { %v3758_v59 = vpop.f32.mrf.mxu1 }
0x1964   :  { %v7023_v49 = vpop.f32.mrf.mxu1 }
0x1966   :  { %v3764_v63 = vpop.f32.mrf.mxu1 }
0x1968   :  { %v7025_v37 = vpop.f32.mrf.mxu1 }
0x196a   :  { %v3770_v9 = vpop.f32.mrf.mxu1 }
0x196b   :  { %3803 = vrot.lane.b32.xlu0 %v3770_v9, %s5742_s17 }
0x196c   :  { %v3774_v40 = vpop.f32.mrf.mxu1 }
0x196e   :  { %v3776_v53 = vpop.f32.mrf.mxu1 }
0x196f   :  { %3799 = vrot.lane.b32.xlu0 %v3758_v59, %s5742_s17  ;;  %3805 = vrot.lane.b32.xlu1 %v3776_v53, %s5742_s17 }
0x1973   :  { %3787 = vrot.lane.b32.xlu0 %v7025_v37, %s5742_s17  ;;  %3801 = vrot.lane.b32.xlu1 %v3764_v63, %s5742_s17 }
0x1977   :  { %3783 = vrot.lane.b32.xlu0 %v7021_v52, %s5742_s17  ;;  %3789 = vrot.lane.b32.xlu1 %v3774_v40, %s5742_s17 }
0x197b   :  { %3785 = vrot.lane.b32.xlu1 %v7023_v49, %s5742_s17 }
0x19dd   :  { %v3804_v44 = vpop.permute.xlu0 %3803 }
0x19e1   :  { %v3806_v57 = vpop.permute.xlu1 %3805  ;;  %v3800_v32 = vpop.permute.xlu0 %3799 }
0x19e2   :  { %5053 = vmatprep.subr.mxu0 %v3806_v57 }
0x19e3   :  { %5054 = vmatpush3.msra.mxu0 %v3806_v57 }
0x19e4   :  { %5055 = vmatprep.subr.mxu0 %v3804_v44 }
0x19e5   :  { %5056 = vmatpush3.msra.mxu0 %v3804_v44  ;;  %v3802_v48 = vpop.permute.xlu1 %3801  ;;  %v3788_v21 = vpop.permute.xlu0 %3787 }
0x19e6   :  { %5057 = vmatprep.subr.mxu0 %v3802_v48 }
0x19e7   :  { %5058 = vmatpush3.msra.mxu0 %v3802_v48 }
0x19e8   :  { %5059 = vmatprep.subr.mxu0 %v3800_v32 }
0x19e9   :  { %5060 = vmatpush3.msra.mxu0 %v3800_v32  ;;  %v3790_v62 = vpop.permute.xlu1 %3789  ;;  %v3784_v6 = vpop.permute.xlu0 %3783 }
0x19ea   :  { %5061 = vmatprep.subr.mxu0 %v3776_v53 }
0x19eb   :  { %5062 = vmatpush3.msra.mxu0 %v3776_v53 }
0x19ec   :  { %5063 = vmatprep.subr.mxu0 %v3770_v9 }
0x19ed   :  { %5064 = vmatpush3.msra.mxu0 %v3770_v9  ;;  %v3786_v39 = vpop.permute.xlu1 %3785 }
0x19ee   :  { %5065 = vmatprep.subr.mxu0 %v3764_v63 }
0x19ef   :  { %5066 = vmatpush3.msra.mxu0 %v3764_v63 }
0x19f0   :  { %5067 = vmatprep.subr.mxu0 %v3758_v59 }
0x19f1   :  { %5068 = vmatpush3.msra.mxu0 %v3758_v59 }
0x19f2   :  { %5069 = vmatprep.subr.mxu0 %v3790_v62 }
0x19f3   :  { %5070 = vmatpush3.msra.mxu0 %v3790_v62 }
0x19f4   :  { %5071 = vmatprep.subr.mxu0 %v3788_v21 }
0x19f5   :  { %5072 = vmatpush3.msra.mxu0 %v3788_v21 }
0x19f6   :  { %5073 = vmatprep.subr.mxu0 %v3786_v39 }
0x19f7   :  { %5074 = vmatpush3.msra.mxu0 %v3786_v39 }
0x19f8   :  { %5075 = vmatprep.subr.mxu0 %v3784_v6 }
0x19f9   :  { %5076 = vmatpush3.msra.mxu0 %v3784_v6 }
0x19fa   :  { %5077 = vmatprep.subr.mxu0 %v3774_v40 }
0x19fb   :  { %5078 = vmatpush3.msra.mxu0 %v3774_v40 }
0x19fc   :  { %5079 = vmatprep.subr.mxu0 %v7025_v37 }
0x19fd   :  { %5080 = vmatpush3.msra.mxu0 %v7025_v37 }
0x19fe   :  { %5081 = vmatprep.subr.mxu0 %v7023_v49 }
0x19ff   :  { %5082 = vmatpush3.msra.mxu0 %v7023_v49 }
0x1a00   :  { %5083 = vmatprep.subr.mxu0 %v7021_v52 }
0x1a01   :  { %5084 = vmatpush3.msra.mxu0 %v7021_v52 }
0x1a02   :  { %5086 = vmatmul.mubr.f32.vlgmr.msra.gmra.mxu0 %v3812_v8 }
0x1a03   :  { %5088 = vmatprep.mubr.f32.mxu0 %v3813_v15 }
0x1a06   :  { %5089 = vmatmul.mubr.f32.gmra.mxu0 %v3814_v16 }
0x1a07   :  { %5091 = vmatprep.mubr.f32.mxu0 %v3815_v28 }
0x1a0a   :  { %5092 = vmatmul.mubr.f32.gmra.mxu0 %v3816_v47 }
0x1a0b   :  { %5094 = vmatprep.mubr.f32.mxu0 %v3817_v25 }
0x1a0e   :  { %5095 = vmatmul.mubr.f32.gmra.mxu0 %v3818_v2 }
0x1a0f   :  { %5141 = vmatprep.mubr.msk.f32.mxu0 %vm1553_vm5, %v4068_v33 }
0x1ac2   :  { %v5087_v34 = vpop.f32.mrf.mxu0 }
0x1ac3   :  { %v3898_v17 = vadd.f32 %v5087_v34, %v4335_v35 }
0x1ac4   :  { %v3892_v58 = vpop.f32.mrf.mxu0 }
0x1ac5   :  { %v3893_v45 = vadd.f32 %v4335_v35, %v3892_v58 }
0x1ac6   :  { %v5090_v5 = vpop.f32.mrf.mxu0 }
0x1ac7   :  { %5113 = vmatprep.mubr.msk.f32.mxu1 %vm1553_vm5, %v3893_v45  ;;  %v3908_v22 = vadd.f32 %v5090_v5, %v4335_v35 }
0x1ac8   :  { %v3902_v24 = vpop.f32.mrf.mxu0  ;;  %5114 = vmatmul.mubr.msk.f32.vlgmr.msra.gmra.mxu1 %vm1553_vm5, %v3898_v17 }
0x1ac9   :  { %v3903_v42 = vadd.f32 %v4335_v35, %v3902_v24 }
0x1aca   :  { %v5093_v23 = vpop.f32.mrf.mxu0 }
0x1acb   :  { %5116 = vmatprep.mubr.msk.f32.mxu1 %vm1553_vm5, %v3903_v42  ;;  %v3918_v4 = vadd.f32 %v5093_v23, %v4335_v35 }
0x1acc   :  { %v3912_v50 = vpop.f32.mrf.mxu0  ;;  %5117 = vmatmul.mubr.msk.f32.gmra.mxu1 %vm1553_vm5, %v3908_v22 }
0x1acd   :  { %v3913_v1 = vadd.f32 %v4335_v35, %v3912_v50 }
0x1ace   :  { %v5096_v26 = vpop.f32.mrf.mxu0 }
0x1acf   :  { %5119 = vmatprep.mubr.msk.f32.mxu1 %vm1553_vm5, %v3913_v1  ;;  %v3928_v41 = vadd.f32 %v5096_v26, %v4335_v35 }
0x1ad0   :  { %v3922_v60 = vpop.f32.mrf.mxu0  ;;  %5120 = vmatmul.mubr.msk.f32.gmra.mxu1 %vm1553_vm5, %v3918_v4 }
0x1ad1   :  { %v3923_v14 = vadd.f32 %v4335_v35, %v3922_v60 }
0x1ad3   :  { %5122 = vmatprep.mubr.msk.f32.mxu1 %vm1553_vm5, %v3923_v14 }
0x1ad4   :  { %5123 = vmatmul.mubr.msk.f32.gmra.mxu1 %vm1553_vm5, %v3928_v41 }
0x1b88   :  { %v5115_v12 = vpop.f32.mrf.mxu1 }
0x1b8a   :  { %v4029_v11 = vpop.f32.mrf.mxu1 }
0x1b8c   :  { %v5118_v38 = vpop.f32.mrf.mxu1 }
0x1b8e   :  { %v4039_v31 = vpop.f32.mrf.mxu1 }
0x1b90   :  { %v5121_v19 = vpop.f32.mrf.mxu1 }
0x1b92   :  { %v4049_v3 = vpop.f32.mrf.mxu1 }
0x1b94   :  { %v5124_v46 = vpop.f32.mrf.mxu1 }
0x1b95   :  { %5125 = vmatprep.subr.mxu0 %v5124_v46 }
0x1b96   :  { %v4059_v61 = vpop.f32.mrf.mxu1  ;;  %5126 = vmatpush3.msra.mxu0 %v5124_v46 }
0x1b97   :  { %5127 = vmatprep.subr.mxu0 %v4059_v61 }
0x1b98   :  { %5128 = vmatpush3.msra.mxu0 %v4059_v61 }
0x1b99   :  { %5129 = vmatprep.subr.mxu0 %v5121_v19 }
0x1b9a   :  { %5130 = vmatpush3.msra.mxu0 %v5121_v19 }
0x1b9b   :  { %5131 = vmatprep.subr.mxu0 %v4049_v3 }
0x1b9c   :  { %5132 = vmatpush3.msra.mxu0 %v4049_v3 }
0x1b9d   :  { %5133 = vmatprep.subr.mxu0 %v5118_v38 }
0x1b9e   :  { %5134 = vmatpush3.msra.mxu0 %v5118_v38 }
0x1b9f   :  { %5135 = vmatprep.subr.mxu0 %v4039_v31 }
0x1ba0   :  { %5136 = vmatpush3.msra.mxu0 %v4039_v31 }
0x1ba1   :  { %5137 = vmatprep.subr.mxu0 %v5115_v12 }
0x1ba2   :  { %5138 = vmatpush3.msra.mxu0 %v5115_v12 }
0x1ba3   :  { %5139 = vmatprep.subr.mxu0 %v4029_v11 }
0x1ba4   :  { %5140 = vmatpush3.msra.mxu0 %v4029_v11 }
0x1ba5   :  { %5142 = vmatmul.mubr.msk.f32.vlgmr.msra.gmra.mxu0 %vm1553_vm5, %v4069_v55 }
0x1ba6   :  { %5144 = vmatprep.mubr.msk.f32.mxu0 %vm1553_vm5, %v4070_v13 }
0x1ba9   :  { %5145 = vmatmul.mubr.msk.f32.gmra.mxu0 %vm1553_vm5, %v4071_v43 }
0x1c65   :  { %v5143_v56 = vpop.f32.mrf.mxu0 }
0x1c66   :  { %4170 = vst.msk [vmem:[%s5903_s12 + $0x8] sm:$0xff] %vm514_vm1, %v5143_v56 }
0x1c67   :  { %v4150_v0 = vpop.f32.mrf.mxu0 }
0x1c68   :  { %4169 = vst.msk [vmem:[%s5903_s12] sm:$0xff] %vm514_vm1, %v4150_v0 }
0x1c69   :  { %v5146_v20 = vpop.f32.mrf.mxu0 }
0x1c6a   :  { %4172 = vst.msk [vmem:[%s5903_s12 + $0x18] sm:$0xff] %vm514_vm1, %v5146_v20 }
0x1c6b   :  { %v4160_v52 = vpop.f32.mrf.mxu0 }
0x1c6c   :  { %4171 = vst.msk [vmem:[%s5903_s12 + $0x10] sm:$0xff] %vm514_vm1, %v4160_v52 }
0x1c6d   :  { %4177 = vsyncpa [#allocation3], 1 }
0x1c6e   :  { %4178 = vsyncpa [#allocation5], 1 }
0x1c6f   :  { %4179 = vsyncpa [#allocation8], 1 }
0x1c70   :  { %4180 = vsyncpa [#allocation11], 1 }
0x1c71   :  { %4181 = vsyncpa [#allocation14], 1 }
0x1c72   :  { %4182 = vsyncpa [#allocation17], 1 }
0x1c73   :  { %4183 = vsyncpa [#allocation20], 1 }

</bundles_post_ra>
